<compile_context>
chip_gen: v6e
topology: v6e:2x2x1
jax: 0.10.0
libtpu: 0.0.40
codegen_flags: <defaults>
</compile_context>

<pallas_src>
import math

import jax
import jax.numpy as jnp
from jax import lax
from jax.experimental import pallas as pl
from jax.experimental.pallas import tpu as pltpu  # noqa: F401  (not needed at this size)


def _attention_body(q_ref, k_ref, v_ref, mask, o_ref):
    """Shared body. `mask` is either an in-VMEM (B, T, T) array or None."""
    B, N, h, T, d_k = q_ref.shape
    G = B * N * h

    # Fold 1/sqrt(d_k) into Q: scales G*T*d_k elements instead of G*T^2 scores.
    scale = jnp.float32(1.0 / math.sqrt(d_k))
    q = q_ref[...].reshape(G, T, d_k) * scale
    k = k_ref[...].reshape(G, T, d_k)
    v = v_ref[...].reshape(G, T, d_k)

    # scores = (Q / sqrt(d_k)) @ K^T : one batched dot for all B*N*h tiny matmuls.
    scores = jnp.einsum("gtd,gsd->gts", q, k,
                        preferred_element_type=jnp.float32,
                        precision=lax.Precision.HIGHEST)          # (G, T, T)

    if mask is not None:
        # masked_fill_(mask == 0, -1e9); mask (B, T, T) broadcast over (N, h).
        mask_g = jnp.broadcast_to(mask[:, None, :, :],
                                  (B, N * h, T, T)).reshape(G, T, T)
        scores = jnp.where(mask_g == 0, jnp.float32(-1.0e9), scores)

    # Numerically stable softmax with an EXACT divide (approx reciprocal removed).
    m = jnp.max(scores, axis=-1, keepdims=True)
    e = jnp.exp(scores - m)
    p = e / jnp.sum(e, axis=-1, keepdims=True)

    # dropout(p=0.0) == identity.
    x = jnp.einsum("gts,gsd->gtd", p, v,
                   preferred_element_type=jnp.float32,
                   precision=lax.Precision.HIGHEST)               # (G, T, d_k)
    x = x.reshape(B, N, h, T, d_k)

    # Fused x.transpose(2, 3).view(B, N, T, h*d_k), flattened to a lane-dense
    # (B, N, T*h*d_k) slab.  Built purely from static slices + lane concats
    # (Mosaic-friendly: no minor-dim reshape/transpose needed).
    head_cat = jnp.concatenate([x[:, :, i] for i in range(h)], axis=-1)   # (B,N,T,h*d_k)
    flat = jnp.concatenate([head_cat[:, :, t, :] for t in range(T)], axis=-1)  # (B,N,T*h*d_k)
    o_ref[...] = flat.astype(o_ref.dtype)


def _mha_kernel_masked(q_ref, k_ref, v_ref, mask_ref, o_ref):
    _attention_body(q_ref, k_ref, v_ref, mask_ref[...], o_ref)


def _mha_kernel_nomask(q_ref, k_ref, v_ref, o_ref):
    _attention_body(q_ref, k_ref, v_ref, None, o_ref)


def multi_head_attention_forward(query, key, value, mask=None):
    """query/key/value: (B, N, h, T, d_k); mask: (B, T, T) or None.
    Returns (B, N, T, h*d_k), matching MultiHeadAttention.forward."""
    B, N, h, T, d_k = query.shape
    d_model = h * d_k

    mask_bytes = 0 if mask is None else int(mask.size * mask.dtype.itemsize)
    cost = pl.CostEstimate(
        flops=4 * B * N * h * T * T * d_k,                 # QK^T and PV matmuls
        transcendentals=B * N * h * T * T,                 # exp
        bytes_accessed=4 * (4 * B * N * h * T * d_k) + mask_bytes,
    )

    # Lane-dense output: last dim T*h*d_k (a multiple of 128 for these shapes);
    # reshaped back to (B, N, T, h*d_k) in the wrapper for free (contiguous).
    out_shape = jax.ShapeDtypeStruct((B, N, T * d_model), query.dtype)

    if mask is None:
        out = pl.pallas_call(
            _mha_kernel_nomask, out_shape=out_shape, cost_estimate=cost,
        )(query, key, value)
    else:
        out = pl.pallas_call(
            _mha_kernel_masked, out_shape=out_shape, cost_estimate=cost,
        )(query, key, value, mask)

    return out.reshape(B, N, T, d_model)


def init_params(key, nb_head, d_model):
    """Deterministic init of the module's parameters.
    NOTE: self.linears / self.lin are defined in __init__ but never used by
    the reference forward; created here only for shape parity."""
    keys = jax.random.split(key, 5)
    params = {}
    for i in range(4):  # clones(nn.Linear(32, d_model), 4)
        params[f"linear_{i}_w"] = 0.02 * jax.random.normal(
            keys[i], (d_model, 32), jnp.float32)
        params[f"linear_{i}_b"] = jnp.zeros((d_model,), jnp.float32)
    params["lin_w"] = 0.02 * jax.random.normal(keys[4], (64, 32), jnp.float32)
    params["lin_b"] = jnp.zeros((64,), jnp.float32)
    return params


def _reference(query, key, value, mask):
    d_k = query.shape[-1]
    scores = jnp.einsum("bnhtd,bnhsd->bnhts", query, key,
                        precision=lax.Precision.HIGHEST) / math.sqrt(d_k)
    if mask is not None:
        scores = jnp.where(mask[:, None, None, :, :] == 0, -1.0e9, scores)
    p = jax.nn.softmax(scores, axis=-1)
    x = jnp.einsum("bnhts,bnhsd->bnhtd", p, value,
                   precision=lax.Precision.HIGHEST)
    B, N, h, T, dk = x.shape
    return jnp.transpose(x, (0, 1, 3, 2, 4)).reshape(B, N, T, h * dk)


if __name__ == "__main__":
    nb_head, d_model = 4, 32
    d_k = d_model // nb_head
    B, N, T = 2, 4, 8

    root = jax.random.PRNGKey(0)
    kq, kk, kv, kp = jax.random.split(root, 4)
    q = jax.random.normal(kq, (B, N, nb_head, T, d_k), jnp.float32)
    k = jax.random.normal(kk, (B, N, nb_head, T, d_k), jnp.float32)
    v = jax.random.normal(kv, (B, N, nb_head, T, d_k), jnp.float32)
    # (batch, T, T) mask; lower-triangular so some positions are masked out.
    mask = jnp.broadcast_to(jnp.tril(jnp.ones((T, T), jnp.float32)), (B, T, T))

    _ = init_params(kp, nb_head, d_model)  # unused in forward (parity only)

    out = multi_head_attention_forward(q, k, v, mask)
    out = jax.block_until_ready(out)
    assert out.shape == (B, N, T, d_model), out.shape
    ref = _reference(q, k, v, mask)
    assert jnp.allclose(out, ref, atol=1e-4, rtol=1e-4), "mismatch vs reference"

    # Also exercise the mask=None fast path (no mask operand DMA'd at all).
    out_nm = jax.block_until_ready(multi_head_attention_forward(q, k, v, None))
    ref_nm = _reference(q, k, v, None)
    assert out_nm.shape == (B, N, T, d_model), out_nm.shape
    assert jnp.allclose(out_nm, ref_nm, atol=1e-4, rtol=1e-4), "mismatch (no mask)"

    print("KERNEL_OK")
</pallas_src>

<mosaic_0001>
module attributes {stable_mosaic.version = 11 : i64} {
  func.func @_mha_kernel_masked(%arg0: memref<2x4x4x8x8xf32, #tpu.memory_space<vmem>>, %arg1: memref<2x4x4x8x8xf32, #tpu.memory_space<vmem>>, %arg2: memref<2x4x4x8x8xf32, #tpu.memory_space<vmem>>, %arg3: memref<2x8x8xf32, #tpu.memory_space<vmem>>, %arg4: memref<2x4x256xf32, #tpu.memory_space<vmem>>) attributes {dimension_semantics = [], scalar_prefetch = 0 : i64, scratch_operands = 0 : i64, tpu.core_type = #tpu.core_type<tc>} {
    %c0 = arith.constant 0 : index
    %c0_0 = arith.constant 0 : index
    %c0_1 = arith.constant 0 : index
    %0 = vector.load %arg3[%c0, %c0_0, %c0_1] : memref<2x8x8xf32, #tpu.memory_space<vmem>>, vector<2x8x8xf32>
    %c0_2 = arith.constant 0 : index
    %c0_3 = arith.constant 0 : index
    %c0_4 = arith.constant 0 : index
    %c0_5 = arith.constant 0 : index
    %c0_6 = arith.constant 0 : index
    %1 = vector.load %arg0[%c0_2, %c0_3, %c0_4, %c0_5, %c0_6] : memref<2x4x4x8x8xf32, #tpu.memory_space<vmem>>, vector<2x4x4x8x8xf32>
    %2 = vector.shape_cast %1 : vector<2x4x4x8x8xf32> to vector<32x8x8xf32>
    %cst = arith.constant 0.353553385 : f32
    %3 = vector.broadcast %cst : f32 to vector<32x8x8xf32>
    %4 = arith.mulf %2, %3 : vector<32x8x8xf32>
    %c0_7 = arith.constant 0 : index
    %c0_8 = arith.constant 0 : index
    %c0_9 = arith.constant 0 : index
    %c0_10 = arith.constant 0 : index
    %c0_11 = arith.constant 0 : index
    %5 = vector.load %arg1[%c0_7, %c0_8, %c0_9, %c0_10, %c0_11] : memref<2x4x4x8x8xf32, #tpu.memory_space<vmem>>, vector<2x4x4x8x8xf32>
    %6 = vector.shape_cast %5 : vector<2x4x4x8x8xf32> to vector<32x8x8xf32>
    %c0_12 = arith.constant 0 : index
    %c0_13 = arith.constant 0 : index
    %c0_14 = arith.constant 0 : index
    %c0_15 = arith.constant 0 : index
    %c0_16 = arith.constant 0 : index
    %7 = vector.load %arg2[%c0_12, %c0_13, %c0_14, %c0_15, %c0_16] : memref<2x4x4x8x8xf32, #tpu.memory_space<vmem>>, vector<2x4x4x8x8xf32>
    %8 = vector.shape_cast %7 : vector<2x4x4x8x8xf32> to vector<32x8x8xf32>
    "tpu.trace_start"() <{level = 10 : i32, message = "gtd,gsd->gts"}> : () -> ()
    %cst_17 = arith.constant dense<0.000000e+00> : vector<32x8x8xf32>
    %9 = tpu.matmul %4, %6, %cst_17 {dimension_numbers = #tpu.dot_dimension_numbers<[2], [2], [1], [1], [0, 0, 0, 1, 1, 1], [0], [0]>, precision = #tpu.contract_precision<fp32>} : vector<32x8x8xf32>, vector<32x8x8xf32>, vector<32x8x8xf32> -> vector<32x8x8xf32>
    "tpu.trace_stop"() : () -> ()
    %10 = vector.shape_cast %0 : vector<2x8x8xf32> to vector<2x1x8x8xf32>
    %11 = vector.shape_cast %10 : vector<2x1x8x8xf32> to vector<2x1x8x8xf32>
    %12 = vector.broadcast %11 : vector<2x1x8x8xf32> to vector<2x16x8x8xf32>
    %13 = vector.shape_cast %12 : vector<2x16x8x8xf32> to vector<32x8x8xf32>
    %cst_18 = arith.constant 0.000000e+00 : f32
    %14 = vector.broadcast %cst_18 : f32 to vector<32x8x8xf32>
    %15 = arith.cmpf oeq, %13, %14 : vector<32x8x8xf32>
    %cst_19 = arith.constant -1.000000e+09 : f32
    %16 = vector.broadcast %cst_19 : f32 to vector<32x8x8xf32>
    %17 = arith.select %15, %16, %9 : vector<32x8x8xi1>, vector<32x8x8xf32>
    %cst_20 = arith.constant dense<0xFF800000> : vector<32x8xf32>
    %18 = vector.multi_reduction <maximumf>, %17, %cst_20 [2] : vector<32x8x8xf32> to vector<32x8xf32>
    %19 = vector.shape_cast %18 : vector<32x8xf32> to vector<32x8x1xf32>
    %20 = vector.broadcast %19 : vector<32x8x1xf32> to vector<32x8x8xf32>
    %21 = arith.subf %17, %20 : vector<32x8x8xf32>
    %22 = math.exp %21 : vector<32x8x8xf32>
    %cst_21 = arith.constant dense<0.000000e+00> : vector<32x8xf32>
    %23 = vector.multi_reduction <add>, %22, %cst_21 [2] : vector<32x8x8xf32> to vector<32x8xf32>
    %24 = vector.shape_cast %23 : vector<32x8xf32> to vector<32x8x1xf32>
    %25 = vector.broadcast %24 : vector<32x8x1xf32> to vector<32x8x8xf32>
    %26 = arith.divf %22, %25 : vector<32x8x8xf32>
    "tpu.trace_start"() <{level = 10 : i32, message = "gts,gsd->gtd"}> : () -> ()
    %cst_22 = arith.constant dense<0.000000e+00> : vector<32x8x8xf32>
    %27 = tpu.matmul %26, %8, %cst_22 {dimension_numbers = #tpu.dot_dimension_numbers<[2], [1], [1], [2], [0, 0, 0, 1, 1, 2], [0], [0]>, precision = #tpu.contract_precision<fp32>} : vector<32x8x8xf32>, vector<32x8x8xf32>, vector<32x8x8xf32> -> vector<32x8x8xf32>
    "tpu.trace_stop"() : () -> ()
    %28 = vector.shape_cast %27 : vector<32x8x8xf32> to vector<2x4x4x8x8xf32>
    %29 = vector.extract_strided_slice %28 {offsets = [0, 0, 0, 0, 0], sizes = [2, 4, 1, 8, 8], strides = [1, 1, 1, 1, 1]} : vector<2x4x4x8x8xf32> to vector<2x4x1x8x8xf32>
    %30 = vector.shape_cast %29 : vector<2x4x1x8x8xf32> to vector<2x4x8x8xf32>
    %31 = vector.extract_strided_slice %28 {offsets = [0, 0, 1, 0, 0], sizes = [2, 4, 1, 8, 8], strides = [1, 1, 1, 1, 1]} : vector<2x4x4x8x8xf32> to vector<2x4x1x8x8xf32>
    %32 = vector.shape_cast %31 : vector<2x4x1x8x8xf32> to vector<2x4x8x8xf32>
    %33 = vector.extract_strided_slice %28 {offsets = [0, 0, 2, 0, 0], sizes = [2, 4, 1, 8, 8], strides = [1, 1, 1, 1, 1]} : vector<2x4x4x8x8xf32> to vector<2x4x1x8x8xf32>
    %34 = vector.shape_cast %33 : vector<2x4x1x8x8xf32> to vector<2x4x8x8xf32>
    %35 = vector.extract_strided_slice %28 {offsets = [0, 0, 3, 0, 0], sizes = [2, 4, 1, 8, 8], strides = [1, 1, 1, 1, 1]} : vector<2x4x4x8x8xf32> to vector<2x4x1x8x8xf32>
    %36 = vector.shape_cast %35 : vector<2x4x1x8x8xf32> to vector<2x4x8x8xf32>
    %37 = tpu.concatenate %30, %32, %34, %36 in 3 : vector<2x4x8x8xf32>, vector<2x4x8x8xf32>, vector<2x4x8x8xf32>, vector<2x4x8x8xf32> -> vector<2x4x8x32xf32>
    %38 = vector.extract_strided_slice %37 {offsets = [0, 0, 0, 0], sizes = [2, 4, 1, 32], strides = [1, 1, 1, 1]} : vector<2x4x8x32xf32> to vector<2x4x1x32xf32>
    %39 = vector.shape_cast %38 : vector<2x4x1x32xf32> to vector<2x4x32xf32>
    %40 = vector.extract_strided_slice %37 {offsets = [0, 0, 1, 0], sizes = [2, 4, 1, 32], strides = [1, 1, 1, 1]} : vector<2x4x8x32xf32> to vector<2x4x1x32xf32>
    %41 = vector.shape_cast %40 : vector<2x4x1x32xf32> to vector<2x4x32xf32>
    %42 = vector.extract_strided_slice %37 {offsets = [0, 0, 2, 0], sizes = [2, 4, 1, 32], strides = [1, 1, 1, 1]} : vector<2x4x8x32xf32> to vector<2x4x1x32xf32>
    %43 = vector.shape_cast %42 : vector<2x4x1x32xf32> to vector<2x4x32xf32>
    %44 = vector.extract_strided_slice %37 {offsets = [0, 0, 3, 0], sizes = [2, 4, 1, 32], strides = [1, 1, 1, 1]} : vector<2x4x8x32xf32> to vector<2x4x1x32xf32>
    %45 = vector.shape_cast %44 : vector<2x4x1x32xf32> to vector<2x4x32xf32>
    %46 = vector.extract_strided_slice %37 {offsets = [0, 0, 4, 0], sizes = [2, 4, 1, 32], strides = [1, 1, 1, 1]} : vector<2x4x8x32xf32> to vector<2x4x1x32xf32>
    %47 = vector.shape_cast %46 : vector<2x4x1x32xf32> to vector<2x4x32xf32>
    %48 = vector.extract_strided_slice %37 {offsets = [0, 0, 5, 0], sizes = [2, 4, 1, 32], strides = [1, 1, 1, 1]} : vector<2x4x8x32xf32> to vector<2x4x1x32xf32>
    %49 = vector.shape_cast %48 : vector<2x4x1x32xf32> to vector<2x4x32xf32>
    %50 = vector.extract_strided_slice %37 {offsets = [0, 0, 6, 0], sizes = [2, 4, 1, 32], strides = [1, 1, 1, 1]} : vector<2x4x8x32xf32> to vector<2x4x1x32xf32>
    %51 = vector.shape_cast %50 : vector<2x4x1x32xf32> to vector<2x4x32xf32>
    %52 = vector.extract_strided_slice %37 {offsets = [0, 0, 7, 0], sizes = [2, 4, 1, 32], strides = [1, 1, 1, 1]} : vector<2x4x8x32xf32> to vector<2x4x1x32xf32>
    %53 = vector.shape_cast %52 : vector<2x4x1x32xf32> to vector<2x4x32xf32>
    %54 = tpu.concatenate %39, %41, %43, %45, %47, %49, %51, %53 in 2 : vector<2x4x32xf32>, vector<2x4x32xf32>, vector<2x4x32xf32>, vector<2x4x32xf32>, vector<2x4x32xf32>, vector<2x4x32xf32>, vector<2x4x32xf32>, vector<2x4x32xf32> -> vector<2x4x256xf32>
    %c0_23 = arith.constant 0 : index
    %c0_24 = arith.constant 0 : index
    %c0_25 = arith.constant 0 : index
    %55 = vector.load %arg4[%c0_23, %c0_24, %c0_25] : memref<2x4x256xf32, #tpu.memory_space<vmem>>, vector<2x4x256xf32>
    tpu.vector_store %arg4[%c0_23, %c0_24, %c0_25], %54 {strides = array<i32>} : memref<2x4x256xf32, #tpu.memory_space<vmem>>, vector<2x4x256xf32>,
    return
  }
}

</mosaic_0001>

<bundles_post_ra>
// kernel: tpu_custom_call.1
= control target key start
LH: loop header
LB: loop body
LE: loop exit
PB: predicated region body
PF: predicated region fallthrough
CT: control target
= control target key end

     0   :  { %9 = vsyncpa [#allocation3], 0  ;;  %s36261_s0 = inlined_call_operand.hbm [shape: f32[2,4,4,8,8], index: 0, kind: input, shape index: {}]   ;;  %s36262_s1 = inlined_call_operand.hbm [shape: f32[2,4,4,8,8], index: 1, kind: input, shape index: {}]   ;;  %s36263_s2 = inlined_call_operand.hbm [shape: f32[2,4,4,8,8], index: 2, kind: input, shape index: {}]   ;;  %s36264_s3 = inlined_call_operand.hbm [shape: f32[2,8,8], index: 3, kind: input, shape index: {}]   ;;  %s36265_s4 = inlined_call_operand.hbm [shape: f32[2,4,256], index: 4, kind: output, shape index: {}]  }
   0x1   :  { %10 = vsyncpa [#allocation6], 0 }
   0x2   :  { %11 = vsyncpa [#allocation9], 0 }
   0x3   :  { %12 = vsyncpa [#allocation4], 0  ;;  %s32681_s15 = smov [#allocation5]   ;;  %s32682_s17 = smov [#allocation2]  }
   0x4   :  { %s30_s16 = sshll.u32 %s32681_s15, 4  ;;  %s18_s18 = sshll.u32 %s32682_s17, 4  ;;  %s31_s16 = int_to_ptr.vmem [resolvable:$true] %s30_s16  ;;  %s19_s18 = int_to_ptr.vmem [resolvable:$true] %s18_s18 }
   0x5   :  { %s32581_s19 = scalar_lea.vmem %s31_s16, 4096  ;;  %p32586_p1 = scmp.lt.s32.totalorder %s31_s16, %s31_s16 }
   0x6   :  { %p32582_p0 = scmp.ne.s32.totalorder %s31_s16, %s32581_s19  ;;  %p32587_p2 = scmp.lt.s32.totalorder %s32581_s19, %s32581_s19 }
   0x8   :  { %p32588_p3 = por %p32587_p2, %p32586_p1 }
   0xa   :  { %p32589_p4 = pnand %p32588_p3, %p32582_p0 }
   0xc   :  { %32592 = shalt.err (!%p32589_p4)
}
   0xd   :  { %s32683_s20 = smov 128   ;;  %s32684_s21 = smov 8  }
   0xe   :  { %36 = dma.hbm_to_vmem [thread:$0]  %s36262_s1, 4096, %s31_s16, [#allocation6], %s32683_s20, %s32683_s20, %s32684_s21  }
   0xf   :  { %s32601_s24 = scalar_lea.vmem %s19_s18, 4096  ;;  %p32606_p6 = scmp.lt.s32.totalorder %s19_s18, %s19_s18 }
  0x10   :  { %p32602_p5 = scmp.ne.s32.totalorder %s19_s18, %s32601_s24  ;;  %p32607_p7 = scmp.lt.s32.totalorder %s32601_s24, %s32601_s24 }
  0x12   :  { %p32608_p8 = por %p32607_p7, %p32606_p6 }
  0x14   :  { %p32609_p9 = pnand %p32608_p8, %p32602_p5 }
  0x16   :  { %32612 = shalt.err (!%p32609_p9)
}
  0x17   :  { %24 = dma.hbm_to_vmem [thread:$0]  %s36261_s0, 4096, %s19_s18, [#allocation3], %s32683_s20, %s32683_s20, %s32684_s21  }
  0x18   :  { %s32685_s27 = smov [#allocation7]   ;;  %s32686_s29 = smov [#allocation8]  }
  0x19   :  { %s42_s28 = sshll.u32 %s32685_s27, 4  ;;  %s54_s30 = sshll.u32 %s32686_s29, 4  ;;  %s43_s28 = int_to_ptr.vmem [resolvable:$true] %s42_s28  ;;  %s55_s30 = int_to_ptr.vmem [resolvable:$true] %s54_s30 }
  0x1a   :  { %s32621_s1 = scalar_lea.vmem %s43_s28, 4096  ;;  %p32626_p11 = scmp.lt.s32.totalorder %s43_s28, %s43_s28 }
  0x1b   :  { %p32622_p10 = scmp.ne.s32.totalorder %s43_s28, %s32621_s1  ;;  %p32627_p12 = scmp.lt.s32.totalorder %s32621_s1, %s32621_s1 }
  0x1d   :  { %p32628_p13 = por %p32627_p12, %p32626_p11 }
  0x1f   :  { %p32629_p0 = pnand %p32628_p13, %p32622_p10 }
  0x21   :  { %32632 = shalt.err (!%p32629_p0)
}
  0x22   :  { %48 = dma.hbm_to_vmem [thread:$0]  %s36263_s2, 4096, %s43_s28, [#allocation6], %s32683_s20, %s32683_s20, %s32684_s21  }
  0x23   :  { %s32641_s0 = scalar_lea.vmem %s55_s30, 256  ;;  %p32646_p2 = scmp.lt.s32.totalorder %s55_s30, %s55_s30 }
  0x24   :  { %p32642_p1 = scmp.ne.s32.totalorder %s55_s30, %s32641_s0  ;;  %p32647_p3 = scmp.lt.s32.totalorder %s32641_s0, %s32641_s0 }
  0x26   :  { %p32648_p4 = por %p32647_p3, %p32646_p2 }
  0x28   :  { %p32649_p5 = pnand %p32648_p4, %p32642_p1 }
  0x2a   :  { %32652 = shalt.err (!%p32649_p5)
}
  0x2b   :  { %60 = dma.hbm_to_vmem [thread:$0]  %s36264_s3, 256, %s55_s30, [#allocation9], %s32683_s20, %s32683_s20, %s32684_s21  }
  0x2c   :  { %32673 = dma.done.wait [#allocation3], 4096  }
  0x2d   :  { %32674 = vsyncadd [#allocation3], 4294963200 }
  0x2e   :  { %32675 = dma.done.wait [#allocation6], 8192  }
  0x2f   :  { %32676 = vsyncadd [#allocation6], 4294959104 }
  0x30   :  { %32677 = dma.done.wait [#allocation9], 256  }
  0x31   :  { %32678 = vsyncadd [#allocation9], 4294967040  ;;  %v32687_v0 = vmov 0.0   ;;  %vm32688_vm0 = vmmov 0   ;;  %vm203_vm1 = vcmask 64512   ;;  %v139_v1 = vld [vmem:[#allocation5] sm:$0xff] }
  0x32   :  { %30511 = vmatprep.subr.mxu0 %v32687_v0  ;;  %30516 = vmatprep.subr.mxu1 %v32687_v0  ;;  %v75_v2 = vld [vmem:[#allocation2] sm:$0xff]  ;;  %v140_v3 = vld [vmem:[#allocation5 + $0x8] sm:$0xff]  ;;  %v208_v4 = vsel %vm203_vm1, %v139_v1, 0  ;;  %v77_v21 = vld [vmem:[#allocation2 + $0x10] sm:$0xff]  ;;  %s32689_s2 = smov 16   ;;  %s32690_s3 = smov 24  }
  0x33   :  { %30513 = vmatprep.mubr.msk.f32.mxu0 %vm32688_vm0, %v32687_v0  ;;  %30518 = vmatprep.mubr.msk.f32.mxu1 %vm32688_vm0, %v32687_v0  ;;  %v107_v5 = vmul.f32 0.35355338, %v75_v2  ;;  %v660_v6 = vsel %vm203_vm1, %v140_v3, 0  ;;  %v76_v7 = vld [vmem:[#allocation2 + $0x8] sm:$0xff]  ;;  %v241_v8 = vand.u32 4294901760, %v208_v4  ;;  %v141_v25 = vld [vmem:[#allocation5 + $0x10] sm:$0xff] }
  0x34   :  { %v108_v9 = vmul.f32 0.35355338, %v76_v7  ;;  %v32753_v13 = vand.u32 4294901760, %v660_v6  ;;  %v109_v26 = vmul.f32 0.35355338, %v77_v21  ;;  %v1112_v29 = vsel %vm203_vm1, %v141_v25, 0 }
  0x35   :  { %v205_v10 = vsel %vm203_vm1, %v107_v5, 0  ;;  %30512 = vmatpush3.xpose.msra.mxu0 %v241_v8  ;;  %v318_v11 = vsub.f32 %v208_v4, %v241_v8  ;;  %v32773_v33 = vand.u32 4294901760, %v1112_v29  ;;  %v78_v38 = vld [vmem:[#allocation2 + $0x18] sm:$0xff]  ;;  %v79_v53 = vld [vmem:[#allocation2 + $0x20] sm:$0xff]  ;;  %v80_v5 = vld [vmem:[#allocation2 + $0x28] sm:$0xff]  ;;  %vm29526_vm4 = vcmask 130048  }
  0x36   :  { %v276_v12 = vand.u32 4294901760, %v205_v10  ;;  %v657_v14 = vsel %vm203_vm1, %v108_v9, 0  ;;  %30521 = vmatprep.subr.mxu0 %v32687_v0  ;;  %v32760_v20 = vsub.f32 %v660_v6, %v32753_v13  ;;  %v1109_v31 = vsel %vm203_vm1, %v109_v26, 0  ;;  %v142_v41 = vld [vmem:[#allocation5 + $0x18] sm:$0xff]  ;;  %v143_v56 = vld [vmem:[#allocation5 + $0x20] sm:$0xff]  ;;  %s32691_s9 = smov 32  }
  0x37   :  { %v319_v15 = vand.u32 4294901760, %v318_v11  ;;  %v32757_v17 = vand.u32 4294901760, %v657_v14  ;;  %v32780_v35 = vand.u32 4294901760, %v1109_v31  ;;  %v32785_v37 = vsub.f32 %v1112_v29, %v32773_v33  ;;  %s32692_s10 = smov 64   ;;  %s32693_s11 = smov 96  }
  0x38   :  { %v277_v16 = vsub.f32 %v205_v10, %v276_v12  ;;  %v771_v28 = vand.u32 4294901760, %v32760_v20  ;;  %v110_v42 = vmul.f32 0.35355338, %v78_v38  ;;  %v1564_v44 = vsel %vm203_vm1, %v142_v41, 0  ;;  %v146_v38 = vld [vmem:[#allocation5 + $0x38] sm:$0xff]  ;;  %s32694_s12 = smov [#allocation10]  }
  0x39   :  { %v320_v18 = vsub.f32 %v318_v11, %v319_v15  ;;  %v32763_v24 = vsub.f32 %v657_v14, %v32757_v17  ;;  %v32792_v40 = vsub.f32 %v1109_v31, %v32780_v35  ;;  %v1223_v43 = vand.u32 4294901760, %v32785_v37  ;;  %s29729_s13 = sshll.u32 %s32694_s12, 4  ;;  %s29730_s13 = int_to_ptr.vmem [resolvable:$true] %s29729_s13 }
  0x3a   :  { %v278_v19 = vand.u32 4294901760, %v277_v16  ;;  %v772_v32 = vsub.f32 %v32760_v20, %v771_v28  ;;  %v1561_v46 = vsel %vm203_vm1, %v110_v42, 0  ;;  %v32811_v48 = vand.u32 4294901760, %v1564_v44  ;;  %s32653_s14 = scalar_lea.vmem %s29730_s13, 256  ;;  %p32658_p7 = scmp.lt.s32.totalorder %s29730_s13, %s29730_s13 }
  0x3b   :  { %v321_v22 = vand.u32 4294901760, %v320_v18  ;;  %v730_v30 = vand.u32 4294901760, %v32763_v24  ;;  %v1182_v45 = vand.u32 4294901760, %v32792_v40  ;;  %v1224_v47 = vsub.f32 %v32785_v37, %v1223_v43  ;;  %p32654_p6 = scmp.ne.s32.totalorder %s29730_s13, %s32653_s14  ;;  %p32659_p8 = scmp.lt.s32.totalorder %s32653_s14, %s32653_s14 }
  0x3c   :  { %v279_v23 = vsub.f32 %v277_v16, %v278_v19  ;;  %v773_v36 = vand.u32 4294901760, %v772_v32  ;;  %v32819_v50 = vand.u32 4294901760, %v1561_v46  ;;  %v32825_v52 = vsub.f32 %v1564_v44, %v32811_v48 }
  0x3d   :  { %30517 = vmatpush3.xpose.msra.mxu1 %v321_v22  ;;  %v731_v34 = vsub.f32 %v32763_v24, %v730_v30  ;;  %v1183_v49 = vsub.f32 %v32792_v40, %v1182_v45  ;;  %v1225_v51 = vand.u32 4294901760, %v1224_v47  ;;  %v111_v57 = vmul.f32 0.35355338, %v79_v53  ;;  %v147_v53 = vld [vmem:[#allocation5 + $0x40] sm:$0xff]  ;;  %p32660_p9 = por %p32659_p8, %p32658_p7 }
  0x3e   :  { %v280_v27 = vand.u32 4294901760, %v279_v23  ;;  %30526 = vmatprep.subr.mxu1 %v32687_v0  ;;  %v32833_v55 = vsub.f32 %v1561_v46, %v32819_v50  ;;  %v1675_v58 = vand.u32 4294901760, %v32825_v52  ;;  %v2016_v59 = vsel %vm203_vm1, %v143_v56, 0  ;;  %v145_v23 = vld [vmem:[#allocation5 + $0x30] sm:$0xff] }
  0x3f   :  { %v732_v39 = vand.u32 4294901760, %v731_v34  ;;  %v1184_v54 = vand.u32 4294901760, %v1183_v49  ;;  %v2013_v61 = vsel %vm203_vm1, %v111_v57, 0  ;;  %v32853_v63 = vand.u32 4294901760, %v2016_v59  ;;  %p32661_p10 = pnand %p32660_p9, %p32654_p6 }
  0x40   :  { %30514 = vmatmul.mubr.f32.vlgmr.msra.gmra.mxu0 %v280_v27  ;;  %30519 = vmatmul.mubr.f32.vlgmr.msra.gmra.mxu1 %v276_v12  ;;  %v1634_v60 = vand.u32 4294901760, %v32833_v55  ;;  %v1676_v62 = vsub.f32 %v32825_v52, %v1675_v58  ;;  %v32861_v2 = vand.u32 4294901760, %v2013_v61  ;;  %v112_v9 = vmul.f32 0.35355338, %v80_v5  ;;  %v148_v5 = vld [vmem:[#allocation5 + $0x48] sm:$0xff] }
  0x41   :  { %30522 = vmatpush3.xpose.msra.mxu0 %v318_v11  ;;  %30527 = vmatpush3.xpose.msra.mxu1 %v241_v8  ;;  %v32867_v4 = vsub.f32 %v2016_v59, %v32853_v63  ;;  %v2920_v26 = vsel %vm203_vm1, %v145_v23, 0  ;;  %v3372_v41 = vsel %vm203_vm1, %v146_v38, 0  ;;  %v3824_v56 = vsel %vm203_vm1, %v147_v53, 0 }
  0x42   :  { %30523 = vmatprep.mubr.msk.f32.mxu0 %vm32688_vm0, %v32687_v0  ;;  %30531 = vmatprep.subr.mxu0 %v32687_v0  ;;  %v1635_v1 = vsub.f32 %v32833_v55, %v1634_v60  ;;  %v1677_v3 = vand.u32 4294901760, %v1676_v62  ;;  %v32875_v7 = vsub.f32 %v2013_v61, %v32861_v2  ;;  %vm29535_vm5 = vcmask 195584  }
  0x43   :  { %30528 = vmatprep.mubr.msk.f32.mxu1 %vm32688_vm0, %v32687_v0  ;;  %30536 = vmatprep.subr.mxu1 %v32687_v0  ;;  %v2127_v10 = vand.u32 4294901760, %v32867_v4  ;;  %vm29553_vm6 = vcmask 1041409   ;;  %vm29556_vm7 = vcmask 1042434   ;;  %vm29559_vm8 = vcmask 1043459  }
  0x44   :  { %30524 = vmatmul.mubr.f32.vlgmr.msra.gmra.mxu0 %v277_v16  ;;  %30529 = vmatmul.mubr.f32.vlgmr.msra.gmra.mxu1 %v278_v19  ;;  %v1636_v6 = vand.u32 4294901760, %v1635_v1  ;;  %vm29699_vm9 = vcmask 261120   ;;  %vm29702_vm10 = vcmask 523264   ;;  %vm29705_vm11 = vcmask 785408  }
  0x45   :  { %30532 = vmatpush3.xpose.msra.mxu0 %v319_v15  ;;  %30537 = vmatpush3.xpose.msra.mxu1 %v241_v8  ;;  %v144_v8 = vld [vmem:[#allocation5 + $0x28] sm:$0xff]  ;;  %v2128_v14 = vsub.f32 %v32867_v4, %v2127_v10 }
  0x46   :  { %30533 = vmatprep.mubr.msk.f32.mxu0 %vm32688_vm0, %v32687_v0  ;;  %30541 = vmatprep.subr.mxu0 %v32687_v0  ;;  %v2468_v11 = vsel %vm203_vm1, %v144_v8, 0  ;;  %v4276_v8 = vsel %vm203_vm1, %v148_v5, 0 }
  0x47   :  { %30538 = vmatprep.mubr.msk.f32.mxu1 %vm32688_vm0, %v32687_v0  ;;  %30546 = vmatprep.subr.mxu1 %v32687_v0  ;;  %v32895_v15 = vand.u32 4294901760, %v2468_v11  ;;  %v2129_v18 = vand.u32 4294901760, %v2128_v14 }
  0x48   :  { %30534 = vmatmul.mubr.f32.vlgmr.msra.gmra.mxu0 %v276_v12  ;;  %30539 = vmatmul.mubr.f32.vlgmr.msra.gmra.mxu1 %v276_v12  ;;  %v2086_v12 = vand.u32 4294901760, %v32875_v7 }
  0x49   :  { %30542 = vmatpush3.xpose.msra.mxu0 %v32753_v13  ;;  %30547 = vmatpush3.xpose.msra.mxu1 %v773_v36  ;;  %v32909_v19 = vsub.f32 %v2468_v11, %v32895_v15 }
  0x4a   :  { %30543 = vmatprep.mubr.msk.f32.mxu0 %vm32688_vm0, %v32687_v0  ;;  %30551 = vmatprep.subr.mxu0 %v32687_v0  ;;  %v2087_v16 = vsub.f32 %v32875_v7, %v2086_v12 }
  0x4b   :  { %30548 = vmatprep.mubr.msk.f32.mxu1 %vm32688_vm0, %v32687_v0  ;;  %30556 = vmatprep.subr.mxu1 %v32687_v0  ;;  %v2579_v25 = vand.u32 4294901760, %v32909_v19 }
  0x4c   :  { %30544 = vmatmul.mubr.f32.vlgmr.msra.gmra.mxu0 %v732_v39  ;;  %30549 = vmatmul.mubr.f32.vlgmr.msra.gmra.mxu1 %v32757_v17  ;;  %v2088_v21 = vand.u32 4294901760, %v2087_v16 }
  0x4d   :  { %30552 = vmatpush3.xpose.msra.mxu0 %v32760_v20  ;;  %30557 = vmatpush3.xpose.msra.mxu1 %v32753_v13  ;;  %v81_v20 = vld [vmem:[#allocation2 + $0x30] sm:$0xff]  ;;  %v2580_v29 = vsub.f32 %v32909_v19, %v2579_v25 }
  0x4e   :  { %30553 = vmatprep.mubr.msk.f32.mxu0 %vm32688_vm0, %v32687_v0  ;;  %30561 = vmatprep.subr.mxu0 %v32687_v0 }
  0x4f   :  { %30558 = vmatprep.mubr.msk.f32.mxu1 %vm32688_vm0, %v32687_v0  ;;  %30566 = vmatprep.subr.mxu1 %v32687_v0 }
  0x50   :  { %30554 = vmatmul.mubr.f32.vlgmr.msra.gmra.mxu0 %v32763_v24  ;;  %30559 = vmatmul.mubr.f32.vlgmr.msra.gmra.mxu1 %v730_v30  ;;  %v113_v24 = vmul.f32 0.35355338, %v81_v20  ;;  %v32937_v30 = vand.u32 4294901760, %v2920_v26  ;;  %v149_v20 = vld [vmem:[#allocation5 + $0x50] sm:$0xff] }
  0x51   :  { %30562 = vmatpush3.xpose.msra.mxu0 %v771_v28  ;;  %30567 = vmatpush3.xpose.msra.mxu1 %v32753_v13  ;;  %v2465_v13 = vsel %vm203_vm1, %v112_v9, 0  ;;  %v4728_v23 = vsel %vm203_vm1, %v149_v20, 0 }
  0x52   :  { %30563 = vmatprep.mubr.msk.f32.mxu0 %vm32688_vm0, %v32687_v0  ;;  %30571 = vmatprep.subr.mxu0 %v32687_v0  ;;  %v2917_v28 = vsel %vm203_vm1, %v113_v24, 0  ;;  %v32951_v34 = vsub.f32 %v2920_v26, %v32937_v30 }
  0x53   :  { %30568 = vmatprep.mubr.msk.f32.mxu1 %vm32688_vm0, %v32687_v0  ;;  %30576 = vmatprep.subr.mxu1 %v32687_v0  ;;  %v32945_v32 = vand.u32 4294901760, %v2917_v28 }
  0x54   :  { %30564 = vmatmul.mubr.f32.vlgmr.msra.gmra.mxu0 %v32757_v17  ;;  %30569 = vmatmul.mubr.f32.vlgmr.msra.gmra.mxu1 %v32757_v17  ;;  %v32903_v17 = vand.u32 4294901760, %v2465_v13 }
  0x55   :  { %30572 = vmatpush3.xpose.msra.mxu0 %v32773_v33  ;;  %30577 = vmatpush3.xpose.msra.mxu1 %v1225_v51 }
  0x56   :  { %30573 = vmatprep.mubr.msk.f32.mxu0 %vm32688_vm0, %v32687_v0  ;;  %30581 = vmatprep.subr.mxu0 %v32687_v0  ;;  %v32917_v22 = vsub.f32 %v2465_v13, %v32903_v17 }
  0x57   :  { %30578 = vmatprep.mubr.msk.f32.mxu1 %vm32688_vm0, %v32687_v0  ;;  %30586 = vmatprep.subr.mxu1 %v32687_v0 }
  0x58   :  { %30574 = vmatmul.mubr.f32.vlgmr.msra.gmra.mxu0 %v1184_v54  ;;  %30579 = vmatmul.mubr.f32.vlgmr.msra.gmra.mxu1 %v32780_v35  ;;  %v2538_v27 = vand.u32 4294901760, %v32917_v22 }
  0x59   :  { %30582 = vmatpush3.xpose.msra.mxu0 %v32785_v37  ;;  %30587 = vmatpush3.xpose.msra.mxu1 %v32773_v33  ;;  %v32959_v37 = vsub.f32 %v2917_v28, %v32945_v32 }
  0x5a   :  { %30583 = vmatprep.mubr.msk.f32.mxu0 %vm32688_vm0, %v32687_v0  ;;  %30591 = vmatprep.subr.mxu0 %v32687_v0  ;;  %v2539_v31 = vsub.f32 %v32917_v22, %v2538_v27 }
  0x5b   :  { %30588 = vmatprep.mubr.msk.f32.mxu1 %vm32688_vm0, %v32687_v0  ;;  %30596 = vmatprep.subr.mxu1 %v32687_v0  ;;  %v2990_v42 = vand.u32 4294901760, %v32959_v37 }
  0x5c   :  { %30584 = vmatmul.mubr.f32.vlgmr.msra.gmra.mxu0 %v32792_v40  ;;  %30589 = vmatmul.mubr.f32.vlgmr.msra.gmra.mxu1 %v1182_v45  ;;  %v2540_v36 = vand.u32 4294901760, %v2539_v31  ;;  %v3031_v40 = vand.u32 4294901760, %v32951_v34  ;;  %v32979_v45 = vand.u32 4294901760, %v3372_v41 }
  0x5d   :  { %30592 = vmatpush3.xpose.msra.mxu0 %v1223_v43  ;;  %30597 = vmatpush3.xpose.msra.mxu1 %v32773_v33  ;;  %v2581_v33 = vand.u32 4294901760, %v2580_v29  ;;  %v2991_v46 = vsub.f32 %v32959_v37, %v2990_v42 }
  0x5e   :  { %30593 = vmatprep.mubr.msk.f32.mxu0 %vm32688_vm0, %v32687_v0  ;;  %30601 = vmatprep.subr.mxu0 %v32687_v0  ;;  %v3032_v44 = vsub.f32 %v32951_v34, %v3031_v40  ;;  %v32993_v49 = vsub.f32 %v3372_v41, %v32979_v45 }
  0x5f   :  { %30598 = vmatprep.mubr.msk.f32.mxu1 %vm32688_vm0, %v32687_v0  ;;  %30606 = vmatprep.subr.mxu1 %v32687_v0  ;;  %v2992_v51 = vand.u32 4294901760, %v2991_v46 }
  0x60   :  { %30594 = vmatmul.mubr.f32.vlgmr.msra.gmra.mxu0 %v32780_v35  ;;  %30599 = vmatmul.mubr.f32.vlgmr.msra.gmra.mxu1 %v32780_v35  ;;  %v82_v35 = vld [vmem:[#allocation2 + $0x38] sm:$0xff] }
  0x61   :  { %30602 = vmatpush3.xpose.msra.mxu0 %v32811_v48  ;;  %30607 = vmatpush3.xpose.msra.mxu1 %v1677_v3  ;;  %v114_v39 = vmul.f32 0.35355338, %v82_v35  ;;  %v150_v35 = vld [vmem:[#allocation5 + $0x58] sm:$0xff] }
  0x62   :  { %30603 = vmatprep.mubr.msk.f32.mxu0 %vm32688_vm0, %v32687_v0  ;;  %30611 = vmatprep.subr.mxu0 %v32687_v0  ;;  %v5180_v38 = vsel %vm203_vm1, %v150_v35, 0 }
  0x63   :  { %30608 = vmatprep.mubr.msk.f32.mxu1 %vm32688_vm0, %v32687_v0  ;;  %30616 = vmatprep.subr.mxu1 %v32687_v0  ;;  %v3369_v43 = vsel %vm203_vm1, %v114_v39, 0 }
  0x64   :  { %30604 = vmatmul.mubr.f32.vlgmr.msra.gmra.mxu0 %v1636_v6  ;;  %30609 = vmatmul.mubr.f32.vlgmr.msra.gmra.mxu1 %v32819_v50  ;;  %v32987_v47 = vand.u32 4294901760, %v3369_v43 }
  0x65   :  { %30612 = vmatpush3.xpose.msra.mxu0 %v32825_v52  ;;  %30617 = vmatpush3.xpose.msra.mxu1 %v32811_v48 }
  0x66   :  { %30613 = vmatprep.mubr.msk.f32.mxu0 %vm32688_vm0, %v32687_v0  ;;  %30621 = vmatprep.subr.mxu0 %v32687_v0  ;;  %v33001_v52 = vsub.f32 %v3369_v43, %v32987_v47 }
  0x67   :  { %30618 = vmatprep.mubr.msk.f32.mxu1 %vm32688_vm0, %v32687_v0  ;;  %30626 = vmatprep.subr.mxu1 %v32687_v0 }
  0x68   :  { %30614 = vmatmul.mubr.f32.vlgmr.msra.gmra.mxu0 %v32833_v55  ;;  %30619 = vmatmul.mubr.f32.vlgmr.msra.gmra.mxu1 %v1634_v60  ;;  %v3483_v55 = vand.u32 4294901760, %v32993_v49  ;;  %v3442_v57 = vand.u32 4294901760, %v33001_v52  ;;  %v33021_v60 = vand.u32 4294901760, %v3824_v56 }
  0x69   :  { %30622 = vmatpush3.xpose.msra.mxu0 %v1675_v58  ;;  %30627 = vmatpush3.xpose.msra.mxu1 %v32811_v48  ;;  %v3033_v48 = vand.u32 4294901760, %v3032_v44 }
  0x6a   :  { %30623 = vmatprep.mubr.msk.f32.mxu0 %vm32688_vm0, %v32687_v0  ;;  %30631 = vmatprep.subr.mxu0 %v32687_v0  ;;  %v3484_v59 = vsub.f32 %v32993_v49, %v3483_v55  ;;  %v3443_v61 = vsub.f32 %v33001_v52, %v3442_v57  ;;  %v33035_v1 = vsub.f32 %v3824_v56, %v33021_v60 }
  0x6b   :  { %30628 = vmatprep.mubr.msk.f32.mxu1 %vm32688_vm0, %v32687_v0  ;;  %30636 = vmatprep.subr.mxu1 %v32687_v0 }
  0x6c   :  { %30624 = vmatmul.mubr.f32.vlgmr.msra.gmra.mxu0 %v32819_v50  ;;  %30629 = vmatmul.mubr.f32.vlgmr.msra.gmra.mxu1 %v32819_v50  ;;  %v83_v50 = vld [vmem:[#allocation2 + $0x40] sm:$0xff]  ;;  %v3444_v3 = vand.u32 4294901760, %v3443_v61 }
  0x6d   :  { %30632 = vmatpush3.xpose.msra.mxu0 %v32853_v63  ;;  %30637 = vmatpush3.xpose.msra.mxu1 %v2129_v18  ;;  %v115_v54 = vmul.f32 0.35355338, %v83_v50  ;;  %v151_v50 = vld [vmem:[#allocation5 + $0x60] sm:$0xff] }
  0x6e   :  { %30633 = vmatprep.mubr.msk.f32.mxu0 %vm32688_vm0, %v32687_v0  ;;  %30641 = vmatprep.subr.mxu0 %v32687_v0  ;;  %v5632_v53 = vsel %vm203_vm1, %v151_v50, 0 }
  0x6f   :  { %30638 = vmatprep.mubr.msk.f32.mxu1 %vm32688_vm0, %v32687_v0  ;;  %30646 = vmatprep.subr.mxu1 %v32687_v0  ;;  %v3821_v58 = vsel %vm203_vm1, %v115_v54, 0 }
  0x70   :  { %30634 = vmatmul.mubr.f32.vlgmr.msra.gmra.mxu0 %v2088_v21  ;;  %30639 = vmatmul.mubr.f32.vlgmr.msra.gmra.mxu1 %v32861_v2  ;;  %v33029_v62 = vand.u32 4294901760, %v3821_v58 }
  0x71   :  { %30642 = vmatpush3.xpose.msra.mxu0 %v32867_v4  ;;  %30647 = vmatpush3.xpose.msra.mxu1 %v32853_v63 }
  0x72   :  { %30643 = vmatprep.mubr.msk.f32.mxu0 %vm32688_vm0, %v32687_v0  ;;  %30651 = vmatprep.subr.mxu0 %v32687_v0  ;;  %v33043_v4 = vsub.f32 %v3821_v58, %v33029_v62 }
  0x73   :  { %30648 = vmatprep.mubr.msk.f32.mxu1 %vm32688_vm0, %v32687_v0  ;;  %30656 = vmatprep.subr.mxu1 %v32687_v0 }
  0x74   :  { %30644 = vmatmul.mubr.f32.vlgmr.msra.gmra.mxu0 %v32875_v7  ;;  %30649 = vmatmul.mubr.f32.vlgmr.msra.gmra.mxu1 %v2086_v12  ;;  %v3935_v7 = vand.u32 4294901760, %v33035_v1  ;;  %v3894_v9 = vand.u32 4294901760, %v33043_v4  ;;  %v33063_v12 = vand.u32 4294901760, %v4276_v8 }
  0x75   :  { %30652 = vmatpush3.xpose.msra.mxu0 %v2127_v10  ;;  %30657 = vmatpush3.xpose.msra.mxu1 %v32853_v63  ;;  %v3485_v63 = vand.u32 4294901760, %v3484_v59 }
  0x76   :  { %30653 = vmatprep.mubr.msk.f32.mxu0 %vm32688_vm0, %v32687_v0  ;;  %30661 = vmatprep.subr.mxu0 %v32687_v0  ;;  %v3936_v11 = vsub.f32 %v33035_v1, %v3935_v7  ;;  %v3895_v13 = vsub.f32 %v33043_v4, %v3894_v9  ;;  %v33077_v16 = vsub.f32 %v4276_v8, %v33063_v12 }
  0x77   :  { %30658 = vmatprep.mubr.msk.f32.mxu1 %vm32688_vm0, %v32687_v0  ;;  %30666 = vmatprep.subr.mxu1 %v32687_v0 }
  0x78   :  { %30654 = vmatmul.mubr.f32.vlgmr.msra.gmra.mxu0 %v32861_v2  ;;  %30659 = vmatmul.mubr.f32.vlgmr.msra.gmra.mxu1 %v32861_v2  ;;  %v84_v2 = vld [vmem:[#allocation2 + $0x48] sm:$0xff]  ;;  %v3896_v18 = vand.u32 4294901760, %v3895_v13 }
  0x79   :  { %30662 = vmatpush3.xpose.msra.mxu0 %v32895_v15  ;;  %30667 = vmatpush3.xpose.msra.mxu1 %v2581_v33  ;;  %v116_v6 = vmul.f32 0.35355338, %v84_v2  ;;  %v152_v2 = vld [vmem:[#allocation5 + $0x68] sm:$0xff] }
  0x7a   :  { %30663 = vmatprep.mubr.msk.f32.mxu0 %vm32688_vm0, %v32687_v0  ;;  %30671 = vmatprep.subr.mxu0 %v32687_v0  ;;  %v6084_v5 = vsel %vm203_vm1, %v152_v2, 0 }
  0x7b   :  { %30668 = vmatprep.mubr.msk.f32.mxu1 %vm32688_vm0, %v32687_v0  ;;  %30676 = vmatprep.subr.mxu1 %v32687_v0  ;;  %v4273_v10 = vsel %vm203_vm1, %v116_v6, 0 }
  0x7c   :  { %30664 = vmatmul.mubr.f32.vlgmr.msra.gmra.mxu0 %v2540_v36  ;;  %30669 = vmatmul.mubr.f32.vlgmr.msra.gmra.mxu1 %v32903_v17  ;;  %v33071_v14 = vand.u32 4294901760, %v4273_v10 }
  0x7d   :  { %30672 = vmatpush3.xpose.msra.mxu0 %v32909_v19  ;;  %30677 = vmatpush3.xpose.msra.mxu1 %v32895_v15 }
  0x7e   :  { %30673 = vmatprep.mubr.msk.f32.mxu0 %vm32688_vm0, %v32687_v0  ;;  %30681 = vmatprep.subr.mxu0 %v32687_v0  ;;  %v33085_v19 = vsub.f32 %v4273_v10, %v33071_v14 }
  0x7f   :  { %30678 = vmatprep.mubr.msk.f32.mxu1 %vm32688_vm0, %v32687_v0  ;;  %30686 = vmatprep.subr.mxu1 %v32687_v0 }
  0x80   :  { %30674 = vmatmul.mubr.f32.vlgmr.msra.gmra.mxu0 %v32917_v22  ;;  %30679 = vmatmul.mubr.f32.vlgmr.msra.gmra.mxu1 %v2538_v27  ;;  %v4387_v22 = vand.u32 4294901760, %v33077_v16  ;;  %v4346_v24 = vand.u32 4294901760, %v33085_v19  ;;  %v33105_v27 = vand.u32 4294901760, %v4728_v23 }
  0x81   :  { %30682 = vmatpush3.xpose.msra.mxu0 %v2579_v25  ;;  %30687 = vmatpush3.xpose.msra.mxu1 %v32895_v15  ;;  %v3937_v15 = vand.u32 4294901760, %v3936_v11 }
  0x82   :  { %30683 = vmatprep.mubr.msk.f32.mxu0 %vm32688_vm0, %v32687_v0  ;;  %30691 = vmatprep.subr.mxu0 %v32687_v0  ;;  %v4388_v26 = vsub.f32 %v33077_v16, %v4387_v22  ;;  %v4347_v28 = vsub.f32 %v33085_v19, %v4346_v24  ;;  %v33119_v31 = vsub.f32 %v4728_v23, %v33105_v27 }
  0x83   :  { %30688 = vmatprep.mubr.msk.f32.mxu1 %vm32688_vm0, %v32687_v0  ;;  %30696 = vmatprep.subr.mxu1 %v32687_v0 }
  0x84   :  { %30684 = vmatmul.mubr.f32.vlgmr.msra.gmra.mxu0 %v32903_v17  ;;  %30689 = vmatmul.mubr.f32.vlgmr.msra.gmra.mxu1 %v32903_v17  ;;  %v85_v17 = vld [vmem:[#allocation2 + $0x50] sm:$0xff]  ;;  %v4348_v33 = vand.u32 4294901760, %v4347_v28 }
  0x85   :  { %30692 = vmatpush3.xpose.msra.mxu0 %v32937_v30  ;;  %30697 = vmatpush3.xpose.msra.mxu1 %v3033_v48  ;;  %v117_v21 = vmul.f32 0.35355338, %v85_v17  ;;  %v153_v17 = vld [vmem:[#allocation5 + $0x70] sm:$0xff] }
  0x86   :  { %30693 = vmatprep.mubr.msk.f32.mxu0 %vm32688_vm0, %v32687_v0  ;;  %30701 = vmatprep.subr.mxu0 %v32687_v0  ;;  %v6536_v20 = vsel %vm203_vm1, %v153_v17, 0 }
  0x87   :  { %30698 = vmatprep.mubr.msk.f32.mxu1 %vm32688_vm0, %v32687_v0  ;;  %30706 = vmatprep.subr.mxu1 %v32687_v0  ;;  %v4725_v25 = vsel %vm203_vm1, %v117_v21, 0 }
  0x88   :  { %30694 = vmatmul.mubr.f32.vlgmr.msra.gmra.mxu0 %v2992_v51  ;;  %30699 = vmatmul.mubr.f32.vlgmr.msra.gmra.mxu1 %v32945_v32  ;;  %v33113_v29 = vand.u32 4294901760, %v4725_v25 }
  0x89   :  { %30702 = vmatpush3.xpose.msra.mxu0 %v32951_v34  ;;  %30707 = vmatpush3.xpose.msra.mxu1 %v32937_v30 }
  0x8a   :  { %30703 = vmatprep.mubr.msk.f32.mxu0 %vm32688_vm0, %v32687_v0  ;;  %30711 = vmatprep.subr.mxu0 %v32687_v0  ;;  %v33127_v34 = vsub.f32 %v4725_v25, %v33113_v29 }
  0x8b   :  { %30708 = vmatprep.mubr.msk.f32.mxu1 %vm32688_vm0, %v32687_v0  ;;  %30716 = vmatprep.subr.mxu1 %v32687_v0 }
  0x8c   :  { %30704 = vmatmul.mubr.f32.vlgmr.msra.gmra.mxu0 %v32959_v37  ;;  %30709 = vmatmul.mubr.f32.vlgmr.msra.gmra.mxu1 %v2990_v42  ;;  %v4839_v37 = vand.u32 4294901760, %v33119_v31  ;;  %v4798_v39 = vand.u32 4294901760, %v33127_v34  ;;  %v33147_v42 = vand.u32 4294901760, %v5180_v38 }
  0x8d   :  { %30712 = vmatpush3.xpose.msra.mxu0 %v3031_v40  ;;  %30717 = vmatpush3.xpose.msra.mxu1 %v32937_v30  ;;  %v4389_v30 = vand.u32 4294901760, %v4388_v26 }
  0x8e   :  { %30713 = vmatprep.mubr.msk.f32.mxu0 %vm32688_vm0, %v32687_v0  ;;  %30721 = vmatprep.subr.mxu0 %v32687_v0  ;;  %v4840_v41 = vsub.f32 %v33119_v31, %v4839_v37  ;;  %v4799_v43 = vsub.f32 %v33127_v34, %v4798_v39  ;;  %v33161_v46 = vsub.f32 %v5180_v38, %v33147_v42 }
  0x8f   :  { %30718 = vmatprep.mubr.msk.f32.mxu1 %vm32688_vm0, %v32687_v0  ;;  %30726 = vmatprep.subr.mxu1 %v32687_v0 }
  0x90   :  { %30714 = vmatmul.mubr.f32.vlgmr.msra.gmra.mxu0 %v32945_v32  ;;  %30719 = vmatmul.mubr.f32.vlgmr.msra.gmra.mxu1 %v32945_v32  ;;  %v86_v32 = vld [vmem:[#allocation2 + $0x58] sm:$0xff]  ;;  %v4800_v48 = vand.u32 4294901760, %v4799_v43 }
  0x91   :  { %30722 = vmatpush3.xpose.msra.mxu0 %v32979_v45  ;;  %30727 = vmatpush3.xpose.msra.mxu1 %v3485_v63  ;;  %v118_v36 = vmul.f32 0.35355338, %v86_v32  ;;  %v154_v32 = vld [vmem:[#allocation5 + $0x78] sm:$0xff] }
  0x92   :  { %30723 = vmatprep.mubr.msk.f32.mxu0 %vm32688_vm0, %v32687_v0  ;;  %30731 = vmatprep.subr.mxu0 %v32687_v0  ;;  %v6988_v35 = vsel %vm203_vm1, %v154_v32, 0 }
  0x93   :  { %30728 = vmatprep.mubr.msk.f32.mxu1 %vm32688_vm0, %v32687_v0  ;;  %30736 = vmatprep.subr.mxu1 %v32687_v0  ;;  %v5177_v40 = vsel %vm203_vm1, %v118_v36, 0 }
  0x94   :  { %30724 = vmatmul.mubr.f32.vlgmr.msra.gmra.mxu0 %v3444_v3  ;;  %30729 = vmatmul.mubr.f32.vlgmr.msra.gmra.mxu1 %v32987_v47  ;;  %v33155_v44 = vand.u32 4294901760, %v5177_v40 }
  0x95   :  { %30732 = vmatpush3.xpose.msra.mxu0 %v32993_v49  ;;  %30737 = vmatpush3.xpose.msra.mxu1 %v32979_v45 }
  0x96   :  { %30733 = vmatprep.mubr.msk.f32.mxu0 %vm32688_vm0, %v32687_v0  ;;  %30741 = vmatprep.subr.mxu0 %v32687_v0  ;;  %v33169_v49 = vsub.f32 %v5177_v40, %v33155_v44 }
  0x97   :  { %30738 = vmatprep.mubr.msk.f32.mxu1 %vm32688_vm0, %v32687_v0  ;;  %30746 = vmatprep.subr.mxu1 %v32687_v0 }
  0x98   :  { %30734 = vmatmul.mubr.f32.vlgmr.msra.gmra.mxu0 %v33001_v52  ;;  %30739 = vmatmul.mubr.f32.vlgmr.msra.gmra.mxu1 %v3442_v57  ;;  %v5291_v52 = vand.u32 4294901760, %v33161_v46  ;;  %v5250_v54 = vand.u32 4294901760, %v33169_v49  ;;  %v33189_v57 = vand.u32 4294901760, %v5632_v53 }
  0x99   :  { %30742 = vmatpush3.xpose.msra.mxu0 %v3483_v55  ;;  %30747 = vmatpush3.xpose.msra.mxu1 %v32979_v45  ;;  %v4841_v45 = vand.u32 4294901760, %v4840_v41 }
  0x9a   :  { %30743 = vmatprep.mubr.msk.f32.mxu0 %vm32688_vm0, %v32687_v0  ;;  %30751 = vmatprep.subr.mxu0 %v32687_v0  ;;  %v5292_v56 = vsub.f32 %v33161_v46, %v5291_v52  ;;  %v5251_v58 = vsub.f32 %v33169_v49, %v5250_v54  ;;  %v33203_v61 = vsub.f32 %v5632_v53, %v33189_v57 }
  0x9b   :  { %30748 = vmatprep.mubr.msk.f32.mxu1 %vm32688_vm0, %v32687_v0  ;;  %30756 = vmatprep.subr.mxu1 %v32687_v0 }
  0x9c   :  { %30744 = vmatmul.mubr.f32.vlgmr.msra.gmra.mxu0 %v32987_v47  ;;  %30749 = vmatmul.mubr.f32.vlgmr.msra.gmra.mxu1 %v32987_v47  ;;  %v87_v47 = vld [vmem:[#allocation2 + $0x60] sm:$0xff]  ;;  %v5252_v63 = vand.u32 4294901760, %v5251_v58 }
  0x9d   :  { %30752 = vmatpush3.xpose.msra.mxu0 %v33021_v60  ;;  %30757 = vmatpush3.xpose.msra.mxu1 %v3937_v15  ;;  %v119_v51 = vmul.f32 0.35355338, %v87_v47  ;;  %v155_v47 = vld [vmem:[#allocation5 + $0x80] sm:$0xff] }
  0x9e   :  { %30753 = vmatprep.mubr.msk.f32.mxu0 %vm32688_vm0, %v32687_v0  ;;  %30761 = vmatprep.subr.mxu0 %v32687_v0  ;;  %v7440_v50 = vsel %vm203_vm1, %v155_v47, 0 }
  0x9f   :  { %30758 = vmatprep.mubr.msk.f32.mxu1 %vm32688_vm0, %v32687_v0  ;;  %30766 = vmatprep.subr.mxu1 %v32687_v0  ;;  %v5629_v55 = vsel %vm203_vm1, %v119_v51, 0 }
  0xa0   :  { %30754 = vmatmul.mubr.f32.vlgmr.msra.gmra.mxu0 %v3896_v18  ;;  %30759 = vmatmul.mubr.f32.vlgmr.msra.gmra.mxu1 %v33029_v62  ;;  %v33197_v59 = vand.u32 4294901760, %v5629_v55 }
  0xa1   :  { %30762 = vmatpush3.xpose.msra.mxu0 %v33035_v1  ;;  %30767 = vmatpush3.xpose.msra.mxu1 %v33021_v60 }
  0xa2   :  { %30763 = vmatprep.mubr.msk.f32.mxu0 %vm32688_vm0, %v32687_v0  ;;  %30771 = vmatprep.subr.mxu0 %v32687_v0  ;;  %v33211_v1 = vsub.f32 %v5629_v55, %v33197_v59 }
  0xa3   :  { %30768 = vmatprep.mubr.msk.f32.mxu1 %vm32688_vm0, %v32687_v0  ;;  %30776 = vmatprep.subr.mxu1 %v32687_v0 }
  0xa4   :  { %30764 = vmatmul.mubr.f32.vlgmr.msra.gmra.mxu0 %v33043_v4  ;;  %30769 = vmatmul.mubr.f32.vlgmr.msra.gmra.mxu1 %v3894_v9  ;;  %v5743_v4 = vand.u32 4294901760, %v33203_v61  ;;  %v5702_v6 = vand.u32 4294901760, %v33211_v1  ;;  %v33231_v9 = vand.u32 4294901760, %v6084_v5 }
  0xa5   :  { %30772 = vmatpush3.xpose.msra.mxu0 %v3935_v7  ;;  %30777 = vmatpush3.xpose.msra.mxu1 %v33021_v60  ;;  %v5293_v60 = vand.u32 4294901760, %v5292_v56 }
  0xa6   :  { %30773 = vmatprep.mubr.msk.f32.mxu0 %vm32688_vm0, %v32687_v0  ;;  %30781 = vmatprep.subr.mxu0 %v32687_v0  ;;  %v5744_v8 = vsub.f32 %v33203_v61, %v5743_v4  ;;  %v5703_v10 = vsub.f32 %v33211_v1, %v5702_v6  ;;  %v33245_v13 = vsub.f32 %v6084_v5, %v33231_v9 }
  0xa7   :  { %30778 = vmatprep.mubr.msk.f32.mxu1 %vm32688_vm0, %v32687_v0  ;;  %30786 = vmatprep.subr.mxu1 %v32687_v0 }
  0xa8   :  { %30774 = vmatmul.mubr.f32.vlgmr.msra.gmra.mxu0 %v33029_v62  ;;  %30779 = vmatmul.mubr.f32.vlgmr.msra.gmra.mxu1 %v33029_v62  ;;  %v88_v62 = vld [vmem:[#allocation2 + $0x68] sm:$0xff]  ;;  %v5704_v15 = vand.u32 4294901760, %v5703_v10 }
  0xa9   :  { %30782 = vmatpush3.xpose.msra.mxu0 %v33063_v12  ;;  %30787 = vmatpush3.xpose.msra.mxu1 %v4389_v30  ;;  %v120_v3 = vmul.f32 0.35355338, %v88_v62  ;;  %v156_v62 = vld [vmem:[#allocation5 + $0x88] sm:$0xff] }
  0xaa   :  { %30783 = vmatprep.mubr.msk.f32.mxu0 %vm32688_vm0, %v32687_v0  ;;  %30791 = vmatprep.subr.mxu0 %v32687_v0  ;;  %v7892_v2 = vsel %vm203_vm1, %v156_v62, 0 }
  0xab   :  { %30788 = vmatprep.mubr.msk.f32.mxu1 %vm32688_vm0, %v32687_v0  ;;  %30796 = vmatprep.subr.mxu1 %v32687_v0  ;;  %v6081_v7 = vsel %vm203_vm1, %v120_v3, 0 }
  0xac   :  { %30784 = vmatmul.mubr.f32.vlgmr.msra.gmra.mxu0 %v4348_v33  ;;  %30789 = vmatmul.mubr.f32.vlgmr.msra.gmra.mxu1 %v33071_v14  ;;  %v33239_v11 = vand.u32 4294901760, %v6081_v7 }
  0xad   :  { %30792 = vmatpush3.xpose.msra.mxu0 %v33077_v16  ;;  %30797 = vmatpush3.xpose.msra.mxu1 %v33063_v12 }
  0xae   :  { %30793 = vmatprep.mubr.msk.f32.mxu0 %vm32688_vm0, %v32687_v0  ;;  %30801 = vmatprep.subr.mxu0 %v32687_v0  ;;  %v33253_v16 = vsub.f32 %v6081_v7, %v33239_v11 }
  0xaf   :  { %30798 = vmatprep.mubr.msk.f32.mxu1 %vm32688_vm0, %v32687_v0  ;;  %30806 = vmatprep.subr.mxu1 %v32687_v0 }
  0xb0   :  { %30794 = vmatmul.mubr.f32.vlgmr.msra.gmra.mxu0 %v33085_v19  ;;  %30799 = vmatmul.mubr.f32.vlgmr.msra.gmra.mxu1 %v4346_v24  ;;  %v6195_v19 = vand.u32 4294901760, %v33245_v13  ;;  %v6154_v21 = vand.u32 4294901760, %v33253_v16  ;;  %v33273_v24 = vand.u32 4294901760, %v6536_v20 }
  0xb1   :  { %30802 = vmatpush3.xpose.msra.mxu0 %v4387_v22  ;;  %30807 = vmatpush3.xpose.msra.mxu1 %v33063_v12  ;;  %v5745_v12 = vand.u32 4294901760, %v5744_v8 }
  0xb2   :  { %30803 = vmatprep.mubr.msk.f32.mxu0 %vm32688_vm0, %v32687_v0  ;;  %30811 = vmatprep.subr.mxu0 %v32687_v0  ;;  %v6196_v23 = vsub.f32 %v33245_v13, %v6195_v19  ;;  %v6155_v25 = vsub.f32 %v33253_v16, %v6154_v21  ;;  %v33287_v28 = vsub.f32 %v6536_v20, %v33273_v24 }
  0xb3   :  { %30808 = vmatprep.mubr.msk.f32.mxu1 %vm32688_vm0, %v32687_v0  ;;  %30816 = vmatprep.subr.mxu1 %v32687_v0 }
  0xb4   :  { %30804 = vmatmul.mubr.f32.vlgmr.msra.gmra.mxu0 %v33071_v14  ;;  %30809 = vmatmul.mubr.f32.vlgmr.msra.gmra.mxu1 %v33071_v14  ;;  %v89_v14 = vld [vmem:[#allocation2 + $0x70] sm:$0xff]  ;;  %v6156_v30 = vand.u32 4294901760, %v6155_v25 }
  0xb5   :  { %30812 = vmatpush3.xpose.msra.mxu0 %v33105_v27  ;;  %30817 = vmatpush3.xpose.msra.mxu1 %v4841_v45  ;;  %v121_v18 = vmul.f32 0.35355338, %v89_v14  ;;  %v157_v14 = vld [vmem:[#allocation5 + $0x90] sm:$0xff] }
  0xb6   :  { %30813 = vmatprep.mubr.msk.f32.mxu0 %vm32688_vm0, %v32687_v0  ;;  %30821 = vmatprep.subr.mxu0 %v32687_v0 }
  0xb7   :  { %30818 = vmatprep.mubr.msk.f32.mxu1 %vm32688_vm0, %v32687_v0  ;;  %30826 = vmatprep.subr.mxu1 %v32687_v0  ;;  %v6533_v22 = vsel %vm203_vm1, %v121_v18, 0 }
  0xb8   :  { %30814 = vmatmul.mubr.f32.vlgmr.msra.gmra.mxu0 %v4800_v48  ;;  %30819 = vmatmul.mubr.f32.vlgmr.msra.gmra.mxu1 %v33113_v29  ;;  %v33281_v26 = vand.u32 4294901760, %v6533_v22 }
  0xb9   :  { %30822 = vmatpush3.xpose.msra.mxu0 %v33119_v31  ;;  %30827 = vmatpush3.xpose.msra.mxu1 %v33105_v27 }
  0xba   :  { %30823 = vmatprep.mubr.msk.f32.mxu0 %vm32688_vm0, %v32687_v0  ;;  %30831 = vmatprep.subr.mxu0 %v32687_v0  ;;  %v33295_v31 = vsub.f32 %v6533_v22, %v33281_v26 }
  0xbb   :  { %30828 = vmatprep.mubr.msk.f32.mxu1 %vm32688_vm0, %v32687_v0  ;;  %30836 = vmatprep.subr.mxu1 %v32687_v0 }
  0xbc   :  { %30824 = vmatmul.mubr.f32.vlgmr.msra.gmra.mxu0 %v33127_v34  ;;  %30829 = vmatmul.mubr.f32.vlgmr.msra.gmra.mxu1 %v4798_v39  ;;  %v6647_v34 = vand.u32 4294901760, %v33287_v28  ;;  %v6606_v36 = vand.u32 4294901760, %v33295_v31  ;;  %v33315_v39 = vand.u32 4294901760, %v6988_v35 }
  0xbd   :  { %30832 = vmatpush3.xpose.msra.mxu0 %v4839_v37  ;;  %30837 = vmatpush3.xpose.msra.mxu1 %v33105_v27  ;;  %v6197_v27 = vand.u32 4294901760, %v6196_v23 }
  0xbe   :  { %30833 = vmatprep.mubr.msk.f32.mxu0 %vm32688_vm0, %v32687_v0  ;;  %30841 = vmatprep.subr.mxu0 %v32687_v0  ;;  %v6648_v38 = vsub.f32 %v33287_v28, %v6647_v34  ;;  %v6607_v40 = vsub.f32 %v33295_v31, %v6606_v36  ;;  %v33329_v43 = vsub.f32 %v6988_v35, %v33315_v39 }
  0xbf   :  { %30838 = vmatprep.mubr.msk.f32.mxu1 %vm32688_vm0, %v32687_v0  ;;  %30846 = vmatprep.subr.mxu1 %v32687_v0 }
  0xc0   :  { %30834 = vmatmul.mubr.f32.vlgmr.msra.gmra.mxu0 %v33113_v29  ;;  %30839 = vmatmul.mubr.f32.vlgmr.msra.gmra.mxu1 %v33113_v29  ;;  %v90_v29 = vld [vmem:[#allocation2 + $0x78] sm:$0xff]  ;;  %v6608_v45 = vand.u32 4294901760, %v6607_v40 }
  0xc1   :  { %30842 = vmatpush3.xpose.msra.mxu0 %v33147_v42  ;;  %30847 = vmatpush3.xpose.msra.mxu1 %v5293_v60  ;;  %v122_v33 = vmul.f32 0.35355338, %v90_v29 }
  0xc2   :  { %30843 = vmatprep.mubr.msk.f32.mxu0 %vm32688_vm0, %v32687_v0  ;;  %30851 = vmatprep.subr.mxu0 %v32687_v0 }
  0xc3   :  { %30848 = vmatprep.mubr.msk.f32.mxu1 %vm32688_vm0, %v32687_v0  ;;  %30856 = vmatprep.subr.mxu1 %v32687_v0  ;;  %v6985_v37 = vsel %vm203_vm1, %v122_v33, 0 }
  0xc4   :  { %30844 = vmatmul.mubr.f32.vlgmr.msra.gmra.mxu0 %v5252_v63  ;;  %30849 = vmatmul.mubr.f32.vlgmr.msra.gmra.mxu1 %v33155_v44  ;;  %v33323_v41 = vand.u32 4294901760, %v6985_v37 }
  0xc5   :  { %30852 = vmatpush3.xpose.msra.mxu0 %v33161_v46  ;;  %30857 = vmatpush3.xpose.msra.mxu1 %v33147_v42 }
  0xc6   :  { %30853 = vmatprep.mubr.msk.f32.mxu0 %vm32688_vm0, %v32687_v0  ;;  %30861 = vmatprep.subr.mxu0 %v32687_v0  ;;  %v33337_v46 = vsub.f32 %v6985_v37, %v33323_v41  ;;  %v33465_v37 = vld [vmem:[#allocation8] sm:$0xff] }
  0xc7   :  { %30858 = vmatprep.mubr.msk.f32.mxu1 %vm32688_vm0, %v32687_v0  ;;  %30866 = vmatprep.subr.mxu1 %v32687_v0  ;;  %vm14668_vm2 = vcmp.eq.f32.partialorder %v33465_v37, 0.0 }
  0xc8   :  { %30854 = vmatmul.mubr.f32.vlgmr.msra.gmra.mxu0 %v33169_v49  ;;  %30859 = vmatmul.mubr.f32.vlgmr.msra.gmra.mxu1 %v5250_v54  ;;  %v7099_v49 = vand.u32 4294901760, %v33329_v43  ;;  %v7058_v51 = vand.u32 4294901760, %v33337_v46  ;;  %v33357_v54 = vand.u32 4294901760, %v7440_v50 }
  0xc9   :  { %30862 = vmatpush3.xpose.msra.mxu0 %v5291_v52  ;;  %30867 = vmatpush3.xpose.msra.mxu1 %v33147_v42  ;;  %v6649_v42 = vand.u32 4294901760, %v6648_v38 }
  0xca   :  { %30863 = vmatprep.mubr.msk.f32.mxu0 %vm32688_vm0, %v32687_v0  ;;  %30871 = vmatprep.subr.mxu0 %v32687_v0  ;;  %v7100_v53 = vsub.f32 %v33329_v43, %v7099_v49  ;;  %v7059_v55 = vsub.f32 %v33337_v46, %v7058_v51  ;;  %v33371_v58 = vsub.f32 %v7440_v50, %v33357_v54 }
  0xcb   :  { %30868 = vmatprep.mubr.msk.f32.mxu1 %vm32688_vm0, %v32687_v0  ;;  %30876 = vmatprep.subr.mxu1 %v32687_v0 }
  0xcc   :  { %30864 = vmatmul.mubr.f32.vlgmr.msra.gmra.mxu0 %v33155_v44  ;;  %30869 = vmatmul.mubr.f32.vlgmr.msra.gmra.mxu1 %v33155_v44  ;;  %v91_v44 = vld [vmem:[#allocation2 + $0x80] sm:$0xff]  ;;  %v7060_v60 = vand.u32 4294901760, %v7059_v55 }
  0xcd   :  { %30872 = vmatpush3.xpose.msra.mxu0 %v33189_v57  ;;  %30877 = vmatpush3.xpose.msra.mxu1 %v5745_v12  ;;  %v123_v48 = vmul.f32 0.35355338, %v91_v44  ;;  %v158_v44 = vld [vmem:[#allocation5 + $0x98] sm:$0xff] }
  0xce   :  { %30873 = vmatprep.mubr.msk.f32.mxu0 %vm32688_vm0, %v32687_v0  ;;  %30881 = vmatprep.subr.mxu0 %v32687_v0 }
  0xcf   :  { %30878 = vmatprep.mubr.msk.f32.mxu1 %vm32688_vm0, %v32687_v0  ;;  %30886 = vmatprep.subr.mxu1 %v32687_v0  ;;  %v7437_v52 = vsel %vm203_vm1, %v123_v48, 0 }
  0xd0   :  { %30874 = vmatmul.mubr.f32.vlgmr.msra.gmra.mxu0 %v5704_v15  ;;  %30879 = vmatmul.mubr.f32.vlgmr.msra.gmra.mxu1 %v33197_v59  ;;  %v33365_v56 = vand.u32 4294901760, %v7437_v52 }
  0xd1   :  { %30882 = vmatpush3.xpose.msra.mxu0 %v33203_v61  ;;  %30887 = vmatpush3.xpose.msra.mxu1 %v33189_v57 }
  0xd2   :  { %30883 = vmatprep.mubr.msk.f32.mxu0 %vm32688_vm0, %v32687_v0  ;;  %30891 = vmatprep.subr.mxu0 %v32687_v0  ;;  %v33379_v61 = vsub.f32 %v7437_v52, %v33365_v56  ;;  %v8796_v52 = vsel %vm203_vm1, %v158_v44, 0 }
  0xd3   :  { %30888 = vmatprep.mubr.msk.f32.mxu1 %vm32688_vm0, %v32687_v0  ;;  %30896 = vmatprep.subr.mxu1 %v32687_v0 }
  0xd4   :  { %30884 = vmatmul.mubr.f32.vlgmr.msra.gmra.mxu0 %v33211_v1  ;;  %30889 = vmatmul.mubr.f32.vlgmr.msra.gmra.mxu1 %v5702_v6  ;;  %v7551_v1 = vand.u32 4294901760, %v33371_v58  ;;  %v7510_v3 = vand.u32 4294901760, %v33379_v61  ;;  %v33401_v6 = vand.u32 4294901760, %v7892_v2 }
  0xd5   :  { %30892 = vmatpush3.xpose.msra.mxu0 %v5743_v4  ;;  %30897 = vmatpush3.xpose.msra.mxu1 %v33189_v57  ;;  %v7101_v57 = vand.u32 4294901760, %v7100_v53 }
  0xd6   :  { %30893 = vmatprep.mubr.msk.f32.mxu0 %vm32688_vm0, %v32687_v0  ;;  %30901 = vmatprep.subr.mxu0 %v32687_v0  ;;  %v7552_v5 = vsub.f32 %v33371_v58, %v7551_v1  ;;  %v7511_v7 = vsub.f32 %v33379_v61, %v7510_v3  ;;  %v33415_v10 = vsub.f32 %v7892_v2, %v33401_v6 }
  0xd7   :  { %30898 = vmatprep.mubr.msk.f32.mxu1 %vm32688_vm0, %v32687_v0  ;;  %30906 = vmatprep.subr.mxu1 %v32687_v0 }
  0xd8   :  { %30894 = vmatmul.mubr.f32.vlgmr.msra.gmra.mxu0 %v33197_v59  ;;  %30899 = vmatmul.mubr.f32.vlgmr.msra.gmra.mxu1 %v33197_v59  ;;  %v92_v59 = vld [vmem:[#allocation2 + $0x88] sm:$0xff]  ;;  %v7512_v12 = vand.u32 4294901760, %v7511_v7 }
  0xd9   :  { %30902 = vmatpush3.xpose.msra.mxu0 %v33231_v9  ;;  %30907 = vmatpush3.xpose.msra.mxu1 %v6197_v27  ;;  %v124_v63 = vmul.f32 0.35355338, %v92_v59 }
  0xda   :  { %30903 = vmatprep.mubr.msk.f32.mxu0 %vm32688_vm0, %v32687_v0  ;;  %30911 = vmatprep.subr.mxu0 %v32687_v0 }
  0xdb   :  { %30908 = vmatprep.mubr.msk.f32.mxu1 %vm32688_vm0, %v32687_v0  ;;  %30916 = vmatprep.subr.mxu1 %v32687_v0  ;;  %v7889_v4 = vsel %vm203_vm1, %v124_v63, 0 }
  0xdc   :  { %30904 = vmatmul.mubr.f32.vlgmr.msra.gmra.mxu0 %v6156_v30  ;;  %30909 = vmatmul.mubr.f32.vlgmr.msra.gmra.mxu1 %v33239_v11  ;;  %v33409_v8 = vand.u32 4294901760, %v7889_v4 }
  0xdd   :  { %30912 = vmatpush3.xpose.msra.mxu0 %v33245_v13  ;;  %30917 = vmatpush3.xpose.msra.mxu1 %v33231_v9 }
  0xde   :  { %30913 = vmatprep.mubr.msk.f32.mxu0 %vm32688_vm0, %v32687_v0  ;;  %30921 = vmatprep.subr.mxu0 %v32687_v0  ;;  %v33423_v13 = vsub.f32 %v7889_v4, %v33409_v8 }
  0xdf   :  { %30918 = vmatprep.mubr.msk.f32.mxu1 %vm32688_vm0, %v32687_v0  ;;  %30926 = vmatprep.subr.mxu1 %v32687_v0 }
  0xe0   :  { %30914 = vmatmul.mubr.f32.vlgmr.msra.gmra.mxu0 %v33253_v16  ;;  %30919 = vmatmul.mubr.f32.vlgmr.msra.gmra.mxu1 %v6154_v21  ;;  %v8003_v16 = vand.u32 4294901760, %v33415_v10  ;;  %v7962_v18 = vand.u32 4294901760, %v33423_v13 }
  0xe1   :  { %30922 = vmatpush3.xpose.msra.mxu0 %v6195_v19  ;;  %30927 = vmatpush3.xpose.msra.mxu1 %v33231_v9  ;;  %v7553_v9 = vand.u32 4294901760, %v7552_v5  ;;  %v8344_v19 = vsel %vm203_vm1, %v157_v14, 0 }
  0xe2   :  { %30923 = vmatprep.mubr.msk.f32.mxu0 %vm32688_vm0, %v32687_v0  ;;  %30931 = vmatprep.subr.mxu0 %v32687_v0 }
  0xe3   :  { %30928 = vmatprep.mubr.msk.f32.mxu1 %vm32688_vm0, %v32687_v0  ;;  %30936 = vmatprep.subr.mxu1 %v32687_v0 }
  0xe4   :  { %30924 = vmatmul.mubr.f32.vlgmr.msra.gmra.mxu0 %v33239_v11  ;;  %30929 = vmatmul.mubr.f32.vlgmr.msra.gmra.mxu1 %v33239_v11  ;;  %v93_v11 = vld [vmem:[#allocation2 + $0x90] sm:$0xff] }
  0xe5   :  { %30932 = vmatpush3.xpose.msra.mxu0 %v33273_v24  ;;  %30937 = vmatpush3.xpose.msra.mxu1 %v6649_v42  ;;  %v125_v15 = vmul.f32 0.35355338, %v93_v11  ;;  %v95_v11 = vld [vmem:[#allocation2 + $0xa0] sm:$0xff] }
  0xe6   :  { %30933 = vmatprep.mubr.msk.f32.mxu0 %vm32688_vm0, %v32687_v0  ;;  %30941 = vmatprep.subr.mxu0 %v32687_v0 }
  0xe7   :  { %30938 = vmatprep.mubr.msk.f32.mxu1 %vm32688_vm0, %v32687_v0  ;;  %30946 = vmatprep.subr.mxu1 %v32687_v0  ;;  %v8341_v21 = vsel %vm203_vm1, %v125_v15, 0 }
  0xe8   :  { %30934 = vmatmul.mubr.f32.vlgmr.msra.gmra.mxu0 %v6608_v45  ;;  %30939 = vmatmul.mubr.f32.vlgmr.msra.gmra.mxu1 %v33281_v26  ;;  %v33455_v29 = vand.u32 4294901760, %v8341_v21 }
  0xe9   :  { %30942 = vmatpush3.xpose.msra.mxu0 %v33287_v28  ;;  %30947 = vmatpush3.xpose.msra.mxu1 %v33273_v24  ;;  %v7963_v28 = vsub.f32 %v33423_v13, %v7962_v18 }
  0xea   :  { %30943 = vmatprep.mubr.msk.f32.mxu0 %vm32688_vm0, %v32687_v0  ;;  %30951 = vmatprep.subr.mxu0 %v32687_v0 }
  0xeb   :  { %30948 = vmatprep.mubr.msk.f32.mxu1 %vm32688_vm0, %v32687_v0  ;;  %30956 = vmatprep.subr.mxu1 %v32687_v0  ;;  %v7964_v40 = vand.u32 4294901760, %v7963_v28 }
  0xec   :  { %30944 = vmatmul.mubr.f32.vlgmr.msra.gmra.mxu0 %v33295_v31  ;;  %30949 = vmatmul.mubr.f32.vlgmr.msra.gmra.mxu1 %v6606_v36 }
  0xed   :  { %30952 = vmatpush3.xpose.msra.mxu0 %v6647_v34  ;;  %30957 = vmatpush3.xpose.msra.mxu1 %v33273_v24  ;;  %v8004_v24 = vsub.f32 %v33415_v10, %v8003_v16  ;;  %v94_v34 = vld [vmem:[#allocation2 + $0x98] sm:$0xff] }
  0xee   :  { %30953 = vmatprep.mubr.msk.f32.mxu0 %vm32688_vm0, %v32687_v0  ;;  %30961 = vmatprep.subr.mxu0 %v32687_v0  ;;  %v126_v45 = vmul.f32 0.35355338, %v94_v34 }
  0xef   :  { %30958 = vmatprep.mubr.msk.f32.mxu1 %vm32688_vm0, %v32687_v0  ;;  %30966 = vmatprep.subr.mxu1 %v32687_v0  ;;  %v8005_v33 = vand.u32 4294901760, %v8004_v24 }
  0xf0   :  { %30954 = vmatmul.mubr.f32.vlgmr.msra.gmra.mxu0 %v33281_v26  ;;  %30959 = vmatmul.mubr.f32.vlgmr.msra.gmra.mxu1 %v33281_v26  ;;  %v33448_v26 = vand.u32 4294901760, %v8344_v19  ;;  %v8793_v55 = vsel %vm203_vm1, %v126_v45, 0 }
  0xf1   :  { %30962 = vmatpush3.xpose.msra.mxu0 %v33315_v39  ;;  %30967 = vmatpush3.xpose.msra.mxu1 %v7101_v57 }
  0xf2   :  { %30963 = vmatprep.mubr.msk.f32.mxu0 %vm32688_vm0, %v32687_v0  ;;  %30971 = vmatprep.subr.mxu0 %v32687_v0  ;;  %v33468_v38 = vsub.f32 %v8344_v19, %v33448_v26 }
  0xf3   :  { %30968 = vmatprep.mubr.msk.f32.mxu1 %vm32688_vm0, %v32687_v0  ;;  %30976 = vmatprep.subr.mxu1 %v32687_v0 }
  0xf4   :  { %30964 = vmatmul.mubr.f32.vlgmr.msra.gmra.mxu0 %v7060_v60  ;;  %30969 = vmatmul.mubr.f32.vlgmr.msra.gmra.mxu1 %v33323_v41 }
  0xf5   :  { %30972 = vmatpush3.xpose.msra.mxu0 %v33329_v43  ;;  %30977 = vmatpush3.xpose.msra.mxu1 %v33315_v39 }
  0xf6   :  { %30973 = vmatprep.mubr.msk.f32.mxu0 %vm32688_vm0, %v32687_v0  ;;  %30981 = vmatprep.subr.mxu0 %v32687_v0 }
  0xf7   :  { %30978 = vmatprep.mubr.msk.f32.mxu1 %vm32688_vm0, %v32687_v0  ;;  %30986 = vmatprep.subr.mxu1 %v32687_v0 }
  0xf8   :  { %30974 = vmatmul.mubr.f32.vlgmr.msra.gmra.mxu0 %v33337_v46  ;;  %30979 = vmatmul.mubr.f32.vlgmr.msra.gmra.mxu1 %v7058_v51 }
  0xf9   :  { %30982 = vmatpush3.xpose.msra.mxu0 %v7099_v49  ;;  %30987 = vmatpush3.xpose.msra.mxu1 %v33315_v39  ;;  %v8455_v49 = vand.u32 4294901760, %v33468_v38 }
  0xfa   :  { %30983 = vmatprep.mubr.msk.f32.mxu0 %vm32688_vm0, %v32687_v0  ;;  %30991 = vmatprep.subr.mxu0 %v32687_v0 }
  0xfb   :  { %30988 = vmatprep.mubr.msk.f32.mxu1 %vm32688_vm0, %v32687_v0  ;;  %30996 = vmatprep.subr.mxu1 %v32687_v0  ;;  %v8456_v60 = vsub.f32 %v33468_v38, %v8455_v49 }
  0xfc   :  { %30984 = vmatmul.mubr.f32.vlgmr.msra.gmra.mxu0 %v33323_v41  ;;  %30989 = vmatmul.mubr.f32.vlgmr.msra.gmra.mxu1 %v33323_v41  ;;  %v33473_v41 = vsub.f32 %v8341_v21, %v33455_v29 }
  0xfd   :  { %30992 = vmatpush3.xpose.msra.mxu0 %v33357_v54  ;;  %30997 = vmatpush3.xpose.msra.mxu1 %v7553_v9  ;;  %v8457_v9 = vand.u32 4294901760, %v8456_v60 }
  0xfe   :  { %30993 = vmatprep.mubr.msk.f32.mxu0 %vm32688_vm0, %v32687_v0  ;;  %31001 = vmatprep.subr.mxu0 %v32687_v0  ;;  %v8414_v51 = vand.u32 4294901760, %v33473_v41 }
  0xff   :  { %30998 = vmatprep.mubr.msk.f32.mxu1 %vm32688_vm0, %v32687_v0  ;;  %31006 = vmatprep.subr.mxu1 %v32687_v0 }
 0x100   :  { %v282_v17 = vpop.f32.mrf.mxu0  ;;  %30994 = vmatmul.mubr.f32.vlgmr.msra.gmra.mxu0 %v7512_v12  ;;  %v358_v20 = vpop.f32.mrf.mxu1  ;;  %30999 = vmatmul.mubr.f32.vlgmr.msra.gmra.mxu1 %v33365_v56  ;;  %v8415_v63 = vsub.f32 %v33473_v41, %v8414_v51 }
 0x101   :  { %31002 = vmatpush3.xpose.msra.mxu0 %v33371_v58  ;;  %v359_v22 = vadd.f32 %v358_v20, %v282_v17  ;;  %31007 = vmatpush3.xpose.msra.mxu1 %v33357_v54  ;;  %v159_v17 = vld [vmem:[#allocation5 + $0xa0] sm:$0xff] }
 0x102   :  { %v30515_v23 = vpop.f32.mrf.mxu0  ;;  %31003 = vmatprep.mubr.msk.f32.mxu0 %vm32688_vm0, %v32687_v0  ;;  %v30520_v25 = vpop.f32.mrf.mxu1  ;;  %31011 = vmatprep.subr.mxu0 %v32687_v0 }
 0x103   :  { %31008 = vmatprep.mubr.msk.f32.mxu1 %vm32688_vm0, %v32687_v0  ;;  %31016 = vmatprep.subr.mxu1 %v32687_v0  ;;  %v9248_v25 = vsel %vm203_vm1, %v159_v17, 0 }
 0x104   :  { %v432_v27 = vpop.f32.mrf.mxu0  ;;  %31004 = vmatmul.mubr.f32.vlgmr.msra.gmra.mxu0 %v33379_v61  ;;  %v506_v31 = vpop.f32.mrf.mxu1  ;;  %31009 = vmatmul.mubr.f32.vlgmr.msra.gmra.mxu1 %v7510_v3  ;;  %v33503_v61 = vand.u32 4294901760, %v8796_v52 }
 0x105   :  { %v433_v30 = vadd.f32 %v432_v27, %v359_v22  ;;  %31012 = vmatpush3.xpose.msra.mxu0 %v7551_v1  ;;  %31017 = vmatpush3.xpose.msra.mxu1 %v33357_v54  ;;  %v33511_v1 = vand.u32 4294901760, %v8793_v55 }
 0x106   :  { %v30525_v32 = vpop.f32.mrf.mxu0  ;;  %31013 = vmatprep.mubr.msk.f32.mxu0 %vm32688_vm0, %v32687_v0  ;;  %v30530_v36 = vpop.f32.mrf.mxu1  ;;  %31021 = vmatprep.subr.mxu0 %v32687_v0 }
 0x107   :  { %v507_v35 = vadd.f32 %v506_v31, %v433_v30  ;;  %31018 = vmatprep.mubr.msk.f32.mxu1 %vm32688_vm0, %v32687_v0  ;;  %31026 = vmatprep.subr.mxu1 %v32687_v0  ;;  %v33529_v14 = vsub.f32 %v8793_v55, %v33511_v1  ;;  %v33563_v36 = vand.u32 4294901760, %v9248_v25 }
 0x108   :  { %v580_v39 = vpop.f32.mrf.mxu0  ;;  %31014 = vmatmul.mubr.f32.vlgmr.msra.gmra.mxu0 %v33365_v56  ;;  %v652_v43 = vpop.f32.mrf.mxu1  ;;  %31019 = vmatmul.mubr.f32.vlgmr.msra.gmra.mxu1 %v33365_v56 }
 0x109   :  { %v581_v42 = vadd.f32 %v580_v39, %v507_v35  ;;  %31022 = vmatpush3.xpose.msra.mxu0 %v33401_v6  ;;  %31027 = vmatpush3.xpose.msra.mxu1 %v8005_v33 }
 0x10a   :  { %v30535_v46 = vpop.f32.mrf.mxu0  ;;  %31023 = vmatprep.mubr.msk.f32.mxu0 %vm32688_vm0, %v32687_v0  ;;  %v30540_v48 = vpop.f32.mrf.mxu1  ;;  %31031 = vmatprep.subr.mxu0 %v32687_v0 }
 0x10b   :  { %v653_v47 = vadd.f32 %v652_v43, %v581_v42  ;;  %31028 = vmatprep.mubr.msk.f32.mxu1 %vm32688_vm0, %v32687_v0  ;;  %31036 = vmatprep.subr.mxu1 %v32687_v0 }
 0x10c   :  { %v734_v50 = vpop.f32.mrf.mxu0  ;;  %31024 = vmatmul.mubr.f32.vlgmr.msra.gmra.mxu0 %v7964_v40  ;;  %v810_v53 = vpop.f32.mrf.mxu1  ;;  %31029 = vmatmul.mubr.f32.vlgmr.msra.gmra.mxu1 %v33409_v8 }
 0x10d   :  { %31032 = vmatpush3.xpose.msra.mxu0 %v33415_v10  ;;  %v33491_v54 = vsel %vm14668_vm2, -1e+09, %v653_v47  ;;  %v811_v56 = vadd.f32 %v810_v53, %v734_v50  ;;  %31037 = vmatpush3.xpose.msra.mxu1 %v33401_v6  ;;  %v33523_v10 = vsub.f32 %v8796_v52, %v33503_v61  ;;  %v96_v47 = vld [vmem:[#allocation2 + $0xa8] sm:$0xff] }
 0x10e   :  { %v30545_v57 = vpop.f32.mrf.mxu0  ;;  %31033 = vmatprep.mubr.msk.f32.mxu0 %vm32688_vm0, %v32687_v0  ;;  %v14702_v58 = vsel %vm203_vm1, %v33491_v54, -inf  ;;  %v30550_v59 = vpop.f32.mrf.mxu1  ;;  %31041 = vmatprep.subr.mxu0 %v32687_v0  ;;  %v160_v52 = vld [vmem:[#allocation5 + $0xa8] sm:$0xff]  ;;  %v128_v53 = vmul.f32 0.35355338, %v96_v47 }
 0x10f   :  { %14703 = vmax.xlane.f32.xlu0 %v14702_v58  ;;  %31038 = vmatprep.mubr.msk.f32.mxu1 %vm32688_vm0, %v32687_v0  ;;  %v8907_v21 = vand.u32 4294901760, %v33523_v10 }
 0x110   :  { %v884_v62 = vpop.f32.mrf.mxu0  ;;  %31034 = vmatmul.mubr.f32.vlgmr.msra.gmra.mxu0 %v33423_v13  ;;  %v958_v3 = vpop.f32.mrf.mxu1  ;;  %31039 = vmatmul.mubr.f32.vlgmr.msra.gmra.mxu1 %v7962_v18  ;;  %v8416_v13 = vand.u32 4294901760, %v8415_v63  ;;  %v127_v18 = vmul.f32 0.35355338, %v95_v11 }
 0x111   :  { %v885_v2 = vadd.f32 %v884_v62, %v811_v56  ;;  %31042 = vmatpush3.xpose.msra.mxu0 %v8003_v16  ;;  %31046 = vmatprep.subr.mxu1 %v32687_v0  ;;  %v8908_v33 = vsub.f32 %v33523_v10, %v8907_v21  ;;  %v9700_v62 = vsel %vm203_vm1, %v160_v52, 0 }
 0x112   :  { %v30555_v4 = vpop.f32.mrf.mxu0  ;;  %31043 = vmatprep.mubr.msk.f32.mxu0 %vm32688_vm0, %v32687_v0  ;;  %31047 = vmatpush3.xpose.msra.mxu1 %v33401_v6  ;;  %v30560_v7 = vpop.f32.mrf.mxu1  ;;  %v9245_v31 = vsel %vm203_vm1, %v127_v18, 0  ;;  %v33615_v11 = vand.u32 4294901760, %v9700_v62 }
 0x113   :  { %v959_v5 = vadd.f32 %v958_v3, %v885_v2  ;;  %31051 = vmatprep.subr.mxu0 %v32687_v0  ;;  %31048 = vmatprep.mubr.msk.f32.mxu1 %vm32688_vm0, %v32687_v0  ;;  %v33569_v42 = vand.u32 4294901760, %v9245_v31  ;;  %v8909_v46 = vand.u32 4294901760, %v8908_v33  ;;  %v9697_v4 = vsel %vm203_vm1, %v128_v53, 0 }
 0x114   :  { %v1032_v12 = vpop.f32.mrf.mxu0  ;;  %31044 = vmatmul.mubr.f32.vlgmr.msra.gmra.mxu0 %v33409_v8  ;;  %v1104_v6 = vpop.f32.mrf.mxu1  ;;  %31056 = vmatprep.subr.mxu1 %v32687_v0 }
 0x115   :  { %v1033_v15 = vadd.f32 %v1032_v12, %v959_v5  ;;  %31052 = vmatpush3.xpose.msra.mxu0 %v33448_v26  ;;  %31049 = vmatmul.mubr.f32.vlgmr.msra.gmra.mxu1 %v33409_v8  ;;  %v8866_v8 = vand.u32 4294901760, %v33529_v14  ;;  %v33586_v50 = vsub.f32 %v9245_v31, %v33569_v42 }
 0x116   :  { %v30565_v16 = vpop.f32.mrf.mxu0  ;;  %31053 = vmatprep.mubr.msk.f32.mxu0 %vm32688_vm0, %v32687_v0  ;;  %31057 = vmatpush3.xpose.msra.mxu1 %v8457_v9  ;;  %v30570_v20 = vpop.f32.mrf.mxu1 }
 0x117   :  { %v1105_v19 = vadd.f32 %v1104_v6, %v1033_v15  ;;  %31061 = vmatprep.subr.mxu0 %v32687_v0  ;;  %31058 = vmatprep.mubr.msk.f32.mxu1 %vm32688_vm0, %v32687_v0  ;;  %v8867_v35 = vsub.f32 %v33529_v14, %v8866_v8  ;;  %v9318_v60 = vand.u32 4294901760, %v33586_v50  ;;  %v33623_v6 = vand.u32 4294901760, %v9697_v4 }
 0x118   :  { %v1186_v22 = vpop.f32.mrf.mxu0  ;;  %31054 = vmatmul.mubr.f32.vlgmr.msra.gmra.mxu0 %v8416_v13  ;;  %v1262_v23 = vpop.f32.mrf.mxu1  ;;  %31066 = vmatprep.subr.mxu1 %v32687_v0 }
 0x119   :  { %31062 = vmatpush3.xpose.msra.mxu0 %v33468_v38  ;;  %v33545_v24 = vsel %vm14668_vm2, -1e+09, %v1105_v19  ;;  %v1263_v27 = vadd.f32 %v1262_v23, %v1186_v22  ;;  %31059 = vmatmul.mubr.f32.vlgmr.msra.gmra.mxu1 %v33455_v29  ;;  %v8868_v48 = vand.u32 4294901760, %v8867_v35  ;;  %v9319_v15 = vsub.f32 %v33586_v50, %v9318_v60 }
 0x11a   :  { %v30575_v28 = vpop.f32.mrf.mxu0  ;;  %31063 = vmatprep.mubr.msk.f32.mxu0 %vm32688_vm0, %v32687_v0  ;;  %v14705_v30 = vsel %vm203_vm1, %v33545_v24, -inf  ;;  %31067 = vmatpush3.xpose.msra.mxu1 %v33448_v26  ;;  %v30580_v32 = vpop.f32.mrf.mxu1  ;;  %v33641_v23 = vsub.f32 %v9697_v4, %v33623_v6 }
 0x11b   :  { %31071 = vmatprep.subr.mxu0 %v32687_v0  ;;  %14706 = vmax.xlane.f32.xlu0 %v14705_v30  ;;  %v161_v28 = vld [vmem:[#allocation5 + $0xb0] sm:$0xff] }
 0x11c   :  { %v1336_v34 = vpop.f32.mrf.mxu0  ;;  %31064 = vmatmul.mubr.f32.vlgmr.msra.gmra.mxu0 %v33473_v41  ;;  %31068 = vmatprep.mubr.msk.f32.mxu1 %vm32688_vm0, %v32687_v0  ;;  %v1410_v40 = vpop.f32.mrf.mxu1  ;;  %v33580_v41 = vsub.f32 %v9248_v25, %v33563_v36 }
 0x11d   :  { %v1337_v39 = vadd.f32 %v1336_v34, %v1263_v27  ;;  %31072 = vmatpush3.xpose.msra.mxu0 %v8455_v49  ;;  %31069 = vmatmul.mubr.f32.vlgmr.msra.gmra.mxu1 %v8414_v51  ;;  %v9770_v34 = vand.u32 4294901760, %v33641_v23 }
 0x11e   :  { %31076 = vmatprep.subr.mxu1 %v32687_v0  ;;  %v30585_v43 = vpop.f32.mrf.mxu0  ;;  %v30590_v45 = vpop.f32.mrf.mxu1  ;;  %31073 = vmatprep.mubr.msk.f32.mxu0 %vm32688_vm0, %v32687_v0  ;;  %v9359_v58 = vand.u32 4294901760, %v33580_v41 }
 0x11f   :  { %v1411_v44 = vadd.f32 %v1410_v40, %v1337_v39  ;;  %31077 = vmatpush3.xpose.msra.mxu1 %v33448_v26  ;;  %31081 = vmatprep.subr.mxu0 %v32687_v0  ;;  %v10152_v43 = vsel %vm203_vm1, %v161_v28, 0 }
 0x120   :  { %v1484_v38 = vpop.f32.mrf.mxu0  ;;  %31074 = vmatmul.mubr.f32.vlgmr.msra.gmra.mxu0 %v33455_v29  ;;  %31078 = vmatprep.mubr.msk.f32.mxu1 %vm32688_vm0, %v32687_v0  ;;  %v1556_v26 = vpop.f32.mrf.mxu1  ;;  %v9360_v9 = vsub.f32 %v33580_v41, %v9359_v58 }
 0x121   :  { %v1485_v49 = vadd.f32 %v1484_v38, %v1411_v44  ;;  %31082 = vmatpush3.xpose.msra.mxu0 %v33503_v61  ;;  %31086 = vmatprep.subr.mxu1 %v32687_v0 }
 0x122   :  { %31079 = vmatmul.mubr.f32.vlgmr.msra.gmra.mxu1 %v33455_v29  ;;  %v30595_v51 = vpop.f32.mrf.mxu0  ;;  %v30600_v56 = vpop.f32.mrf.mxu1  ;;  %31083 = vmatprep.mubr.msk.f32.mxu0 %vm32688_vm0, %v32687_v0  ;;  %v9361_v20 = vand.u32 4294901760, %v9360_v9 }
 0x123   :  { %v1557_v55 = vadd.f32 %v1556_v26, %v1485_v49  ;;  %31087 = vmatpush3.xpose.msra.mxu1 %v8909_v46  ;;  %31091 = vmatprep.subr.mxu0 %v32687_v0  ;;  %v9771_v49 = vsub.f32 %v33641_v23, %v9770_v34  ;;  %v33675_v26 = vand.u32 4294901760, %v10152_v43 }
 0x124   :  { %v1638_v57 = vpop.f32.mrf.mxu0  ;;  %31084 = vmatmul.mubr.f32.vlgmr.msra.gmra.mxu0 %v8868_v48  ;;  %31088 = vmatprep.mubr.msk.f32.mxu1 %vm32688_vm0, %v32687_v0  ;;  %v1714_v29 = vpop.f32.mrf.mxu1 }
 0x125   :  { %31092 = vmatpush3.xpose.msra.mxu0 %v33523_v10  ;;  %v33599_v59 = vsel %vm14668_vm2, -1e+09, %v1557_v55  ;;  %v1715_v63 = vadd.f32 %v1714_v29, %v1638_v57  ;;  %31096 = vmatprep.subr.mxu1 %v32687_v0  ;;  %v33635_v10 = vsub.f32 %v9700_v62, %v33615_v11  ;;  %v98_v29 = vld [vmem:[#allocation2 + $0xb8] sm:$0xff]  ;;  %v9772_v62 = vand.u32 4294901760, %v9771_v49 }
 0x126   :  { %31089 = vmatmul.mubr.f32.vlgmr.msra.gmra.mxu1 %v33511_v1  ;;  %v30605_v2 = vpop.f32.mrf.mxu0  ;;  %v14708_v3 = vsel %vm203_vm1, %v33599_v59, -inf  ;;  %v30610_v5 = vpop.f32.mrf.mxu1  ;;  %31093 = vmatprep.mubr.msk.f32.mxu0 %vm32688_vm0, %v32687_v0  ;;  %v130_v4 = vmul.f32 0.35355338, %v98_v29 }
 0x127   :  { %31097 = vmatpush3.xpose.msra.mxu1 %v33503_v61  ;;  %31101 = vmatprep.subr.mxu0 %v32687_v0  ;;  %v9811_v32 = vand.u32 4294901760, %v33635_v10 }
 0x128   :  { %14709 = vmax.xlane.f32.xlu1 %v14708_v3  ;;  %v1788_v7 = vpop.f32.mrf.mxu0  ;;  %31094 = vmatmul.mubr.f32.vlgmr.msra.gmra.mxu0 %v33529_v14  ;;  %v1862_v13 = vpop.f32.mrf.mxu1  ;;  %v162_v3 = vld [vmem:[#allocation5 + $0xb8] sm:$0xff] }
 0x129   :  { %v1789_v12 = vadd.f32 %v1788_v7, %v1715_v63  ;;  %31098 = vmatprep.mubr.msk.f32.mxu1 %vm32688_vm0, %v32687_v0  ;;  %31102 = vmatpush3.xpose.msra.mxu0 %v8907_v21  ;;  %v97_v21 = vld [vmem:[#allocation2 + $0xb0] sm:$0xff]  ;;  %v9812_v47 = vsub.f32 %v33635_v10, %v9811_v32 }
 0x12a   :  { %31099 = vmatmul.mubr.f32.vlgmr.msra.gmra.mxu1 %v8866_v8  ;;  %v30615_v16 = vpop.f32.mrf.mxu0  ;;  %31106 = vmatprep.subr.mxu1 %v32687_v0  ;;  %v30620_v18 = vpop.f32.mrf.mxu1  ;;  %v9320_v8 = vand.u32 4294901760, %v9319_v15  ;;  %v129_v30 = vmul.f32 0.35355338, %v97_v21 }
 0x12b   :  { %v1863_v17 = vadd.f32 %v1862_v13, %v1789_v12  ;;  %31103 = vmatprep.mubr.msk.f32.mxu0 %vm32688_vm0, %v32687_v0  ;;  %31107 = vmatpush3.xpose.msra.mxu1 %v33503_v61  ;;  %v9813_v57 = vand.u32 4294901760, %v9812_v47 }
 0x12c   :  { %31111 = vmatprep.subr.mxu0 %v32687_v0  ;;  %v1936_v19 = vpop.f32.mrf.mxu0  ;;  %31104 = vmatmul.mubr.f32.vlgmr.msra.gmra.mxu0 %v33511_v1  ;;  %v2008_v22 = vpop.f32.mrf.mxu1  ;;  %v10149_v45 = vsel %vm203_vm1, %v129_v30, 0 }
 0x12d   :  { %v1937_v14 = vadd.f32 %v1936_v19, %v1863_v17  ;;  %31108 = vmatprep.mubr.msk.f32.mxu1 %vm32688_vm0, %v32687_v0  ;;  %31112 = vmatpush3.xpose.msra.mxu0 %v33563_v36  ;;  %v33681_v52 = vand.u32 4294901760, %v10149_v45  ;;  %v10604_v17 = vsel %vm203_vm1, %v162_v3, 0  ;;  %v10601_v19 = vsel %vm203_vm1, %v130_v4, 0 }
 0x12e   :  { %31116 = vmatprep.subr.mxu1 %v32687_v0  ;;  %v30625_v61 = vpop.f32.mrf.mxu0  ;;  %31109 = vmatmul.mubr.f32.vlgmr.msra.gmra.mxu1 %v33511_v1  ;;  %v30630_v27 = vpop.f32.mrf.mxu1 }
 0x12f   :  { %v2009_v25 = vadd.f32 %v2008_v22, %v1937_v14  ;;  %31113 = vmatprep.mubr.msk.f32.mxu0 %vm32688_vm0, %v32687_v0  ;;  %31117 = vmatpush3.xpose.msra.mxu1 %v9361_v20  ;;  %v33735_v27 = vand.u32 4294901760, %v10601_v19 }
 0x130   :  { %31121 = vmatprep.subr.mxu0 %v32687_v0  ;;  %v2090_v31 = vpop.f32.mrf.mxu0  ;;  %31114 = vmatmul.mubr.f32.vlgmr.msra.gmra.mxu0 %v9320_v8  ;;  %v2166_v33 = vpop.f32.mrf.mxu1  ;;  %v33727_v8 = vand.u32 4294901760, %v10604_v17 }
 0x131   :  { %31118 = vmatprep.mubr.msk.f32.mxu1 %vm32688_vm0, %v32687_v0  ;;  %v33654_v1 = vsel %vm14668_vm2, -1e+09, %v2009_v25  ;;  %31122 = vmatpush3.xpose.msra.mxu0 %v33580_v41  ;;  %v2167_v35 = vadd.f32 %v2166_v33, %v2090_v31 }
 0x132   :  { %31126 = vmatprep.subr.mxu1 %v32687_v0  ;;  %v30635_v39 = vpop.f32.mrf.mxu0  ;;  %v14711_v40 = vsel %vm203_vm1, %v33654_v1, -inf  ;;  %31119 = vmatmul.mubr.f32.vlgmr.msra.gmra.mxu1 %v33569_v42  ;;  %v30640_v44 = vpop.f32.mrf.mxu1 }
 0x133   :  { %31123 = vmatprep.mubr.msk.f32.mxu0 %vm32688_vm0, %v32687_v0  ;;  %31127 = vmatpush3.xpose.msra.mxu1 %v33563_v36 }
 0x134   :  { %31131 = vmatprep.subr.mxu0 %v32687_v0  ;;  %v2240_v46 = vpop.f32.mrf.mxu0  ;;  %14712 = vmax.xlane.f32.xlu1 %v14711_v40  ;;  %v2314_v48 = vpop.f32.mrf.mxu1  ;;  %v33753_v40 = vsub.f32 %v10601_v19, %v33735_v27 }
 0x135   :  { %v2241_v38 = vadd.f32 %v2240_v46, %v2167_v35  ;;  %31124 = vmatmul.mubr.f32.vlgmr.msra.gmra.mxu0 %v33586_v50  ;;  %31128 = vmatprep.mubr.msk.f32.mxu1 %vm32688_vm0, %v32687_v0  ;;  %v33692_v50 = vsub.f32 %v10152_v43, %v33675_v26 }
 0x136   :  { %31132 = vmatpush3.xpose.msra.mxu0 %v9359_v58  ;;  %v30645_v51 = vpop.f32.mrf.mxu0  ;;  %31129 = vmatmul.mubr.f32.vlgmr.msra.gmra.mxu1 %v9318_v60  ;;  %v30650_v55 = vpop.f32.mrf.mxu1  ;;  %v33698_v60 = vsub.f32 %v10149_v45, %v33681_v52  ;;  %v163_v45 = vld [vmem:[#allocation5 + $0xc0] sm:$0xff] }
 0x137   :  { %v2315_v53 = vadd.f32 %v2314_v48, %v2241_v38  ;;  %31136 = vmatprep.subr.mxu1 %v32687_v0  ;;  %31133 = vmatprep.mubr.msk.f32.mxu0 %vm32688_vm0, %v32687_v0  ;;  %v10674_v51 = vand.u32 4294901760, %v33753_v40 }
 0x138   :  { %31137 = vmatpush3.xpose.msra.mxu1 %v33563_v36  ;;  %v2388_v56 = vpop.f32.mrf.mxu0  ;;  %31141 = vmatprep.subr.mxu0 %v32687_v0  ;;  %v2460_v58 = vpop.f32.mrf.mxu1  ;;  %v10222_v16 = vand.u32 4294901760, %v33698_v60 }
 0x139   :  { %v2389_v41 = vadd.f32 %v2388_v56, %v2315_v53  ;;  %31134 = vmatmul.mubr.f32.vlgmr.msra.gmra.mxu0 %v33569_v42  ;;  %31138 = vmatprep.mubr.msk.f32.mxu1 %vm32688_vm0, %v32687_v0  ;;  %v11056_v56 = vsel %vm203_vm1, %v163_v45, 0 }
 0x13a   :  { %31142 = vmatpush3.xpose.msra.mxu0 %v33615_v11  ;;  %v30655_v36 = vpop.f32.mrf.mxu0  ;;  %31146 = vmatprep.subr.mxu1 %v32687_v0  ;;  %v30660_v2 = vpop.f32.mrf.mxu1  ;;  %v10223_v25 = vsub.f32 %v33698_v60, %v10222_v16 }
 0x13b   :  { %v2461_v63 = vadd.f32 %v2460_v58, %v2389_v41  ;;  %31139 = vmatmul.mubr.f32.vlgmr.msra.gmra.mxu1 %v33569_v42  ;;  %31143 = vmatprep.mubr.msk.f32.mxu0 %vm32688_vm0, %v32687_v0  ;;  %v10263_v42 = vand.u32 4294901760, %v33692_v50  ;;  %v33787_v2 = vand.u32 4294901760, %v11056_v56 }
 0x13c   :  { %31147 = vmatpush3.xpose.msra.mxu1 %v9813_v57  ;;  %v2542_v5 = vpop.f32.mrf.mxu0  ;;  %31151 = vmatprep.subr.mxu0 %v32687_v0  ;;  %v2618_v7 = vpop.f32.mrf.mxu1 }
 0x13d   :  { %31144 = vmatmul.mubr.f32.vlgmr.msra.gmra.mxu0 %v9772_v62  ;;  %v33707_v9 = vsel %vm14668_vm2, -1e+09, %v2461_v63  ;;  %31148 = vmatprep.mubr.msk.f32.mxu1 %vm32688_vm0, %v32687_v0  ;;  %v2619_v12 = vadd.f32 %v2618_v7, %v2542_v5  ;;  %v10264_v22 = vsub.f32 %v33692_v50, %v10263_v42  ;;  %v10675_v63 = vsub.f32 %v33753_v40, %v10674_v51 }
 0x13e   :  { %31152 = vmatpush3.xpose.msra.mxu0 %v33635_v10  ;;  %v30665_v13 = vpop.f32.mrf.mxu0  ;;  %v14714_v15 = vsel %vm203_vm1, %v33707_v9, -inf  ;;  %31156 = vmatprep.subr.mxu1 %v32687_v0  ;;  %v30670_v18 = vpop.f32.mrf.mxu1  ;;  %v33747_v10 = vsub.f32 %v10604_v17, %v33727_v8 }
 0x13f   :  { %31149 = vmatmul.mubr.f32.vlgmr.msra.gmra.mxu1 %v33623_v6  ;;  %31153 = vmatprep.mubr.msk.f32.mxu0 %vm32688_vm0, %v32687_v0  ;;  %v10265_v39 = vand.u32 4294901760, %v10264_v22  ;;  %v10676_v17 = vand.u32 4294901760, %v10675_v63 }
 0x140   :  { %31157 = vmatpush3.xpose.msra.mxu1 %v33615_v11  ;;  %v2692_v20 = vpop.f32.mrf.mxu0  ;;  %31161 = vmatprep.subr.mxu0 %v32687_v0  ;;  %v2766_v14 = vpop.f32.mrf.mxu1  ;;  %v10715_v48 = vand.u32 4294901760, %v33747_v10 }
 0x141   :  { %14715 = vmax.xlane.f32.xlu0 %v14714_v15  ;;  %v2693_v21 = vadd.f32 %v2692_v20, %v2619_v12  ;;  %31154 = vmatmul.mubr.f32.vlgmr.msra.gmra.mxu0 %v33641_v23  ;;  %v164_v20 = vld [vmem:[#allocation5 + $0xc8] sm:$0xff] }
 0x142   :  { %31158 = vmatprep.mubr.msk.f32.mxu1 %vm32688_vm0, %v32687_v0  ;;  %v30675_v61 = vpop.f32.mrf.mxu0  ;;  %31162 = vmatpush3.xpose.msra.mxu0 %v9811_v32  ;;  %v30680_v30 = vpop.f32.mrf.mxu1  ;;  %v99_v32 = vld [vmem:[#allocation2 + $0xc0] sm:$0xff]  ;;  %v10716_v62 = vsub.f32 %v33747_v10, %v10715_v48 }
 0x143   :  { %v2767_v28 = vadd.f32 %v2766_v14, %v2693_v21  ;;  %31159 = vmatmul.mubr.f32.vlgmr.msra.gmra.mxu1 %v9770_v34  ;;  %31166 = vmatprep.subr.mxu1 %v32687_v0  ;;  %v10224_v34 = vand.u32 4294901760, %v10223_v25  ;;  %v131_v46 = vmul.f32 0.35355338, %v99_v32 }
 0x144   :  { %31163 = vmatprep.mubr.msk.f32.mxu0 %vm32688_vm0, %v32687_v0  ;;  %v2840_v31 = vpop.f32.mrf.mxu0  ;;  %31167 = vmatpush3.xpose.msra.mxu1 %v33615_v11  ;;  %v2912_v35 = vpop.f32.mrf.mxu1  ;;  %v10717_v15 = vand.u32 4294901760, %v10716_v62  ;;  %v165_v62 = vld [vmem:[#allocation5 + $0xd0] sm:$0xff] }
 0x145   :  { %31171 = vmatprep.subr.mxu0 %v32687_v0  ;;  %v2841_v33 = vadd.f32 %v2840_v31, %v2767_v28  ;;  %31164 = vmatmul.mubr.f32.vlgmr.msra.gmra.mxu0 %v33623_v6  ;;  %v11053_v29 = vsel %vm203_vm1, %v131_v46, 0 }
 0x146   :  { %31168 = vmatprep.mubr.msk.f32.mxu1 %vm32688_vm0, %v32687_v0  ;;  %v30685_v23 = vpop.f32.mrf.mxu0  ;;  %31172 = vmatpush3.xpose.msra.mxu0 %v33675_v26  ;;  %v30690_v43 = vpop.f32.mrf.mxu1  ;;  %v33793_v5 = vand.u32 4294901760, %v11053_v29 }
 0x147   :  { %v2913_v11 = vadd.f32 %v2912_v35, %v2841_v33  ;;  %31176 = vmatprep.subr.mxu1 %v32687_v0  ;;  %31169 = vmatmul.mubr.f32.vlgmr.msra.gmra.mxu1 %v33623_v6  ;;  %v11508_v33 = vsel %vm203_vm1, %v164_v20, 0 }
 0x148   :  { %31173 = vmatprep.mubr.msk.f32.mxu0 %vm32688_vm0, %v32687_v0  ;;  %v2994_v44 = vpop.f32.mrf.mxu0  ;;  %31177 = vmatpush3.xpose.msra.mxu1 %v10265_v39  ;;  %v3070_v47 = vpop.f32.mrf.mxu1  ;;  %v33810_v18 = vsub.f32 %v11053_v29, %v33793_v5  ;;  %v33839_v43 = vand.u32 4294901760, %v11508_v33 }
 0x149   :  { %31181 = vmatprep.subr.mxu0 %v32687_v0  ;;  %v33763_v38 = vsel %vm14668_vm2, -1e+09, %v2913_v11  ;;  %31174 = vmatmul.mubr.f32.vlgmr.msra.gmra.mxu0 %v10224_v34  ;;  %v3071_v6 = vadd.f32 %v3070_v47, %v2994_v44 }
 0x14a   :  { %31178 = vmatprep.mubr.msk.f32.mxu1 %vm32688_vm0, %v32687_v0  ;;  %v30695_v49 = vpop.f32.mrf.mxu0  ;;  %31182 = vmatpush3.xpose.msra.mxu0 %v33692_v50  ;;  %v30700_v53 = vpop.f32.mrf.mxu1  ;;  %v14717_v55 = vsel %vm203_vm1, %v33763_v38, -inf  ;;  %v100_v50 = vld [vmem:[#allocation2 + $0xc8] sm:$0xff]  ;;  %v11126_v31 = vand.u32 4294901760, %v33810_v18 }
 0x14b   :  { %31186 = vmatprep.subr.mxu1 %v32687_v0  ;;  %31179 = vmatmul.mubr.f32.vlgmr.msra.gmra.mxu1 %v33681_v52  ;;  %v132_v21 = vmul.f32 0.35355338, %v100_v50 }
 0x14c   :  { %31183 = vmatprep.mubr.msk.f32.mxu0 %vm32688_vm0, %v32687_v0  ;;  %v3144_v57 = vpop.f32.mrf.mxu0  ;;  %31187 = vmatpush3.xpose.msra.mxu1 %v33675_v26  ;;  %v3218_v58 = vpop.f32.mrf.mxu1  ;;  %v11127_v46 = vsub.f32 %v33810_v18, %v11126_v31 }
 0x14d   :  { %31191 = vmatprep.subr.mxu0 %v32687_v0  ;;  %v3145_v41 = vadd.f32 %v3144_v57, %v3071_v6  ;;  %14718 = vmax.xlane.f32.xlu1 %v14717_v55  ;;  %v11505_v39 = vsel %vm203_vm1, %v132_v21, 0 }
 0x14e   :  { %31184 = vmatmul.mubr.f32.vlgmr.msra.gmra.mxu0 %v33698_v60  ;;  %v30705_v36 = vpop.f32.mrf.mxu0  ;;  %31188 = vmatprep.mubr.msk.f32.mxu1 %vm32688_vm0, %v32687_v0  ;;  %v30710_v4 = vpop.f32.mrf.mxu1  ;;  %v33804_v60 = vsub.f32 %v11056_v56, %v33787_v2  ;;  %v33847_v47 = vand.u32 4294901760, %v11505_v39  ;;  %v11128_v57 = vand.u32 4294901760, %v11127_v46 }
 0x14f   :  { %31192 = vmatpush3.xpose.msra.mxu0 %v10263_v42  ;;  %v3219_v3 = vadd.f32 %v3218_v58, %v3145_v41  ;;  %31189 = vmatmul.mubr.f32.vlgmr.msra.gmra.mxu1 %v10222_v16 }
 0x150   :  { %31196 = vmatprep.subr.mxu1 %v32687_v0  ;;  %v3292_v7 = vpop.f32.mrf.mxu0  ;;  %31193 = vmatprep.mubr.msk.f32.mxu0 %vm32688_vm0, %v32687_v0  ;;  %v3364_v13 = vpop.f32.mrf.mxu1  ;;  %v33865_v29 = vsub.f32 %v11505_v39, %v33847_v47  ;;  %v102_v39 = vld [vmem:[#allocation2 + $0xd8] sm:$0xff] }
 0x151   :  { %31197 = vmatpush3.xpose.msra.mxu1 %v33675_v26  ;;  %v3293_v12 = vadd.f32 %v3292_v7, %v3219_v3  ;;  %31201 = vmatprep.subr.mxu0 %v32687_v0 }
 0x152   :  { %31194 = vmatmul.mubr.f32.vlgmr.msra.gmra.mxu0 %v33681_v52  ;;  %v30715_v42 = vpop.f32.mrf.mxu0  ;;  %31198 = vmatprep.mubr.msk.f32.mxu1 %vm32688_vm0, %v32687_v0  ;;  %v30720_v16 = vpop.f32.mrf.mxu1  ;;  %v11578_v7 = vand.u32 4294901760, %v33865_v29 }
 0x153   :  { %31202 = vmatpush3.xpose.msra.mxu0 %v33727_v8  ;;  %v3365_v26 = vadd.f32 %v3364_v13, %v3293_v12  ;;  %31206 = vmatprep.subr.mxu1 %v32687_v0 }
 0x154   :  { %31199 = vmatmul.mubr.f32.vlgmr.msra.gmra.mxu1 %v33681_v52  ;;  %v3446_v19 = vpop.f32.mrf.mxu0  ;;  %31203 = vmatprep.mubr.msk.f32.mxu0 %vm32688_vm0, %v32687_v0  ;;  %v3522_v14 = vpop.f32.mrf.mxu1  ;;  %v11167_v52 = vand.u32 4294901760, %v33804_v60  ;;  %v11579_v21 = vsub.f32 %v33865_v29, %v11578_v7 }
 0x155   :  { %31207 = vmatpush3.xpose.msra.mxu1 %v10717_v15  ;;  %v33818_v22 = vsel %vm14668_vm2, -1e+09, %v3365_v26  ;;  %31211 = vmatprep.subr.mxu0 %v32687_v0  ;;  %v3523_v61 = vadd.f32 %v3522_v14, %v3446_v19  ;;  %v11960_v15 = vsel %vm203_vm1, %v165_v62, 0 }
 0x156   :  { %31204 = vmatmul.mubr.f32.vlgmr.msra.gmra.mxu0 %v10676_v17  ;;  %v30725_v25 = vpop.f32.mrf.mxu0  ;;  %31208 = vmatprep.mubr.msk.f32.mxu1 %vm32688_vm0, %v32687_v0  ;;  %v30730_v28 = vpop.f32.mrf.mxu1  ;;  %v14720_v30 = vsel %vm203_vm1, %v33818_v22, -inf  ;;  %v11168_v11 = vsub.f32 %v33804_v60, %v11167_v52  ;;  %v33899_v14 = vand.u32 4294901760, %v11960_v15 }
 0x157   :  { %31212 = vmatpush3.xpose.msra.mxu0 %v33747_v10  ;;  %31216 = vmatprep.subr.mxu1 %v32687_v0  ;;  %v33859_v10 = vsub.f32 %v11508_v33, %v33839_v43 }
 0x158   :  { %31209 = vmatmul.mubr.f32.vlgmr.msra.gmra.mxu1 %v33735_v27  ;;  %v3596_v35 = vpop.f32.mrf.mxu0  ;;  %31213 = vmatprep.mubr.msk.f32.mxu0 %vm32688_vm0, %v32687_v0  ;;  %v3670_v23 = vpop.f32.mrf.mxu1  ;;  %v11169_v56 = vand.u32 4294901760, %v11168_v11  ;;  %v166_v11 = vld [vmem:[#allocation5 + $0xd8] sm:$0xff] }
 0x159   :  { %31217 = vmatpush3.xpose.msra.mxu1 %v33727_v8  ;;  %v3597_v32 = vadd.f32 %v3596_v35, %v3523_v61  ;;  %31221 = vmatprep.subr.mxu0 %v32687_v0  ;;  %v11619_v4 = vand.u32 4294901760, %v33859_v10 }
 0x15a   :  { %14721 = vmax.xlane.f32.xlu0 %v14720_v30  ;;  %v30735_v34 = vpop.f32.mrf.mxu0  ;;  %31214 = vmatmul.mubr.f32.vlgmr.msra.gmra.mxu0 %v33753_v40  ;;  %v30740_v45 = vpop.f32.mrf.mxu1 }
 0x15b   :  { %31218 = vmatprep.mubr.msk.f32.mxu1 %vm32688_vm0, %v32687_v0  ;;  %v3671_v44 = vadd.f32 %v3670_v23, %v3597_v32  ;;  %31222 = vmatpush3.xpose.msra.mxu0 %v10715_v48  ;;  %v101_v48 = vld [vmem:[#allocation2 + $0xd0] sm:$0xff]  ;;  %v11620_v16 = vsub.f32 %v33859_v10, %v11619_v4 }
 0x15c   :  { %31219 = vmatmul.mubr.f32.vlgmr.msra.gmra.mxu1 %v10674_v51  ;;  %v3744_v6 = vpop.f32.mrf.mxu0  ;;  %31226 = vmatprep.subr.mxu1 %v32687_v0  ;;  %v3816_v53 = vpop.f32.mrf.mxu1  ;;  %v133_v36 = vmul.f32 0.35355338, %v101_v48 }
 0x15d   :  { %31223 = vmatprep.mubr.msk.f32.mxu0 %vm32688_vm0, %v32687_v0  ;;  %v3745_v49 = vadd.f32 %v3744_v6, %v3671_v44  ;;  %31227 = vmatpush3.xpose.msra.mxu1 %v33727_v8  ;;  %v11621_v35 = vand.u32 4294901760, %v11620_v16  ;;  %v134_v44 = vmul.f32 0.35355338, %v102_v39 }
 0x15e   :  { %31231 = vmatprep.subr.mxu0 %v32687_v0  ;;  %v30745_v55 = vpop.f32.mrf.mxu0  ;;  %31224 = vmatmul.mubr.f32.vlgmr.msra.gmra.mxu0 %v33735_v27  ;;  %v30750_v51 = vpop.f32.mrf.mxu1  ;;  %v11957_v17 = vsel %vm203_vm1, %v133_v36, 0 }
 0x15f   :  { %31228 = vmatprep.mubr.msk.f32.mxu1 %vm32688_vm0, %v32687_v0  ;;  %v3817_v40 = vadd.f32 %v3816_v53, %v3745_v49  ;;  %31232 = vmatpush3.xpose.msra.mxu0 %v33787_v2  ;;  %v33905_v25 = vand.u32 4294901760, %v11957_v17  ;;  %v12409_v51 = vsel %vm203_vm1, %v134_v44, 0 }
 0x160   :  { %31236 = vmatprep.subr.mxu1 %v32687_v0  ;;  %v3898_v8 = vpop.f32.mrf.mxu0  ;;  %31229 = vmatmul.mubr.f32.vlgmr.msra.gmra.mxu1 %v33735_v27  ;;  %v3974_v41 = vpop.f32.mrf.mxu1 }
 0x161   :  { %31233 = vmatprep.mubr.msk.f32.mxu0 %vm32688_vm0, %v32687_v0  ;;  %v33874_v58 = vsel %vm14668_vm2, -1e+09, %v3817_v40  ;;  %31237 = vmatpush3.xpose.msra.mxu1 %v11169_v56  ;;  %v3975_v63 = vadd.f32 %v3974_v41, %v3898_v8  ;;  %v33922_v32 = vsub.f32 %v11957_v17, %v33905_v25  ;;  %v12412_v56 = vsel %vm203_vm1, %v166_v11, 0 }
 0x162   :  { %31241 = vmatprep.subr.mxu0 %v32687_v0  ;;  %v30755_v3 = vpop.f32.mrf.mxu0  ;;  %31234 = vmatmul.mubr.f32.vlgmr.msra.gmra.mxu0 %v11128_v57  ;;  %v30760_v27 = vpop.f32.mrf.mxu1  ;;  %v14723_v12 = vsel %vm203_vm1, %v33874_v58, -inf  ;;  %v33951_v36 = vand.u32 4294901760, %v12412_v56 }
 0x163   :  { %31238 = vmatprep.mubr.msk.f32.mxu1 %vm32688_vm0, %v32687_v0  ;;  %31242 = vmatpush3.xpose.msra.mxu0 %v33804_v60  ;;  %v12030_v55 = vand.u32 4294901760, %v33922_v32  ;;  %v33959_v27 = vand.u32 4294901760, %v12409_v51 }
 0x164   :  { %31246 = vmatprep.subr.mxu1 %v32687_v0  ;;  %v4048_v13 = vpop.f32.mrf.mxu0  ;;  %31239 = vmatmul.mubr.f32.vlgmr.msra.gmra.mxu1 %v33793_v5  ;;  %v4122_v42 = vpop.f32.mrf.mxu1 }
 0x165   :  { %31243 = vmatprep.mubr.msk.f32.mxu0 %vm32688_vm0, %v32687_v0  ;;  %v4049_v50 = vadd.f32 %v4048_v13, %v3975_v63  ;;  %31247 = vmatpush3.xpose.msra.mxu1 %v33787_v2  ;;  %v12031_v3 = vsub.f32 %v33922_v32, %v12030_v55 }
 0x166   :  { %31251 = vmatprep.subr.mxu0 %v32687_v0  ;;  %v30765_v26 = vpop.f32.mrf.mxu0  ;;  %14724 = vmax.xlane.f32.xlu1 %v14723_v12  ;;  %v30770_v20 = vpop.f32.mrf.mxu1 }
 0x167   :  { %31244 = vmatmul.mubr.f32.vlgmr.msra.gmra.mxu0 %v33810_v18  ;;  %v4123_v19 = vadd.f32 %v4122_v42, %v4049_v50  ;;  %31248 = vmatprep.mubr.msk.f32.mxu1 %vm32688_vm0, %v32687_v0  ;;  %v11580_v18 = vand.u32 4294901760, %v11579_v21  ;;  %v33977_v26 = vsub.f32 %v12409_v51, %v33959_v27  ;;  %v167_v21 = vld [vmem:[#allocation5 + $0xe0] sm:$0xff] }
 0x168   :  { %31252 = vmatpush3.xpose.msra.mxu0 %v11167_v52  ;;  %v4196_v61 = vpop.f32.mrf.mxu0  ;;  %31249 = vmatmul.mubr.f32.vlgmr.msra.gmra.mxu1 %v11126_v31  ;;  %v4268_v30 = vpop.f32.mrf.mxu1  ;;  %v33916_v31 = vsub.f32 %v11960_v15, %v33899_v14 }
 0x169   :  { %31256 = vmatprep.subr.mxu1 %v32687_v0  ;;  %v4197_v28 = vadd.f32 %v4196_v61, %v4123_v19  ;;  %31253 = vmatprep.mubr.msk.f32.mxu0 %vm32688_vm0, %v32687_v0 }
 0x16a   :  { %31257 = vmatpush3.xpose.msra.mxu1 %v33787_v2  ;;  %v30775_v33 = vpop.f32.mrf.mxu0  ;;  %31261 = vmatprep.subr.mxu0 %v32687_v0  ;;  %v30780_v52 = vpop.f32.mrf.mxu1 }
 0x16b   :  { %31254 = vmatmul.mubr.f32.vlgmr.msra.gmra.mxu0 %v33793_v5  ;;  %v4269_v60 = vadd.f32 %v4268_v30, %v4197_v28  ;;  %31258 = vmatprep.mubr.msk.f32.mxu1 %vm32688_vm0, %v32687_v0  ;;  %v12482_v33 = vand.u32 4294901760, %v33977_v26  ;;  %v12864_v52 = vsel %vm203_vm1, %v167_v21, 0 }
 0x16c   :  { %31262 = vmatpush3.xpose.msra.mxu0 %v33839_v43  ;;  %v4350_v2 = vpop.f32.mrf.mxu0  ;;  %31266 = vmatprep.subr.mxu1 %v32687_v0  ;;  %v4426_v23 = vpop.f32.mrf.mxu1 }
 0x16d   :  { %31259 = vmatmul.mubr.f32.vlgmr.msra.gmra.mxu1 %v33793_v5  ;;  %v33928_v34 = vsel %vm14668_vm2, -1e+09, %v4269_v60  ;;  %31263 = vmatprep.mubr.msk.f32.mxu0 %vm32688_vm0, %v32687_v0  ;;  %v4427_v45 = vadd.f32 %v4426_v23, %v4350_v2  ;;  %v12071_v5 = vand.u32 4294901760, %v33916_v31 }
 0x16e   :  { %31267 = vmatpush3.xpose.msra.mxu1 %v11621_v35  ;;  %v30785_v46 = vpop.f32.mrf.mxu0  ;;  %31271 = vmatprep.subr.mxu0 %v32687_v0  ;;  %v30790_v6 = vpop.f32.mrf.mxu1  ;;  %v14726_v49 = vsel %vm203_vm1, %v33928_v34, -inf }
 0x16f   :  { %31264 = vmatmul.mubr.f32.vlgmr.msra.gmra.mxu0 %v11580_v18  ;;  %31268 = vmatprep.mubr.msk.f32.mxu1 %vm32688_vm0, %v32687_v0  ;;  %v12072_v62 = vsub.f32 %v33916_v31, %v12071_v5  ;;  %v12483_v46 = vsub.f32 %v33977_v26, %v12482_v33  ;;  %v34011_v6 = vand.u32 4294901760, %v12864_v52 }
 0x170   :  { %31272 = vmatpush3.xpose.msra.mxu0 %v33859_v10  ;;  %v4500_v53 = vpop.f32.mrf.mxu0  ;;  %31276 = vmatprep.subr.mxu1 %v32687_v0  ;;  %v4574_v40 = vpop.f32.mrf.mxu1  ;;  %v33971_v10 = vsub.f32 %v12412_v56, %v33951_v36 }
 0x171   :  { %31269 = vmatmul.mubr.f32.vlgmr.msra.gmra.mxu1 %v33847_v47  ;;  %v4501_v48 = vadd.f32 %v4500_v53, %v4427_v45  ;;  %31273 = vmatprep.mubr.msk.f32.mxu0 %vm32688_vm0, %v32687_v0  ;;  %v12073_v42 = vand.u32 4294901760, %v12072_v62 }
 0x172   :  { %31277 = vmatpush3.xpose.msra.mxu1 %v33839_v43  ;;  %v30795_v57 = vpop.f32.mrf.mxu0  ;;  %31281 = vmatprep.subr.mxu0 %v32687_v0  ;;  %v30800_v41 = vpop.f32.mrf.mxu1  ;;  %v12523_v30 = vand.u32 4294901760, %v33971_v10 }
 0x173   :  { %14727 = vmax.xlane.f32.xlu1 %v14726_v49  ;;  %v4575_v8 = vadd.f32 %v4574_v40, %v4501_v48  ;;  %31274 = vmatmul.mubr.f32.vlgmr.msra.gmra.mxu0 %v33865_v29  ;;  %v103_v29 = vld [vmem:[#allocation2 + $0xe0] sm:$0xff] }
 0x174   :  { %31278 = vmatprep.mubr.msk.f32.mxu1 %vm32688_vm0, %v32687_v0  ;;  %v4648_v63 = vpop.f32.mrf.mxu0  ;;  %31282 = vmatpush3.xpose.msra.mxu0 %v11619_v4  ;;  %v4720_v13 = vpop.f32.mrf.mxu1  ;;  %v135_v61 = vmul.f32 0.35355338, %v103_v29  ;;  %v12524_v44 = vsub.f32 %v33971_v10, %v12523_v30 }
 0x175   :  { %31279 = vmatmul.mubr.f32.vlgmr.msra.gmra.mxu1 %v11578_v7  ;;  %v4649_v12 = vadd.f32 %v4648_v63, %v4575_v8  ;;  %31286 = vmatprep.subr.mxu1 %v32687_v0  ;;  %v12032_v7 = vand.u32 4294901760, %v12031_v3  ;;  %v12484_v8 = vand.u32 4294901760, %v12483_v46  ;;  %v168_v3 = vld [vmem:[#allocation5 + $0xe8] sm:$0xff] }
 0x176   :  { %31283 = vmatprep.mubr.msk.f32.mxu0 %vm32688_vm0, %v32687_v0  ;;  %v30805_v15 = vpop.f32.mrf.mxu0  ;;  %31287 = vmatpush3.xpose.msra.mxu1 %v33839_v43  ;;  %v30810_v17 = vpop.f32.mrf.mxu1  ;;  %v12861_v2 = vsel %vm203_vm1, %v135_v61, 0  ;;  %v12525_v51 = vand.u32 4294901760, %v12524_v44 }
 0x177   :  { %31291 = vmatprep.subr.mxu0 %v32687_v0  ;;  %v4721_v50 = vadd.f32 %v4720_v13, %v4649_v12  ;;  %31284 = vmatmul.mubr.f32.vlgmr.msra.gmra.mxu0 %v33847_v47  ;;  %v34017_v56 = vand.u32 4294901760, %v12861_v2 }
 0x178   :  { %31288 = vmatprep.mubr.msk.f32.mxu1 %vm32688_vm0, %v32687_v0  ;;  %v4802_v4 = vpop.f32.mrf.mxu0  ;;  %31292 = vmatpush3.xpose.msra.mxu0 %v33899_v14  ;;  %v4878_v43 = vpop.f32.mrf.mxu1 }
 0x179   :  { %31296 = vmatprep.subr.mxu1 %v32687_v0  ;;  %31289 = vmatmul.mubr.f32.vlgmr.msra.gmra.mxu1 %v33847_v47  ;;  %v4879_v16 = vadd.f32 %v4878_v43, %v4802_v4  ;;  %v33986_v20 = vsel %vm14668_vm2, -1e+09, %v4721_v50  ;;  %v13316_v4 = vsel %vm203_vm1, %v168_v3, 0 }
 0x17a   :  { %31293 = vmatprep.mubr.msk.f32.mxu0 %vm32688_vm0, %v32687_v0  ;;  %v30815_v19 = vpop.f32.mrf.mxu0  ;;  %31297 = vmatpush3.xpose.msra.mxu1 %v12073_v42  ;;  %v30820_v28 = vpop.f32.mrf.mxu1  ;;  %v14729_v35 = vsel %vm203_vm1, %v33986_v20, -inf }
 0x17b   :  { %31301 = vmatprep.subr.mxu0 %v32687_v0  ;;  %31294 = vmatmul.mubr.f32.vlgmr.msra.gmra.mxu0 %v12032_v7  ;;  %v34063_v28 = vand.u32 4294901760, %v13316_v4 }
 0x17c   :  { %31298 = vmatprep.mubr.msk.f32.mxu1 %vm32688_vm0, %v32687_v0  ;;  %v4952_v47 = vpop.f32.mrf.mxu0  ;;  %31302 = vmatpush3.xpose.msra.mxu0 %v33916_v31  ;;  %v5026_v60 = vpop.f32.mrf.mxu1  ;;  %v104_v31 = vld [vmem:[#allocation2 + $0xe8] sm:$0xff] }
 0x17d   :  { %31306 = vmatprep.subr.mxu1 %v32687_v0  ;;  %v4953_v39 = vadd.f32 %v4952_v47, %v4879_v16  ;;  %31299 = vmatmul.mubr.f32.vlgmr.msra.gmra.mxu1 %v33905_v25  ;;  %v136_v12 = vmul.f32 0.35355338, %v104_v31 }
 0x17e   :  { %31303 = vmatprep.mubr.msk.f32.mxu0 %vm32688_vm0, %v32687_v0  ;;  %v30825_v18 = vpop.f32.mrf.mxu0  ;;  %31307 = vmatpush3.xpose.msra.mxu1 %v33899_v14  ;;  %v30830_v11 = vpop.f32.mrf.mxu1 }
 0x17f   :  { %31311 = vmatprep.subr.mxu0 %v32687_v0  ;;  %v5027_v23 = vadd.f32 %v5026_v60, %v4953_v39  ;;  %14730 = vmax.xlane.f32.xlu1 %v14729_v35  ;;  %v13313_v43 = vsel %vm203_vm1, %v136_v12, 0 }
 0x180   :  { %31304 = vmatmul.mubr.f32.vlgmr.msra.gmra.mxu0 %v33922_v32  ;;  %v5100_v45 = vpop.f32.mrf.mxu0  ;;  %31308 = vmatprep.mubr.msk.f32.mxu1 %vm32688_vm0, %v32687_v0  ;;  %v5172_v53 = vpop.f32.mrf.mxu1  ;;  %v34028_v32 = vsub.f32 %v12864_v52, %v34011_v6  ;;  %v34071_v60 = vand.u32 4294901760, %v13313_v43 }
 0x181   :  { %31312 = vmatpush3.xpose.msra.mxu0 %v12071_v5  ;;  %v5101_v49 = vadd.f32 %v5100_v45, %v5027_v23  ;;  %31309 = vmatmul.mubr.f32.vlgmr.msra.gmra.mxu1 %v12030_v55  ;;  %v34034_v55 = vsub.f32 %v12861_v2, %v34017_v56 }
 0x182   :  { %31316 = vmatprep.subr.mxu1 %v32687_v0  ;;  %v30835_v48 = vpop.f32.mrf.mxu0  ;;  %31313 = vmatprep.mubr.msk.f32.mxu0 %vm32688_vm0, %v32687_v0  ;;  %v30840_v57 = vpop.f32.mrf.mxu1  ;;  %v34089_v44 = vsub.f32 %v13313_v43, %v34071_v60 }
 0x183   :  { %31317 = vmatpush3.xpose.msra.mxu1 %v33899_v14  ;;  %v5173_v40 = vadd.f32 %v5172_v53, %v5101_v49  ;;  %31321 = vmatprep.subr.mxu0 %v32687_v0  ;;  %v12934_v29 = vand.u32 4294901760, %v34034_v55  ;;  %v169_v53 = vld [vmem:[#allocation5 + $0xf0] sm:$0xff] }
 0x184   :  { %31314 = vmatmul.mubr.f32.vlgmr.msra.gmra.mxu0 %v33905_v25  ;;  %v5254_v5 = vpop.f32.mrf.mxu0  ;;  %31318 = vmatprep.mubr.msk.f32.mxu1 %vm32688_vm0, %v32687_v0  ;;  %v5330_v14 = vpop.f32.mrf.mxu1  ;;  %v13386_v31 = vand.u32 4294901760, %v34089_v44 }
 0x185   :  { %31322 = vmatpush3.xpose.msra.mxu0 %v33951_v36  ;;  %31326 = vmatprep.subr.mxu1 %v32687_v0  ;;  %v5331_v41 = vadd.f32 %v5330_v14, %v5254_v5  ;;  %v34040_v63 = vsel %vm14668_vm2, -1e+09, %v5173_v40  ;;  %v12935_v39 = vsub.f32 %v34034_v55, %v12934_v29  ;;  %v13768_v14 = vsel %vm203_vm1, %v169_v53, 0 }
 0x186   :  { %31319 = vmatmul.mubr.f32.vlgmr.msra.gmra.mxu1 %v33905_v25  ;;  %v30845_v62 = vpop.f32.mrf.mxu0  ;;  %31323 = vmatprep.mubr.msk.f32.mxu0 %vm32688_vm0, %v32687_v0  ;;  %v30850_v13 = vpop.f32.mrf.mxu1  ;;  %v12975_v25 = vand.u32 4294901760, %v34028_v32  ;;  %v14732_v50 = vsel %vm203_vm1, %v34040_v63, -inf }
 0x187   :  { %31327 = vmatpush3.xpose.msra.mxu1 %v12525_v51  ;;  %31331 = vmatprep.subr.mxu0 %v32687_v0 }
 0x188   :  { %31324 = vmatmul.mubr.f32.vlgmr.msra.gmra.mxu0 %v12484_v8  ;;  %v5404_v15 = vpop.f32.mrf.mxu0  ;;  %31328 = vmatprep.mubr.msk.f32.mxu1 %vm32688_vm0, %v32687_v0  ;;  %v5478_v17 = vpop.f32.mrf.mxu1  ;;  %v12976_v61 = vsub.f32 %v34028_v32, %v12975_v25 }
 0x189   :  { %31332 = vmatpush3.xpose.msra.mxu0 %v33971_v10  ;;  %v5405_v42 = vadd.f32 %v5404_v15, %v5331_v41  ;;  %31336 = vmatprep.subr.mxu1 %v32687_v0  ;;  %v34083_v10 = vsub.f32 %v13316_v4, %v34063_v28  ;;  %v13387_v4 = vsub.f32 %v34089_v44, %v13386_v31 }
 0x18a   :  { %31329 = vmatmul.mubr.f32.vlgmr.msra.gmra.mxu1 %v33959_v27  ;;  %v30855_v7 = vpop.f32.mrf.mxu0  ;;  %31333 = vmatprep.mubr.msk.f32.mxu0 %vm32688_vm0, %v32687_v0  ;;  %v30860_v19 = vpop.f32.mrf.mxu1  ;;  %v12977_v23 = vand.u32 4294901760, %v12976_v61 }
 0x18b   :  { %31337 = vmatpush3.xpose.msra.mxu1 %v33951_v36  ;;  %v5479_v16 = vadd.f32 %v5478_v17, %v5405_v42  ;;  %31341 = vmatprep.subr.mxu0 %v32687_v0  ;;  %v13427_v51 = vand.u32 4294901760, %v34083_v10  ;;  %v34124_v7 = vand.u32 4294901760, %v13768_v14 }
 0x18c   :  { %14733 = vmax.xlane.f32.xlu1 %v14732_v50  ;;  %v5552_v21 = vpop.f32.mrf.mxu0  ;;  %31334 = vmatmul.mubr.f32.vlgmr.msra.gmra.mxu0 %v33977_v26  ;;  %v5624_v35 = vpop.f32.mrf.mxu1  ;;  %v12936_v26 = vand.u32 4294901760, %v12935_v39 }
 0x18d   :  { %31338 = vmatprep.mubr.msk.f32.mxu1 %vm32688_vm0, %v32687_v0  ;;  %v5553_v47 = vadd.f32 %v5552_v21, %v5479_v16  ;;  %31342 = vmatpush3.xpose.msra.mxu0 %v12523_v30  ;;  %v105_v30 = vld [vmem:[#allocation2 + $0xf0] sm:$0xff]  ;;  %v13428_v15 = vsub.f32 %v34083_v10, %v13427_v51 }
 0x18e   :  { %31339 = vmatmul.mubr.f32.vlgmr.msra.gmra.mxu1 %v12482_v33  ;;  %v30865_v52 = vpop.f32.mrf.mxu0  ;;  %31346 = vmatprep.subr.mxu1 %v32687_v0  ;;  %v30870_v2 = vpop.f32.mrf.mxu1  ;;  %v137_v48 = vmul.f32 0.35355338, %v105_v30 }
 0x18f   :  { %31343 = vmatprep.mubr.msk.f32.mxu0 %vm32688_vm0, %v32687_v0  ;;  %v5625_v18 = vadd.f32 %v5624_v35, %v5553_v47  ;;  %31347 = vmatpush3.xpose.msra.mxu1 %v33951_v36  ;;  %v13429_v21 = vand.u32 4294901760, %v13428_v15 }
 0x190   :  { %31351 = vmatprep.subr.mxu0 %v32687_v0  ;;  %v5706_v11 = vpop.f32.mrf.mxu0  ;;  %31344 = vmatmul.mubr.f32.vlgmr.msra.gmra.mxu0 %v33959_v27  ;;  %v5782_v33 = vpop.f32.mrf.mxu1  ;;  %v13765_v3 = vsel %vm203_vm1, %v137_v48, 0 }
 0x191   :  { %31348 = vmatprep.mubr.msk.f32.mxu1 %vm32688_vm0, %v32687_v0  ;;  %31352 = vmatpush3.xpose.msra.mxu0 %v34011_v6  ;;  %v5783_v36 = vadd.f32 %v5782_v33, %v5706_v11  ;;  %v34098_v49 = vsel %vm14668_vm2, -1e+09, %v5625_v18  ;;  %v34130_v16 = vand.u32 4294901760, %v13765_v3 }
 0x192   :  { %31356 = vmatprep.subr.mxu1 %v32687_v0  ;;  %v30875_v45 = vpop.f32.mrf.mxu0  ;;  %31349 = vmatmul.mubr.f32.vlgmr.msra.gmra.mxu1 %v33959_v27  ;;  %v30880_v46 = vpop.f32.mrf.mxu1  ;;  %v14735_v5 = vsel %vm203_vm1, %v34098_v49, -inf }
 0x193   :  { %31353 = vmatprep.mubr.msk.f32.mxu0 %vm32688_vm0, %v32687_v0  ;;  %31357 = vmatpush3.xpose.msra.mxu1 %v12977_v23  ;;  %v34147_v39 = vsub.f32 %v13765_v3, %v34130_v16  ;;  %v170_v23 = vld [vmem:[#allocation5 + $0xf8] sm:$0xff] }
 0x194   :  { %31361 = vmatprep.subr.mxu0 %v32687_v0  ;;  %v5856_v40 = vpop.f32.mrf.mxu0  ;;  %31354 = vmatmul.mubr.f32.vlgmr.msra.gmra.mxu0 %v12936_v26  ;;  %v5930_v57 = vpop.f32.mrf.mxu1  ;;  %v14220_v48 = vsel %vm203_vm1, %v170_v23, 0 }
 0x195   :  { %31358 = vmatprep.mubr.msk.f32.mxu1 %vm32688_vm0, %v32687_v0  ;;  %v5857_v27 = vadd.f32 %v5856_v40, %v5783_v36  ;;  %31362 = vmatpush3.xpose.msra.mxu0 %v34028_v32  ;;  %v13838_v45 = vand.u32 4294901760, %v34147_v39 }
 0x196   :  { %31366 = vmatprep.subr.mxu1 %v32687_v0  ;;  %v30885_v8 = vpop.f32.mrf.mxu0  ;;  %31359 = vmatmul.mubr.f32.vlgmr.msra.gmra.mxu1 %v34017_v56  ;;  %v30890_v62 = vpop.f32.mrf.mxu1 }
 0x197   :  { %31363 = vmatprep.mubr.msk.f32.mxu0 %vm32688_vm0, %v32687_v0  ;;  %v5931_v41 = vadd.f32 %v5930_v57, %v5857_v27  ;;  %31367 = vmatpush3.xpose.msra.mxu1 %v34011_v6  ;;  %v13839_v3 = vsub.f32 %v34147_v39, %v13838_v45 }
 0x198   :  { %31371 = vmatprep.subr.mxu0 %v32687_v0  ;;  %v6004_v12 = vpop.f32.mrf.mxu0  ;;  %v14704_v13 = vpop.xlane.xlu0 %14703  ;;  %14736 = vmax.xlane.f32.xlu1 %v14735_v5 }
 0x199   :  { %31364 = vmatmul.mubr.f32.vlgmr.msra.gmra.mxu0 %v34034_v55  ;;  %v6005_v50 = vadd.f32 %v6004_v12, %v5931_v41  ;;  %v14798_v42 = vsub.f32 %v33491_v54, %v14704_v13  ;;  %v6076_v17 = vpop.f32.mrf.mxu1  ;;  %31368 = vmatprep.mubr.msk.f32.mxu1 %vm32688_vm0, %v32687_v0  ;;  %v34141_v55 = vsub.f32 %v13768_v14, %v34124_v7  ;;  %v34183_v12 = vand.u32 4294901760, %v14220_v48 }
 0x19a   :  { %31372 = vmatpush3.xpose.msra.mxu0 %v12975_v25  ;;  %v30895_v43 = vpop.f32.mrf.mxu0  ;;  %31369 = vmatmul.mubr.f32.vlgmr.msra.gmra.mxu1 %v12934_v29  ;;  %v13388_v25 = vand.u32 4294901760, %v13387_v4  ;;  %v106_v29 = vld [vmem:[#allocation2 + $0xf8] sm:$0xff] }
 0x19b   :  { %31376 = vmatprep.subr.mxu1 %v32687_v0  ;;  %v6077_v54 = vadd.f32 %v6076_v17, %v6005_v50  ;;  %v30900_v19 = vpop.f32.mrf.mxu1  ;;  %31373 = vmatprep.mubr.msk.f32.mxu0 %vm32688_vm0, %v32687_v0  ;;  %v14830_v32 = vmul.f32 1.442695, %v14798_v42  ;;  %v138_v11 = vmul.f32 0.35355338, %v106_v29  ;;  %v13879_v26 = vand.u32 4294901760, %v34141_v55 }
 0x19c   :  { %31377 = vmatpush3.xpose.msra.mxu1 %v34011_v6  ;;  %v6158_v61 = vpop.f32.mrf.mxu0  ;;  %31381 = vmatprep.subr.mxu0 %v32687_v0  ;;  %v34200_v4 = vsub.f32 %v14220_v48, %v34183_v12 }
 0x19d   :  { %31374 = vmatmul.mubr.f32.vlgmr.msra.gmra.mxu0 %v34017_v56  ;;  %v6234_v47 = vpop.f32.mrf.mxu1  ;;  %31378 = vmatprep.mubr.msk.f32.mxu1 %vm32688_vm0, %v32687_v0  ;;  %v34153_v18 = vsel %vm14668_vm2, -1e+09, %v6077_v54  ;;  %32445 = vpow2.f32 %v14830_v32  ;;  %v14217_v27 = vsel %vm203_vm1, %v138_v11, 0  ;;  %v13880_v14 = vsub.f32 %v34141_v55, %v13879_v26 }
 0x19e   :  { %31382 = vmatpush3.xpose.msra.mxu0 %v34063_v28  ;;  %v6235_v6 = vadd.f32 %v6234_v47, %v6158_v61  ;;  %v30905_v35 = vpop.f32.mrf.mxu0  ;;  %31386 = vmatprep.subr.mxu1 %v32687_v0  ;;  %v14738_v33 = vsel %vm203_vm1, %v34153_v18, -inf  ;;  %v34189_v15 = vand.u32 4294901760, %v14217_v27 }
 0x19f   :  { %31379 = vmatmul.mubr.f32.vlgmr.msra.gmra.mxu1 %v34017_v56  ;;  %v30910_v52 = vpop.f32.mrf.mxu1  ;;  %31383 = vmatprep.mubr.msk.f32.mxu0 %vm32688_vm0, %v32687_v0  ;;  %v13881_v42 = vand.u32 4294901760, %v13880_v14 }
 0x1a0   :  { %31387 = vmatpush3.xpose.msra.mxu1 %v13429_v21  ;;  %v6308_v2 = vpop.f32.mrf.mxu0  ;;  %31391 = vmatprep.subr.mxu0 %v32687_v0  ;;  %v34205_v43 = vsub.f32 %v14217_v27, %v34189_v15 }
 0x1a1   :  { %31384 = vmatmul.mubr.f32.vlgmr.msra.gmra.mxu0 %v13388_v25  ;;  %v6309_v30 = vadd.f32 %v6308_v2, %v6235_v6  ;;  %v6382_v56 = vpop.f32.mrf.mxu1  ;;  %31388 = vmatprep.mubr.msk.f32.mxu1 %vm32688_vm0, %v32687_v0  ;;  %v14331_v25 = vand.u32 4294901760, %v34200_v4 }
 0x1a2   :  { %31392 = vmatpush3.xpose.msra.mxu0 %v34083_v10  ;;  %v30915_v36 = vpop.f32.mrf.mxu0  ;;  %31396 = vmatprep.subr.mxu1 %v32687_v0  ;;  %v14290_v35 = vand.u32 4294901760, %v34205_v43 }
 0x1a3   :  { %31389 = vmatmul.mubr.f32.vlgmr.msra.gmra.mxu1 %v34071_v60  ;;  %v6383_v46 = vadd.f32 %v6382_v56, %v6309_v30  ;;  %v30920_v53 = vpop.f32.mrf.mxu1  ;;  %31393 = vmatprep.mubr.msk.f32.mxu0 %vm32688_vm0, %v32687_v0  ;;  %v14332_v36 = vsub.f32 %v34200_v4, %v14331_v25 }
 0x1a4   :  { %31397 = vmatpush3.xpose.msra.mxu1 %v34063_v28  ;;  %v6456_v40 = vpop.f32.mrf.mxu0  ;;  %31401 = vmatprep.subr.mxu0 %v32687_v0  ;;  %v14707_v5 = vpop.xlane.xlu0 %14706  ;;  %v14291_v53 = vsub.f32 %v34205_v43, %v14290_v35 }
 0x1a5   :  { %14739 = vmax.xlane.f32.xlu1 %v14738_v33  ;;  %v6457_v57 = vadd.f32 %v6456_v40, %v6383_v46  ;;  %v6528_v8 = vpop.f32.mrf.mxu1  ;;  %31394 = vmatmul.mubr.f32.vlgmr.msra.gmra.mxu0 %v34089_v44  ;;  %v14799_v41 = vsub.f32 %v33545_v24, %v14707_v5 }
 0x1a6   :  { %31398 = vmatprep.mubr.msk.f32.mxu1 %vm32688_vm0, %v32687_v0  ;;  %v30925_v62 = vpop.f32.mrf.mxu0  ;;  %31402 = vmatpush3.xpose.msra.mxu0 %v13427_v51  ;;  %v13840_v51 = vand.u32 4294901760, %v13839_v3 }
 0x1a7   :  { %31399 = vmatmul.mubr.f32.vlgmr.msra.gmra.mxu1 %v13386_v31  ;;  %v30930_v13 = vpop.f32.mrf.mxu1  ;;  %31406 = vmatprep.subr.mxu1 %v32687_v0  ;;  %v6529_v24 = vadd.f32 %v6528_v8, %v6457_v57  ;;  %v14832_v44 = vmul.f32 1.442695, %v14799_v41 }
 0x1a8   :  { %31403 = vmatprep.mubr.msk.f32.mxu0 %vm32688_vm0, %v32687_v0  ;;  %v6610_v50 = vpop.f32.mrf.mxu0  ;;  %31407 = vmatpush3.xpose.msra.mxu1 %v34063_v28 }
 0x1a9   :  { %31411 = vmatprep.subr.mxu0 %v32687_v0  ;;  %v6686_v10 = vpop.f32.mrf.mxu1  ;;  %31404 = vmatmul.mubr.f32.vlgmr.msra.gmra.mxu0 %v34071_v60  ;;  %v34212_v54 = vsel %vm14668_vm2, -1e+09, %v6529_v24  ;;  %32447 = vpow2.f32 %v14832_v44 }
 0x1aa   :  { %31408 = vmatprep.mubr.msk.f32.mxu1 %vm32688_vm0, %v32687_v0  ;;  %v6687_v31 = vadd.f32 %v6686_v10, %v6610_v50  ;;  %v30935_v17 = vpop.f32.mrf.mxu0  ;;  %31412 = vmatpush3.xpose.msra.mxu0 %v34124_v7  ;;  %v34215_v32 = vpop.eup %32445  ;;  %v14741_v47 = vsel %vm203_vm1, %v34212_v54, -inf }
 0x1ab   :  { %31416 = vmatprep.subr.mxu1 %v32687_v0  ;;  %v30940_v28 = vpop.f32.mrf.mxu1  ;;  %31409 = vmatmul.mubr.f32.vlgmr.msra.gmra.mxu1 %v34071_v60  ;;  %v14894_v2 = vsel %vm203_vm1, %v34215_v32, 0.0 }
 0x1ac   :  { %31413 = vmatprep.mubr.msk.f32.mxu0 %vm32688_vm0, %v32687_v0  ;;  %v6760_v19 = vpop.f32.mrf.mxu0  ;;  %31417 = vmatpush3.xpose.msra.mxu1 %v13881_v42 }
 0x1ad   :  { %31421 = vmatprep.subr.mxu0 %v32687_v0  ;;  %v6761_v21 = vadd.f32 %v6760_v19, %v6687_v31  ;;  %v6834_v61 = vpop.f32.mrf.mxu1  ;;  %31414 = vmatmul.mubr.f32.vlgmr.msra.gmra.mxu0 %v13840_v51 }
 0x1ae   :  { %31418 = vmatprep.mubr.msk.f32.mxu1 %vm32688_vm0, %v32687_v0  ;;  %v30945_v60 = vpop.f32.mrf.mxu0  ;;  %31422 = vmatpush3.xpose.msra.mxu0 %v34141_v55  ;;  %v14333_v55 = vand.u32 4294901760, %v14332_v36 }
 0x1af   :  { %31426 = vmatprep.subr.mxu1 %v32687_v0  ;;  %v6835_v29 = vadd.f32 %v6834_v61, %v6761_v21  ;;  %v30950_v6 = vpop.f32.mrf.mxu1  ;;  %31419 = vmatmul.mubr.f32.vlgmr.msra.gmra.mxu1 %v34130_v16 }
 0x1b0   :  { %31423 = vmatprep.mubr.msk.f32.mxu0 %vm32688_vm0, %v32687_v0  ;;  %v6908_v52 = vpop.f32.mrf.mxu0  ;;  %31427 = vmatpush3.xpose.msra.mxu1 %v34124_v7 }
 0x1b1   :  { %31431 = vmatprep.subr.mxu0 %v32687_v0  ;;  %v6909_v23 = vadd.f32 %v6908_v52, %v6835_v29  ;;  %v14710_v11 = vpop.xlane.xlu1 %14709  ;;  %v6980_v30 = vpop.f32.mrf.mxu1  ;;  %14742 = vmax.xlane.f32.xlu1 %v14741_v47  ;;  %v171_v52 = vld [vmem:[#allocation7] sm:$0xff] }
 0x1b2   :  { %31424 = vmatmul.mubr.f32.vlgmr.msra.gmra.mxu0 %v34147_v39  ;;  %v14800_v56 = vsub.f32 %v33599_v59, %v14710_v11  ;;  %v30955_v33 = vpop.f32.mrf.mxu0  ;;  %31428 = vmatprep.mubr.msk.f32.mxu1 %vm32688_vm0, %v32687_v0  ;;  %v14292_v39 = vand.u32 4294901760, %v14291_v53  ;;  %v34307_v11 = vld [vmem:[#allocation8 + $0x8] sm:$0xff] }
 0x1b3   :  { %31432 = vmatpush3.xpose.msra.mxu0 %v13879_v26  ;;  %v30960_v46 = vpop.f32.mrf.mxu1  ;;  %14895 = vadd.xlane.f32.xlu0 %v14894_v2  ;;  %v6981_v40 = vadd.f32 %v6980_v30, %v6909_v23  ;;  %v34309_v30 = vand.u32 4294901760, %v171_v52  ;;  %vm14669_vm3 = vcmp.eq.f32.partialorder %v34307_v11, 0.0 }
 0x1b4   :  { %31429 = vmatmul.mubr.f32.vlgmr.msra.gmra.mxu1 %v13838_v45  ;;  %v14834_v59 = vmul.f32 1.442695, %v14800_v56  ;;  %v7062_v48 = vpop.f32.mrf.mxu0  ;;  %31436 = vmatprep.subr.mxu1 %v32687_v0 }
 0x1b5   :  { %31433 = vmatprep.mubr.msk.f32.mxu0 %vm32688_vm0, %v32687_v0  ;;  %v7138_v27 = vpop.f32.mrf.mxu1  ;;  %31437 = vmatpush3.xpose.msra.mxu1 %v34124_v7  ;;  %v34261_v7 = vsel %vm14668_vm2, -1e+09, %v6981_v40 }
 0x1b6   :  { %31441 = vmatprep.subr.mxu0 %v32687_v0  ;;  %32449 = vpow2.f32 %v14834_v59  ;;  %v7139_v26 = vadd.f32 %v7138_v27, %v7062_v48  ;;  %v30965_v57 = vpop.f32.mrf.mxu0  ;;  %31434 = vmatmul.mubr.f32.vlgmr.msra.gmra.mxu0 %v34130_v16  ;;  %v34264_v62 = vpop.eup %32447  ;;  %v14744_v13 = vsel %vm203_vm1, %v34261_v7, -inf }
 0x1b7   :  { %31438 = vmatprep.mubr.msk.f32.mxu1 %vm32688_vm0, %v32687_v0  ;;  %v30970_v45 = vpop.f32.mrf.mxu1  ;;  %31442 = vmatpush3.xpose.msra.mxu0 %v34183_v12  ;;  %v14897_v10 = vsel %vm203_vm1, %v34264_v62, 0.0 }
 0x1b8   :  { %31446 = vmatprep.subr.mxu1 %v32687_v0  ;;  %v7212_v5 = vpop.f32.mrf.mxu0  ;;  %31439 = vmatmul.mubr.f32.vlgmr.msra.gmra.mxu1 %v34130_v16 }
 0x1b9   :  { %31443 = vmatprep.mubr.msk.f32.mxu0 %vm32688_vm0, %v32687_v0  ;;  %v7213_v8 = vadd.f32 %v7212_v5, %v7139_v26  ;;  %v7286_v14 = vpop.f32.mrf.mxu1  ;;  %31447 = vmatpush3.xpose.msra.mxu1 %v14333_v55 }
 0x1ba   :  { %31451 = vmatprep.subr.mxu0 %v32687_v0  ;;  %v30975_v41 = vpop.f32.mrf.mxu0  ;;  %31444 = vmatmul.mubr.f32.vlgmr.msra.gmra.mxu0 %v14292_v39 }
 0x1bb   :  { %31448 = vmatprep.mubr.msk.f32.mxu1 %vm32688_vm0, %v32687_v0  ;;  %v7287_v16 = vadd.f32 %v7286_v14, %v7213_v8  ;;  %v30980_v3 = vpop.f32.mrf.mxu1  ;;  %31452 = vmatpush3.xpose.msra.mxu0 %v34200_v4 }
 0x1bc   :  { %31456 = vmatprep.subr.mxu1 %v32687_v0  ;;  %v7360_v24 = vpop.f32.mrf.mxu0  ;;  %31449 = vmatmul.mubr.f32.vlgmr.msra.gmra.mxu1 %v34189_v15 }
 0x1bd   :  { %31453 = vmatprep.mubr.msk.f32.mxu0 %vm32688_vm0, %v32687_v0  ;;  %v7361_v50 = vadd.f32 %v7360_v24, %v7287_v16  ;;  %v7432_v42 = vpop.f32.mrf.mxu1  ;;  %31457 = vmatpush3.xpose.msra.mxu1 %v34183_v12  ;;  %v14713_v44 = vpop.xlane.xlu1 %14712 }
 0x1be   :  { %31461 = vmatprep.subr.mxu0 %v32687_v0  ;;  %v30985_v51 = vpop.f32.mrf.mxu0  ;;  %14745 = vmax.xlane.f32.xlu1 %v14744_v13  ;;  %v14801_v31 = vsub.f32 %v33654_v1, %v14713_v44 }
 0x1bf   :  { %31454 = vmatmul.mubr.f32.vlgmr.msra.gmra.mxu0 %v34205_v43  ;;  %v7433_v17 = vadd.f32 %v7432_v42, %v7361_v50  ;;  %v30990_v28 = vpop.f32.mrf.mxu1  ;;  %31458 = vmatprep.mubr.msk.f32.mxu1 %vm32688_vm0, %v32687_v0 }
 0x1c0   :  { %31462 = vmatpush3.xpose.msra.mxu0 %v14331_v25  ;;  %v7514_v19 = vpop.f32.mrf.mxu0  ;;  %14898 = vadd.xlane.f32.xlu0 %v14897_v10  ;;  %v14836_v21 = vmul.f32 1.442695, %v14801_v31 }
 0x1c1   :  { %31459 = vmatmul.mubr.f32.vlgmr.msra.gmra.mxu1 %v14290_v35  ;;  %v7590_v61 = vpop.f32.mrf.mxu1  ;;  %v34289_v60 = vsel %vm14668_vm2, -1e+09, %v7433_v17  ;;  %31466 = vmatprep.subr.mxu1 %v32687_v0 }
 0x1c2   :  { %31463 = vmatprep.mubr.msk.f32.mxu0 %vm32688_vm0, %v32687_v0  ;;  %v7591_v1 = vadd.f32 %v7590_v61, %v7514_v19  ;;  %v30995_v47 = vpop.f32.mrf.mxu0  ;;  %v14747_v4 = vsel %vm203_vm1, %v34289_v60, -inf  ;;  %31467 = vmatpush3.xpose.msra.mxu1 %v34183_v12  ;;  %32451 = vpow2.f32 %v14836_v21 }
 0x1c3   :  { %v34296_v25 = vpop.eup %32449  ;;  %31464 = vmatmul.mubr.f32.vlgmr.msra.gmra.mxu0 %v34189_v15  ;;  %v31000_v37 = vpop.f32.mrf.mxu1  ;;  %31468 = vmatprep.mubr.msk.f32.mxu1 %vm32688_vm0, %v32687_v0 }
 0x1c4   :  { %14748 = vmax.xlane.f32.xlu1 %v14747_v4  ;;  %v7664_v43 = vpop.f32.mrf.mxu0  ;;  %v14900_v29 = vsel %vm203_vm1, %v34296_v25, 0.0  ;;  %31476 = vmatprep.subr.mxu1 %v32687_v0 }
 0x1c5   :  { %v7665_v6 = vadd.f32 %v7664_v43, %v7591_v1  ;;  %14901 = vadd.xlane.f32.xlu0 %v14900_v29  ;;  %v7738_v35 = vpop.f32.mrf.mxu1  ;;  %31469 = vmatmul.mubr.f32.vlgmr.msra.gmra.mxu1 %v34189_v15  ;;  %v34316_v15 = vsub.f32 %v171_v52, %v34309_v30 }
 0x1c6   :  { %v31005_v12 = vpop.f32.mrf.mxu0  ;;  %31471 = vmatprep.subr.mxu0 %v32687_v0  ;;  %31478 = vmatprep.mubr.msk.f32.mxu1 %vm32688_vm0, %v32687_v0 }
 0x1c7   :  { %v7739_v2 = vadd.f32 %v7738_v35, %v7665_v6  ;;  %v31010_v23 = vpop.f32.mrf.mxu1  ;;  %31473 = vmatprep.mubr.msk.f32.mxu0 %vm32688_vm0, %v32687_v0  ;;  %31472 = vmatpush3.msra.mxu0 %v34309_v30  ;;  %v15166_v27 = vand.u32 4294901760, %v34316_v15 }
 0x1c8   :  { %v7812_v56 = vpop.f32.mrf.mxu0  ;;  %31481 = vmatprep.subr.mxu0 %v32687_v0 }
 0x1c9   :  { %v7813_v33 = vadd.f32 %v7812_v56, %v7739_v2  ;;  %v7884_v36 = vpop.f32.mrf.mxu1  ;;  %v15167_v45 = vsub.f32 %v34316_v15, %v15166_v27 }
 0x1ca   :  { %v14716_v46 = vpop.xlane.xlu0 %14715  ;;  %v31015_v53 = vpop.f32.mrf.mxu0 }
 0x1cb   :  { %v14802_v59 = vsub.f32 %v33707_v9, %v14716_v46  ;;  %v7885_v48 = vadd.f32 %v7884_v36, %v7813_v33  ;;  %v31020_v40 = vpop.f32.mrf.mxu1  ;;  %v15168_v41 = vand.u32 4294901760, %v15167_v45 }
 0x1cc   :  { %v7966_v55 = vpop.f32.mrf.mxu0 }
 0x1cd   :  { %v14838_v26 = vmul.f32 1.442695, %v14802_v59  ;;  %v8042_v57 = vpop.f32.mrf.mxu1  ;;  %v34325_v39 = vsel %vm14669_vm3, -1e+09, %v7885_v48  ;;  %31477 = vmatpush3.msra.mxu1 %v15168_v41 }
 0x1ce   :  { %v8043_v5 = vadd.f32 %v8042_v57, %v7966_v55  ;;  %v31025_v8 = vpop.f32.mrf.mxu0  ;;  %v14750_v9 = vsel %vm203_vm1, %v34325_v39, -inf  ;;  %31486 = vmatprep.subr.mxu1 %v32687_v0 }
 0x1cf   :  { %32453 = vpow2.f32 %v14838_v26  ;;  %v31030_v14 = vpop.f32.mrf.mxu1  ;;  %14751 = vmax.xlane.f32.xlu1 %v14750_v9  ;;  %v34332_v16 = vpop.eup %32451 }
 0x1d0   :  { %v8116_v3 = vpop.f32.mrf.mxu0  ;;  %v14903_v24 = vsel %vm203_vm1, %v34332_v16, 0.0 }
 0x1d1   :  { %v8117_v13 = vadd.f32 %v8116_v3, %v8043_v5  ;;  %v8190_v50 = vpop.f32.mrf.mxu1  ;;  %14904 = vadd.xlane.f32.xlu0 %v14903_v24 }
 0x1d2   :  { %v31035_v42 = vpop.f32.mrf.mxu0 }
 0x1d3   :  { %v8191_v10 = vadd.f32 %v8190_v50, %v8117_v13  ;;  %v31040_v44 = vpop.f32.mrf.mxu1 }
 0x1d4   :  { %v8264_v51 = vpop.f32.mrf.mxu0 }
 0x1d5   :  { %v8265_v31 = vadd.f32 %v8264_v51, %v8191_v10  ;;  %v8336_v17 = vpop.f32.mrf.mxu1 }
 0x1d6   :  { %v31045_v28 = vpop.f32.mrf.mxu0  ;;  %v14719_v19 = vpop.xlane.xlu1 %14718 }
 0x1d7   :  { %v8337_v21 = vadd.f32 %v8336_v17, %v8265_v31  ;;  %v14803_v61 = vsub.f32 %v33763_v38, %v14719_v19  ;;  %v31050_v1 = vpop.f32.mrf.mxu1 }
 0x1d8   :  { %v8418_v47 = vpop.f32.mrf.mxu0 }
 0x1d9   :  { %v34340_v4 = vsel %vm14669_vm3, -1e+09, %v8337_v21  ;;  %v14840_v37 = vmul.f32 1.442695, %v14803_v61  ;;  %v8494_v43 = vpop.f32.mrf.mxu1 }
 0x1da   :  { %v31055_v29 = vpop.f32.mrf.mxu0  ;;  %v14753_v6 = vsel %vm203_vm1, %v34340_v4, -inf  ;;  %v8495_v35 = vadd.f32 %v8494_v43, %v8418_v47 }
 0x1db   :  { %14754 = vmax.xlane.f32.xlu1 %v14753_v6  ;;  %32455 = vpow2.f32 %v14840_v37  ;;  %v31060_v52 = vpop.f32.mrf.mxu1 }
 0x1dc   :  { %v34344_v12 = vpop.eup %32453  ;;  %v8568_v2 = vpop.f32.mrf.mxu0 }
 0x1dd   :  { %v8569_v38 = vadd.f32 %v8568_v2, %v8495_v35  ;;  %v14906_v23 = vsel %vm203_vm1, %v34344_v12, 0.0  ;;  %v8642_v56 = vpop.f32.mrf.mxu1 }
 0x1de   :  { %14907 = vadd.xlane.f32.xlu0 %v14906_v23  ;;  %v31065_v33 = vpop.f32.mrf.mxu0 }
 0x1df   :  { %v8643_v36 = vadd.f32 %v8642_v56, %v8569_v38  ;;  %v31070_v46 = vpop.f32.mrf.mxu1 }
 0x1e0   :  { %v8716_v53 = vpop.f32.mrf.mxu0 }
 0x1e1   :  { %v8717_v59 = vadd.f32 %v8716_v53, %v8643_v36 }
 0x1e2   :  { %v8788_v48 = vpop.f32.mrf.mxu1  ;;  %v31075_v40 = vpop.f32.mrf.mxu0 }
 0x1e3   :  { %v14722_v55 = vpop.xlane.xlu0 %14721  ;;  %v8789_v26 = vadd.f32 %v8788_v48, %v8717_v59 }
 0x1e4   :  { %v14804_v57 = vsub.f32 %v33818_v22, %v14722_v55  ;;  %v31080_v45 = vpop.f32.mrf.mxu1  ;;  %v8870_v5 = vpop.f32.mrf.mxu0 }
 0x1e5   :  { %v34351_v8 = vsel %vm14669_vm3, -1e+09, %v8789_v26 }
 0x1e6   :  { %v14842_v9 = vmul.f32 1.442695, %v14804_v57  ;;  %v8946_v14 = vpop.f32.mrf.mxu1  ;;  %v31085_v41 = vpop.f32.mrf.mxu0  ;;  %v14756_v3 = vsel %vm203_vm1, %v34351_v8, -inf }
 0x1e7   :  { %v8947_v13 = vadd.f32 %v8946_v14, %v8870_v5  ;;  %14757 = vmax.xlane.f32.xlu1 %v14756_v3 }
 0x1e8   :  { %32457 = vpow2.f32 %v14842_v9  ;;  %v31090_v24 = vpop.f32.mrf.mxu1  ;;  %v34355_v50 = vpop.eup %32455 }
 0x1e9   :  { %v9020_v42 = vpop.f32.mrf.mxu0  ;;  %v14909_v10 = vsel %vm203_vm1, %v34355_v50, 0.0 }
 0x1ea   :  { %v9021_v22 = vadd.f32 %v9020_v42, %v8947_v13  ;;  %v9094_v44 = vpop.f32.mrf.mxu1  ;;  %14910 = vadd.xlane.f32.xlu0 %v14909_v10 }
 0x1eb   :  { %v31095_v51 = vpop.f32.mrf.mxu0 }
 0x1ec   :  { %v9095_v31 = vadd.f32 %v9094_v44, %v9021_v22  ;;  %v31100_v17 = vpop.f32.mrf.mxu1 }
 0x1ed   :  { %v9168_v28 = vpop.f32.mrf.mxu0 }
 0x1ee   :  { %v9169_v19 = vadd.f32 %v9168_v28, %v9095_v31  ;;  %v9240_v21 = vpop.f32.mrf.mxu1 }
 0x1ef   :  { %v31105_v61 = vpop.f32.mrf.mxu0  ;;  %v14725_v1 = vpop.xlane.xlu1 %14724 }
 0x1f0   :  { %v9241_v47 = vadd.f32 %v9240_v21, %v9169_v19  ;;  %v14805_v37 = vsub.f32 %v33874_v58, %v14725_v1  ;;  %v31110_v43 = vpop.f32.mrf.mxu1 }
 0x1f1   :  { %v9322_v29 = vpop.f32.mrf.mxu0 }
 0x1f2   :  { %v34362_v6 = vsel %vm14669_vm3, -1e+09, %v9241_v47  ;;  %v14844_v35 = vmul.f32 1.442695, %v14805_v37  ;;  %v9398_v52 = vpop.f32.mrf.mxu1 }
 0x1f3   :  { %v31115_v2 = vpop.f32.mrf.mxu0  ;;  %v14759_v38 = vsel %vm203_vm1, %v34362_v6, -inf  ;;  %v9399_v23 = vadd.f32 %v9398_v52, %v9322_v29 }
 0x1f4   :  { %14760 = vmax.xlane.f32.xlu1 %v14759_v38  ;;  %32459 = vpow2.f32 %v14844_v35  ;;  %v31120_v33 = vpop.f32.mrf.mxu1 }
 0x1f5   :  { %v34366_v56 = vpop.eup %32457  ;;  %v9472_v36 = vpop.f32.mrf.mxu0 }
 0x1f6   :  { %v9473_v58 = vadd.f32 %v9472_v36, %v9399_v23  ;;  %v14912_v46 = vsel %vm203_vm1, %v34366_v56, 0.0  ;;  %v9546_v53 = vpop.f32.mrf.mxu1 }
 0x1f7   :  { %14913 = vadd.xlane.f32.xlu0 %v14912_v46  ;;  %v31125_v59 = vpop.f32.mrf.mxu0 }
 0x1f8   :  { %v9547_v48 = vadd.f32 %v9546_v53, %v9473_v58  ;;  %v31130_v40 = vpop.f32.mrf.mxu1 }
 0x1f9   :  { %v9620_v55 = vpop.f32.mrf.mxu0 }
 0x1fa   :  { %v9621_v26 = vadd.f32 %v9620_v55, %v9547_v48 }
 0x1fb   :  { %v9692_v57 = vpop.f32.mrf.mxu1  ;;  %v31135_v45 = vpop.f32.mrf.mxu0 }
 0x1fc   :  { %v14728_v5 = vpop.xlane.xlu1 %14727  ;;  %v9693_v9 = vadd.f32 %v9692_v57, %v9621_v26 }
 0x1fd   :  { %v14806_v14 = vsub.f32 %v33928_v34, %v14728_v5  ;;  %v31140_v41 = vpop.f32.mrf.mxu1  ;;  %v9774_v3 = vpop.f32.mrf.mxu0 }
 0x1fe   :  { %v34373_v13 = vsel %vm14669_vm3, -1e+09, %v9693_v9 }
 0x1ff   :  { %v14846_v24 = vmul.f32 1.442695, %v14806_v14  ;;  %v9850_v42 = vpop.f32.mrf.mxu1  ;;  %v31145_v22 = vpop.f32.mrf.mxu0  ;;  %v14762_v10 = vsel %vm203_vm1, %v34373_v13, -inf }
 0x200   :  { %v9851_v44 = vadd.f32 %v9850_v42, %v9774_v3  ;;  %14763 = vmax.xlane.f32.xlu1 %v14762_v10 }
 0x201   :  { %32461 = vpow2.f32 %v14846_v24  ;;  %v31150_v51 = vpop.f32.mrf.mxu1  ;;  %v34377_v31 = vpop.eup %32459 }
 0x202   :  { %v9924_v17 = vpop.f32.mrf.mxu0  ;;  %v14915_v28 = vsel %vm203_vm1, %v34377_v31, 0.0 }
 0x203   :  { %v9925_v34 = vadd.f32 %v9924_v17, %v9851_v44  ;;  %v9998_v19 = vpop.f32.mrf.mxu1  ;;  %14916 = vadd.xlane.f32.xlu0 %v14915_v28 }
 0x204   :  { %v31155_v21 = vpop.f32.mrf.mxu0 }
 0x205   :  { %v9999_v61 = vadd.f32 %v9998_v19, %v9925_v34  ;;  %v31160_v1 = vpop.f32.mrf.mxu1 }
 0x206   :  { %v10072_v47 = vpop.f32.mrf.mxu0 }
 0x207   :  { %v10073_v37 = vadd.f32 %v10072_v47, %v9999_v61  ;;  %v10144_v43 = vpop.f32.mrf.mxu1 }
 0x208   :  { %v31165_v29 = vpop.f32.mrf.mxu0  ;;  %v14731_v35 = vpop.xlane.xlu1 %14730 }
 0x209   :  { %v10145_v52 = vadd.f32 %v10144_v43, %v10073_v37  ;;  %v14807_v2 = vsub.f32 %v33986_v20, %v14731_v35  ;;  %v31170_v38 = vpop.f32.mrf.mxu1 }
 0x20a   :  { %v10226_v23 = vpop.f32.mrf.mxu0 }
 0x20b   :  { %v34384_v33 = vsel %vm14669_vm3, -1e+09, %v10145_v52  ;;  %v14848_v36 = vmul.f32 1.442695, %v14807_v2  ;;  %v10302_v58 = vpop.f32.mrf.mxu1 }
 0x20c   :  { %v31175_v46 = vpop.f32.mrf.mxu0  ;;  %v14765_v53 = vsel %vm203_vm1, %v34384_v33, -inf  ;;  %v10303_v59 = vadd.f32 %v10302_v58, %v10226_v23 }
 0x20d   :  { %14766 = vmax.xlane.f32.xlu1 %v14765_v53  ;;  %32463 = vpow2.f32 %v14848_v36  ;;  %v31180_v40 = vpop.f32.mrf.mxu1 }
 0x20e   :  { %v34388_v48 = vpop.eup %32461  ;;  %v10376_v55 = vpop.f32.mrf.mxu0 }
 0x20f   :  { %v10377_v20 = vadd.f32 %v10376_v55, %v10303_v59  ;;  %v14918_v26 = vsel %vm203_vm1, %v34388_v48, 0.0  ;;  %v10450_v57 = vpop.f32.mrf.mxu1 }
 0x210   :  { %14919 = vadd.xlane.f32.xlu0 %v14918_v26  ;;  %v31185_v45 = vpop.f32.mrf.mxu0 }
 0x211   :  { %v10451_v5 = vadd.f32 %v10450_v57, %v10377_v20  ;;  %v31190_v9 = vpop.f32.mrf.mxu1 }
 0x212   :  { %v10524_v14 = vpop.f32.mrf.mxu0 }
 0x213   :  { %v10525_v41 = vadd.f32 %v10524_v14, %v10451_v5 }
 0x214   :  { %v10596_v3 = vpop.f32.mrf.mxu1  ;;  %v31195_v24 = vpop.f32.mrf.mxu0 }
 0x215   :  { %v14734_v42 = vpop.xlane.xlu1 %14733  ;;  %v10597_v22 = vadd.f32 %v10596_v3, %v10525_v41 }
 0x216   :  { %v14808_v10 = vsub.f32 %v34040_v63, %v14734_v42  ;;  %v31200_v44 = vpop.f32.mrf.mxu1  ;;  %v10678_v51 = vpop.f32.mrf.mxu0 }
 0x217   :  { %v34395_v17 = vsel %vm14669_vm3, -1e+09, %v10597_v22 }
 0x218   :  { %v14850_v34 = vmul.f32 1.442695, %v14808_v10  ;;  %v10754_v28 = vpop.f32.mrf.mxu1  ;;  %v31205_v19 = vpop.f32.mrf.mxu0  ;;  %v14768_v21 = vsel %vm203_vm1, %v34395_v17, -inf }
 0x219   :  { %v10755_v61 = vadd.f32 %v10754_v28, %v10678_v51  ;;  %14769 = vmax.xlane.f32.xlu1 %v14768_v21 }
 0x21a   :  { %32465 = vpow2.f32 %v14850_v34  ;;  %v31210_v1 = vpop.f32.mrf.mxu1  ;;  %v34399_v47 = vpop.eup %32463 }
 0x21b   :  { %v10828_v37 = vpop.f32.mrf.mxu0  ;;  %v14921_v43 = vsel %vm203_vm1, %v34399_v47, 0.0 }
 0x21c   :  { %v10829_v63 = vadd.f32 %v10828_v37, %v10755_v61  ;;  %v10902_v29 = vpop.f32.mrf.mxu1  ;;  %14922 = vadd.xlane.f32.xlu0 %v14921_v43 }
 0x21d   :  { %v31215_v35 = vpop.f32.mrf.mxu0 }
 0x21e   :  { %v10903_v52 = vadd.f32 %v10902_v29, %v10829_v63  ;;  %v31220_v2 = vpop.f32.mrf.mxu1 }
 0x21f   :  { %v10976_v38 = vpop.f32.mrf.mxu0 }
 0x220   :  { %v10977_v23 = vadd.f32 %v10976_v38, %v10903_v52  ;;  %v11048_v36 = vpop.f32.mrf.mxu1 }
 0x221   :  { %v31225_v58 = vpop.f32.mrf.mxu0  ;;  %v14737_v46 = vpop.xlane.xlu1 %14736 }
 0x222   :  { %v11049_v53 = vadd.f32 %v11048_v36, %v10977_v23  ;;  %v14809_v59 = vsub.f32 %v34098_v49, %v14737_v46  ;;  %v31230_v40 = vpop.f32.mrf.mxu1 }
 0x223   :  { %v11130_v55 = vpop.f32.mrf.mxu0 }
 0x224   :  { %v34406_v20 = vsel %vm14669_vm3, -1e+09, %v11049_v53  ;;  %v14852_v26 = vmul.f32 1.442695, %v14809_v59  ;;  %v11206_v57 = vpop.f32.mrf.mxu1 }
 0x225   :  { %v31235_v45 = vpop.f32.mrf.mxu0  ;;  %v14771_v5 = vsel %vm203_vm1, %v34406_v20, -inf  ;;  %v11207_v9 = vadd.f32 %v11206_v57, %v11130_v55 }
 0x226   :  { %14772 = vmax.xlane.f32.xlu1 %v14771_v5  ;;  %32467 = vpow2.f32 %v14852_v26  ;;  %v31240_v41 = vpop.f32.mrf.mxu1 }
 0x227   :  { %v34410_v14 = vpop.eup %32465  ;;  %v11280_v3 = vpop.f32.mrf.mxu0 }
 0x228   :  { %v11281_v49 = vadd.f32 %v11280_v3, %v11207_v9  ;;  %v14924_v24 = vsel %vm203_vm1, %v34410_v14, 0.0  ;;  %v11354_v42 = vpop.f32.mrf.mxu1 }
 0x229   :  { %14925 = vadd.xlane.f32.xlu0 %v14924_v24  ;;  %v31245_v22 = vpop.f32.mrf.mxu0 }
 0x22a   :  { %v11355_v10 = vadd.f32 %v11354_v42, %v11281_v49  ;;  %v31250_v44 = vpop.f32.mrf.mxu1 }
 0x22b   :  { %v11428_v51 = vpop.f32.mrf.mxu0 }
 0x22c   :  { %v11429_v34 = vadd.f32 %v11428_v51, %v11355_v10 }
 0x22d   :  { %v11500_v28 = vpop.f32.mrf.mxu1  ;;  %v31255_v19 = vpop.f32.mrf.mxu0 }
 0x22e   :  { %v14740_v21 = vpop.xlane.xlu1 %14739  ;;  %v11501_v61 = vadd.f32 %v11500_v28, %v11429_v34 }
 0x22f   :  { %v14810_v1 = vsub.f32 %v34153_v18, %v14740_v21  ;;  %v31260_v37 = vpop.f32.mrf.mxu1  ;;  %v11582_v63 = vpop.f32.mrf.mxu0 }
 0x230   :  { %v34417_v43 = vsel %vm14669_vm3, -1e+09, %v11501_v61 }
 0x231   :  { %v14854_v29 = vmul.f32 1.442695, %v14810_v1  ;;  %v11658_v35 = vpop.f32.mrf.mxu1  ;;  %v31265_v52 = vpop.f32.mrf.mxu0  ;;  %v14774_v2 = vsel %vm203_vm1, %v34417_v43, -inf }
 0x232   :  { %v11659_v38 = vadd.f32 %v11658_v35, %v11582_v63  ;;  %14775 = vmax.xlane.f32.xlu1 %v14774_v2  ;;  %v172_v2 = vld [vmem:[#allocation7 + $0x8] sm:$0xff] }
 0x233   :  { %32469 = vpow2.f32 %v14854_v29  ;;  %v31270_v23 = vpop.f32.mrf.mxu1  ;;  %v34421_v36 = vpop.eup %32467 }
 0x234   :  { %v11732_v58 = vpop.f32.mrf.mxu0  ;;  %v14927_v46 = vsel %vm203_vm1, %v34421_v36, 0.0 }
 0x235   :  { %v11733_v18 = vadd.f32 %v11732_v58, %v11659_v38  ;;  %v11806_v53 = vpop.f32.mrf.mxu1  ;;  %14928 = vadd.xlane.f32.xlu0 %v14927_v46  ;;  %v34436_v46 = vand.u32 4294901760, %v172_v2 }
 0x236   :  { %v31275_v59 = vpop.f32.mrf.mxu0 }
 0x237   :  { %v11807_v40 = vadd.f32 %v11806_v53, %v11733_v18  ;;  %v31280_v55 = vpop.f32.mrf.mxu1 }
 0x238   :  { %v11880_v26 = vpop.f32.mrf.mxu0 }
 0x239   :  { %v11881_v57 = vadd.f32 %v11880_v26, %v11807_v40  ;;  %v11952_v45 = vpop.f32.mrf.mxu1 }
 0x23a   :  { %v31285_v5 = vpop.f32.mrf.mxu0  ;;  %v14743_v9 = vpop.xlane.xlu1 %14742 }
 0x23b   :  { %v11953_v41 = vadd.f32 %v11952_v45, %v11881_v57  ;;  %v14811_v3 = vsub.f32 %v34212_v54, %v14743_v9  ;;  %v31290_v49 = vpop.f32.mrf.mxu1 }
 0x23c   :  { %v12034_v24 = vpop.f32.mrf.mxu0  ;;  %v14896_v42 = vpop.xlane.xlu0 %14895 }
 0x23d   :  { %v34428_v22 = vsel %vm14669_vm3, -1e+09, %v11953_v41  ;;  %v14856_v10 = vmul.f32 1.442695, %v14811_v3  ;;  %32471 = vrcp.f32 %v14896_v42  ;;  %v12110_v44 = vpop.f32.mrf.mxu1 }
 0x23e   :  { %v31295_v51 = vpop.f32.mrf.mxu0  ;;  %v14777_v34 = vsel %vm203_vm1, %v34428_v22, -inf  ;;  %v12111_v28 = vadd.f32 %v12110_v44, %v12034_v24  ;;  %v34446_v24 = vsub.f32 %v172_v2, %v34436_v46 }
 0x23f   :  { %14778 = vmax.xlane.f32.xlu1 %v14777_v34  ;;  %32473 = vpow2.f32 %v14856_v10  ;;  %v31300_v54 = vpop.f32.mrf.mxu1 }
 0x240   :  { %v34432_v19 = vpop.eup %32469  ;;  %v12184_v21 = vpop.f32.mrf.mxu0 }
 0x241   :  { %v12185_v61 = vadd.f32 %v12184_v21, %v12111_v28  ;;  %v14930_v1 = vsel %vm203_vm1, %v34432_v19, 0.0  ;;  %v12258_v37 = vpop.f32.mrf.mxu1 }
 0x242   :  { %14931 = vadd.xlane.f32.xlu0 %v14930_v1  ;;  %v31305_v63 = vpop.f32.mrf.mxu0 }
 0x243   :  { %v12259_v29 = vadd.f32 %v12258_v37, %v12185_v61  ;;  %v31310_v35 = vpop.f32.mrf.mxu1  ;;  %v15615_v63 = vand.u32 4294901760, %v34446_v24 }
 0x244   :  { %v12332_v52 = vpop.f32.mrf.mxu0 }
 0x245   :  { %v12333_v38 = vadd.f32 %v12332_v52, %v12259_v29 }
 0x246   :  { %v12404_v23 = vpop.f32.mrf.mxu1  ;;  %v31315_v58 = vpop.f32.mrf.mxu0 }
 0x247   :  { %v12405_v18 = vadd.f32 %v12404_v23, %v12333_v38  ;;  %v14746_v53 = vpop.xlane.xlu1 %14745 }
 0x248   :  { %v31320_v59 = vpop.f32.mrf.mxu1  ;;  %v14812_v40 = vsub.f32 %v34261_v7, %v14746_v53  ;;  %v12486_v55 = vpop.f32.mrf.mxu0 }
 0x249   :  { %v34441_v26 = vsel %vm14669_vm3, -1e+09, %v12405_v18  ;;  %v14899_v57 = vpop.xlane.xlu0 %14898  ;;  %v15616_v59 = vsub.f32 %v34446_v24, %v15615_v63 }
 0x24a   :  { %v12562_v45 = vpop.f32.mrf.mxu1  ;;  %v14780_v5 = vsel %vm203_vm1, %v34441_v26, -inf  ;;  %v32472_v9 = vpop.eup %32471  ;;  %v14858_v41 = vmul.f32 1.442695, %v14812_v40  ;;  %32475 = vrcp.f32 %v14899_v57 }
 0x24b   :  { %v12563_v3 = vadd.f32 %v12562_v45, %v12486_v55  ;;  %v31325_v49 = vpop.f32.mrf.mxu0  ;;  %14781 = vmax.xlane.f32.xlu1 %v14780_v5  ;;  %v14991_v7 = vmul.f32 %v32472_v9, %v34215_v32 }
 0x24c   :  { %v31330_v42 = vpop.f32.mrf.mxu1  ;;  %v34449_v10 = vpop.eup %32473  ;;  %32477 = vpow2.f32 %v14858_v41 }
 0x24d   :  { %v12636_v44 = vpop.f32.mrf.mxu0  ;;  %v14749_v51 = vpop.xlane.xlu1 %14748  ;;  %v14933_v28 = vsel %vm203_vm1, %v34449_v10, 0.0  ;;  %v15055_v21 = vsel %vm203_vm1, %v14991_v7, 0  ;;  %v15617_v42 = vand.u32 4294901760, %v15616_v59 }
 0x24e   :  { %v12637_v34 = vadd.f32 %v12636_v44, %v12563_v3  ;;  %v12710_v54 = vpop.f32.mrf.mxu1  ;;  %v14813_v61 = vsub.f32 %v34289_v60, %v14749_v51  ;;  %v14902_v1 = vpop.xlane.xlu0 %14901  ;;  %14934 = vadd.xlane.f32.xlu0 %v14933_v28  ;;  %v34455_v37 = vand.u32 4294901760, %v15055_v21  ;;  %v173_v60 = vld [vmem:[#allocation7 + $0x10] sm:$0xff] }
 0x24f   :  { %v31335_v32 = vpop.f32.mrf.mxu0  ;;  %32479 = vrcp.f32 %v14902_v1  ;;  %v34467_v5 = vand.u32 4294901760, %v173_v60 }
 0x250   :  { %v12711_v29 = vadd.f32 %v12710_v54, %v12637_v34  ;;  %v31340_v35 = vpop.f32.mrf.mxu1  ;;  %v14860_v52 = vmul.f32 1.442695, %v14813_v61  ;;  %v15124_v2 = vsub.f32 %v15055_v21, %v34455_v37  ;;  %31479 = vmatmul.mubr.f32.vlgmr.msra.gmra.mxu1 %v34455_v37 }
 0x251   :  { %v12784_v38 = vpop.f32.mrf.mxu0  ;;  %31487 = vmatpush3.msra.mxu1 %v34309_v30  ;;  %31488 = vmatprep.mubr.msk.f32.mxu1 %vm32688_vm0, %v32687_v0  ;;  %v34483_v61 = vsub.f32 %v173_v60, %v34467_v5 }
 0x252   :  { %v12785_v23 = vadd.f32 %v12784_v38, %v12711_v29  ;;  %v12856_v58 = vpop.f32.mrf.mxu1  ;;  %v15125_v18 = vand.u32 4294901760, %v15124_v2  ;;  %31496 = vmatprep.subr.mxu1 %v32687_v0  ;;  %32481 = vpow2.f32 %v14860_v52 }
 0x253   :  { %v31345_v53 = vpop.f32.mrf.mxu0 }
 0x254   :  { %v12857_v40 = vadd.f32 %v12856_v58, %v12785_v23  ;;  %31489 = vmatmul.mubr.f32.vlgmr.msra.gmra.mxu1 %v15125_v18  ;;  %v31350_v55 = vpop.f32.mrf.mxu1  ;;  %v15126_v45 = vsub.f32 %v15124_v2, %v15125_v18 }
 0x255   :  { %v12938_v57 = vpop.f32.mrf.mxu0  ;;  %31497 = vmatpush3.msra.mxu1 %v34309_v30  ;;  %31498 = vmatprep.mubr.msk.f32.mxu1 %vm32688_vm0, %v32687_v0 }
 0x256   :  { %v34474_v9 = vsel %vm14669_vm3, -1e+09, %v12857_v40  ;;  %v13014_v41 = vpop.f32.mrf.mxu1  ;;  %v15127_v3 = vand.u32 4294901760, %v15126_v45  ;;  %31506 = vmatprep.subr.mxu1 %v32687_v0  ;;  %v16064_v40 = vand.u32 4294901760, %v34483_v61 }
 0x257   :  { %v31355_v49 = vpop.f32.mrf.mxu0  ;;  %v14783_v7 = vsel %vm203_vm1, %v34474_v9, -inf  ;;  %v32476_v44 = vpop.eup %32475  ;;  %v13015_v51 = vadd.f32 %v13014_v41, %v12938_v57  ;;  %v174_v41 = vld [vmem:[#allocation7 + $0x18] sm:$0xff] }
 0x258   :  { %14784 = vmax.xlane.f32.xlu1 %v14783_v7  ;;  %v14752_v30 = vpop.xlane.xlu1 %14751  ;;  %v14993_v34 = vmul.f32 %v32476_v44, %v34264_v62  ;;  %31474 = vmatmul.mubr.f32.vlgmr.msra.gmra.mxu0 %v15127_v3  ;;  %v31360_v28 = vpop.f32.mrf.mxu1  ;;  %v16065_v44 = vsub.f32 %v34483_v61, %v16064_v40 }
 0x259   :  { %31499 = vmatmul.mubr.f32.vlgmr.msra.gmra.mxu1 %v34455_v37  ;;  %v13088_v54 = vpop.f32.mrf.mxu0  ;;  %v14814_v21 = vsub.f32 %v34325_v39, %v14752_v30  ;;  %v34485_v1 = vpop.eup %32477  ;;  %31482 = vmatpush3.msra.mxu0 %v34316_v15 }
 0x25a   :  { %v13089_v32 = vadd.f32 %v13088_v54, %v13015_v51  ;;  %31483 = vmatprep.mubr.msk.f32.mxu0 %vm32688_vm0, %v32687_v0  ;;  %v14936_v62 = vsel %vm203_vm1, %v34485_v1, 0.0  ;;  %31491 = vmatprep.subr.mxu0 %v32687_v0  ;;  %v13162_v29 = vpop.f32.mrf.mxu1  ;;  %v15504_v39 = vsel %vm203_vm1, %v14993_v34, 0  ;;  %v14905_v60 = vpop.xlane.xlu0 %14904 }
 0x25b   :  { %31507 = vmatpush3.msra.mxu1 %v15617_v42  ;;  %v31365_v35 = vpop.f32.mrf.mxu0  ;;  %14937 = vadd.xlane.f32.xlu0 %v14936_v62  ;;  %v34496_v23 = vand.u32 4294901760, %v15504_v39  ;;  %v14862_v59 = vmul.f32 1.442695, %v14814_v21  ;;  %32483 = vrcp.f32 %v14905_v60 }
 0x25c   :  { %v32480_v52 = vpop.eup %32479  ;;  %31508 = vmatprep.mubr.msk.f32.mxu1 %vm32688_vm0, %v32687_v0  ;;  %v13163_v38 = vadd.f32 %v13162_v29, %v13089_v32  ;;  %31484 = vmatmul.mubr.f32.vlgmr.msra.gmra.mxu0 %v15124_v2  ;;  %v31370_v18 = vpop.f32.mrf.mxu1 }
 0x25d   :  { %v14995_v58 = vmul.f32 %v32480_v52, %v34296_v25  ;;  %31516 = vmatprep.subr.mxu1 %v32687_v0  ;;  %v13236_v53 = vpop.f32.mrf.mxu0  ;;  %31492 = vmatpush3.msra.mxu0 %v15166_v27  ;;  %v15573_v55 = vsub.f32 %v15504_v39, %v34496_v23  ;;  %32485 = vpow2.f32 %v14862_v59  ;;  %v16066_v52 = vand.u32 4294901760, %v16065_v44 }
 0x25e   :  { %31509 = vmatmul.mubr.f32.vlgmr.msra.gmra.mxu1 %v34496_v23  ;;  %v13237_v57 = vadd.f32 %v13236_v53, %v13163_v38  ;;  %31493 = vmatprep.mubr.msk.f32.mxu0 %vm32688_vm0, %v32687_v0 }
 0x25f   :  { %31501 = vmatprep.subr.mxu0 %v32687_v0  ;;  %v13308_v25 = vpop.f32.mrf.mxu1  ;;  %v31375_v2 = vpop.f32.mrf.mxu0  ;;  %v15953_v45 = vsel %vm203_vm1, %v14995_v58, 0  ;;  %31517 = vmatpush3.msra.mxu1 %v34436_v46  ;;  %v15574_v27 = vand.u32 4294901760, %v15573_v55 }
 0x260   :  { %31518 = vmatprep.mubr.msk.f32.mxu1 %vm32688_vm0, %v32687_v0  ;;  %v13309_v15 = vadd.f32 %v13308_v25, %v13237_v57  ;;  %v34512_v3 = vand.u32 4294901760, %v15953_v45  ;;  %v34514_v49 = vpop.eup %32481  ;;  %31494 = vmatmul.mubr.f32.vlgmr.msra.gmra.mxu0 %v34455_v37  ;;  %v34529_v37 = vand.u32 4294901760, %v174_v41 }
 0x261   :  { %v31380_v7 = vpop.f32.mrf.mxu1  ;;  %31526 = vmatprep.subr.mxu1 %v32687_v0  ;;  %v13390_v42 = vpop.f32.mrf.mxu0  ;;  %31502 = vmatpush3.msra.mxu0 %v34436_v46  ;;  %v15575_v51 = vsub.f32 %v15573_v55, %v15574_v27  ;;  %v14939_v29 = vsel %vm203_vm1, %v34514_v49, 0.0 }
 0x262   :  { %31519 = vmatmul.mubr.f32.vlgmr.msra.gmra.mxu1 %v15574_v27  ;;  %v34524_v30 = vsel %vm14669_vm3, -1e+09, %v13309_v15  ;;  %v34527_v34 = vsub.f32 %v15953_v45, %v34512_v3  ;;  %31503 = vmatprep.mubr.msk.f32.mxu0 %vm32688_vm0, %v32687_v0  ;;  %v34546_v58 = vsub.f32 %v174_v41, %v34529_v37 }
 0x263   :  { %31511 = vmatprep.subr.mxu0 %v32687_v0  ;;  %v13466_v28 = vpop.f32.mrf.mxu1  ;;  %v31385_v54 = vpop.f32.mrf.mxu0  ;;  %v14786_v21 = vsel %vm203_vm1, %v34524_v30, -inf  ;;  %31527 = vmatpush3.msra.mxu1 %v34436_v46  ;;  %v15576_v62 = vand.u32 4294901760, %v15575_v51  ;;  %v175_v51 = vld [vmem:[#allocation7 + $0x20] sm:$0xff] }
 0x264   :  { %31528 = vmatprep.mubr.msk.f32.mxu1 %vm32688_vm0, %v32687_v0  ;;  %v13467_v32 = vadd.f32 %v13466_v28, %v13390_v42  ;;  %v14755_v39 = vpop.xlane.xlu1 %14754  ;;  %14787 = vmax.xlane.f32.xlu1 %v14786_v21  ;;  %v16023_v60 = vand.u32 4294901760, %v34527_v34  ;;  %v16513_v15 = vand.u32 4294901760, %v34546_v58 }
 0x265   :  { %v31390_v35 = vpop.f32.mrf.mxu1  ;;  %31536 = vmatprep.subr.mxu1 %v32687_v0  ;;  %31504 = vmatmul.mubr.f32.vlgmr.msra.gmra.mxu0 %v15576_v62  ;;  %v13540_v38 = vpop.f32.mrf.mxu0  ;;  %v14815_v46 = vsub.f32 %v34340_v4, %v14755_v39 }
 0x266   :  { %31529 = vmatmul.mubr.f32.vlgmr.msra.gmra.mxu1 %v34496_v23  ;;  %31512 = vmatpush3.msra.mxu0 %v34446_v24  ;;  %v13541_v18 = vadd.f32 %v13540_v38, %v13467_v32  ;;  %v16024_v41 = vsub.f32 %v34527_v34, %v16023_v60  ;;  %v16514_v21 = vsub.f32 %v34546_v58, %v16513_v15 }
 0x267   :  { %14940 = vadd.xlane.f32.xlu0 %v14939_v29  ;;  %v13614_v53 = vpop.f32.mrf.mxu1  ;;  %v14908_v59 = vpop.xlane.xlu0 %14907  ;;  %31513 = vmatprep.mubr.msk.f32.mxu0 %vm32688_vm0, %v32687_v0  ;;  %v14864_v45 = vmul.f32 1.442695, %v14815_v46 }
 0x268   :  { %31521 = vmatprep.subr.mxu0 %v32687_v0  ;;  %v31395_v57 = vpop.f32.mrf.mxu0  ;;  %32487 = vrcp.f32 %v14908_v59  ;;  %31537 = vmatpush3.msra.mxu1 %v16066_v52  ;;  %v13615_v4 = vadd.f32 %v13614_v53, %v13541_v18  ;;  %v32484_v27 = vpop.eup %32483  ;;  %v16025_v54 = vand.u32 4294901760, %v16024_v41 }
 0x269   :  { %31538 = vmatprep.mubr.msk.f32.mxu1 %vm32688_vm0, %v32687_v0  ;;  %v31400_v25 = vpop.f32.mrf.mxu1  ;;  %31514 = vmatmul.mubr.f32.vlgmr.msra.gmra.mxu0 %v15573_v55  ;;  %v14997_v42 = vmul.f32 %v32484_v27, %v34332_v16  ;;  %32489 = vpow2.f32 %v14864_v45  ;;  %v16515_v57 = vand.u32 4294901760, %v16514_v21 }
 0x26a   :  { %31539 = vmatmul.mubr.f32.vlgmr.msra.gmra.mxu1 %v34512_v3  ;;  %v13688_v2 = vpop.f32.mrf.mxu0  ;;  %31522 = vmatpush3.msra.mxu0 %v15615_v63  ;;  %v34567_v63 = vpop.eup %32485 }
 0x26b   :  { %31546 = vmatprep.subr.mxu1 %v32687_v0  ;;  %v13689_v7 = vadd.f32 %v13688_v2, %v13615_v4  ;;  %31523 = vmatprep.mubr.msk.f32.mxu0 %vm32688_vm0, %v32687_v0  ;;  %v13760_v55 = vpop.f32.mrf.mxu1  ;;  %v16402_v32 = vsel %vm203_vm1, %v14997_v42, 0  ;;  %v14942_v46 = vsel %vm203_vm1, %v34567_v63, 0.0 }
 0x26c   :  { %31531 = vmatprep.subr.mxu0 %v32687_v0  ;;  %v31405_v44 = vpop.f32.mrf.mxu0  ;;  %31547 = vmatpush3.msra.mxu1 %v34467_v5  ;;  %v34580_v29 = vand.u32 4294901760, %v16402_v32 }
 0x26d   :  { %31548 = vmatprep.mubr.msk.f32.mxu1 %vm32688_vm0, %v32687_v0  ;;  %v13761_v24 = vadd.f32 %v13760_v55, %v13689_v7  ;;  %31524 = vmatmul.mubr.f32.vlgmr.msra.gmra.mxu0 %v34496_v23  ;;  %v31410_v16 = vpop.f32.mrf.mxu1  ;;  %v34582_v23 = vand.u32 4294901760, %v175_v51 }
 0x26e   :  { %31549 = vmatmul.mubr.f32.vlgmr.msra.gmra.mxu1 %v16023_v60  ;;  %v13842_v28 = vpop.f32.mrf.mxu0  ;;  %31532 = vmatpush3.msra.mxu0 %v34467_v5  ;;  %v34595_v60 = vsub.f32 %v16402_v32, %v34580_v29 }
 0x26f   :  { %31556 = vmatprep.subr.mxu1 %v32687_v0  ;;  %v34578_v62 = vsel %vm14669_vm3, -1e+09, %v13761_v24  ;;  %31533 = vmatprep.mubr.msk.f32.mxu0 %vm32688_vm0, %v32687_v0  ;;  %v13918_v39 = vpop.f32.mrf.mxu1  ;;  %v34602_v2 = vsub.f32 %v175_v51, %v34582_v23 }
 0x270   :  { %31541 = vmatprep.subr.mxu0 %v32687_v0  ;;  %v31415_v35 = vpop.f32.mrf.mxu0  ;;  %v14789_v52 = vsel %vm203_vm1, %v34578_v62, -inf  ;;  %31557 = vmatpush3.msra.mxu1 %v34467_v5  ;;  %v13919_v38 = vadd.f32 %v13918_v39, %v13842_v28  ;;  %v14758_v18 = vpop.xlane.xlu1 %14757  ;;  %v16472_v25 = vand.u32 4294901760, %v34595_v60 }
 0x271   :  { %31558 = vmatprep.mubr.msk.f32.mxu1 %vm32688_vm0, %v32687_v0  ;;  %31534 = vmatmul.mubr.f32.vlgmr.msra.gmra.mxu0 %v16025_v54  ;;  %v31420_v53 = vpop.f32.mrf.mxu1  ;;  %v14816_v4 = vsub.f32 %v34351_v8, %v14758_v18  ;;  %v16962_v16 = vand.u32 4294901760, %v34602_v2  ;;  %v176_v54 = vld [vmem:[#allocation7 + $0x28] sm:$0xff] }
 0x272   :  { %31559 = vmatmul.mubr.f32.vlgmr.msra.gmra.mxu1 %v34512_v3  ;;  %v13992_v59 = vpop.f32.mrf.mxu0  ;;  %31542 = vmatpush3.msra.mxu0 %v34483_v61  ;;  %v16473_v24 = vsub.f32 %v34595_v60, %v16472_v25 }
 0x273   :  { %14790 = vmax.xlane.f32.xlu1 %v14789_v52  ;;  %v13993_v5 = vadd.f32 %v13992_v59, %v13919_v38  ;;  %31566 = vmatprep.subr.mxu1 %v32687_v0  ;;  %v14911_v42 = vpop.xlane.xlu0 %14910  ;;  %v14866_v51 = vmul.f32 1.442695, %v14816_v4  ;;  %v16963_v38 = vsub.f32 %v34602_v2, %v16962_v16 }
 0x274   :  { %14943 = vadd.xlane.f32.xlu0 %v14942_v46  ;;  %v14066_v45 = vpop.f32.mrf.mxu1  ;;  %v31425_v41 = vpop.f32.mrf.mxu0  ;;  %31543 = vmatprep.mubr.msk.f32.mxu0 %vm32688_vm0, %v32687_v0  ;;  %32491 = vrcp.f32 %v14911_v42  ;;  %v16474_v52 = vand.u32 4294901760, %v16473_v24  ;;  %v34633_v46 = vand.u32 4294901760, %v176_v54 }
 0x275   :  { %v32488_v27 = vpop.eup %32487  ;;  %31551 = vmatprep.subr.mxu0 %v32687_v0  ;;  %v14067_v7 = vadd.f32 %v14066_v45, %v13993_v5  ;;  %31567 = vmatpush3.msra.mxu1 %v16515_v57  ;;  %32493 = vpow2.f32 %v14866_v51 }
 0x276   :  { %v14999_v8 = vmul.f32 %v32488_v27, %v34344_v12  ;;  %31568 = vmatprep.mubr.msk.f32.mxu1 %vm32688_vm0, %v32687_v0  ;;  %v31430_v55 = vpop.f32.mrf.mxu1  ;;  %31544 = vmatmul.mubr.f32.vlgmr.msra.gmra.mxu0 %v34527_v34  ;;  %v14140_v44 = vpop.f32.mrf.mxu0  ;;  %v16964_v27 = vand.u32 4294901760, %v16963_v38 }
 0x277   :  { %31569 = vmatmul.mubr.f32.vlgmr.msra.gmra.mxu1 %v34580_v29  ;;  %31552 = vmatpush3.msra.mxu0 %v16064_v40  ;;  %v14141_v12 = vadd.f32 %v14140_v44, %v14067_v7  ;;  %v34627_v40 = vpop.eup %32489  ;;  %v34656_v7 = vsub.f32 %v176_v54, %v34633_v46 }
 0x278   :  { %31576 = vmatprep.subr.mxu1 %v32687_v0  ;;  %v16851_v28 = vsel %vm203_vm1, %v14999_v8, 0  ;;  %31553 = vmatprep.mubr.msk.f32.mxu0 %vm32688_vm0, %v32687_v0  ;;  %v14212_v34 = vpop.f32.mrf.mxu1  ;;  %v31435_v21 = vpop.f32.mrf.mxu0  ;;  %v14945_v4 = vsel %vm203_vm1, %v34627_v40, 0.0 }
 0x279   :  { %31561 = vmatprep.subr.mxu0 %v32687_v0  ;;  %v34622_v32 = vand.u32 4294901760, %v16851_v28  ;;  %31577 = vmatpush3.msra.mxu1 %v34529_v37  ;;  %v14213_v61 = vadd.f32 %v14212_v34, %v14141_v12 }
 0x27a   :  { %31578 = vmatprep.mubr.msk.f32.mxu1 %vm32688_vm0, %v32687_v0  ;;  %31554 = vmatmul.mubr.f32.vlgmr.msra.gmra.mxu0 %v34512_v3  ;;  %v31440_v39 = vpop.f32.mrf.mxu1  ;;  %v14294_v35 = vpop.f32.mrf.mxu0 }
 0x27b   :  { %31579 = vmatmul.mubr.f32.vlgmr.msra.gmra.mxu1 %v16472_v25  ;;  %31562 = vmatpush3.msra.mxu0 %v34529_v37  ;;  %v34639_v18 = vsel %vm14669_vm3, -1e+09, %v14213_v61  ;;  %v34642_v3 = vsub.f32 %v16851_v28, %v34622_v32  ;;  %v17411_v28 = vand.u32 4294901760, %v34656_v7 }
 0x27c   :  { %31586 = vmatprep.subr.mxu1 %v32687_v0  ;;  %31563 = vmatprep.mubr.msk.f32.mxu0 %vm32688_vm0, %v32687_v0  ;;  %v14370_v53 = vpop.f32.mrf.mxu1  ;;  %v31445_v59 = vpop.f32.mrf.mxu0  ;;  %v14792_v57 = vsel %vm203_vm1, %v34639_v18, -inf }
 0x27d   :  { %31571 = vmatprep.subr.mxu0 %v32687_v0  ;;  %31587 = vmatpush3.msra.mxu1 %v34529_v37  ;;  %v14371_v5 = vadd.f32 %v14370_v53, %v14294_v35  ;;  %v14761_v25 = vpop.xlane.xlu1 %14760  ;;  %v16921_v8 = vand.u32 4294901760, %v34642_v3 }
 0x27e   :  { %31588 = vmatprep.mubr.msk.f32.mxu1 %vm32688_vm0, %v32687_v0  ;;  %31564 = vmatmul.mubr.f32.vlgmr.msra.gmra.mxu0 %v16474_v52  ;;  %v31450_v45 = vpop.f32.mrf.mxu1  ;;  %v14817_v42 = vsub.f32 %v34362_v6, %v14761_v25  ;;  %v177_v52 = vld [vmem:[#allocation7 + $0x30] sm:$0xff] }
 0x27f   :  { %31589 = vmatmul.mubr.f32.vlgmr.msra.gmra.mxu1 %v34580_v29  ;;  %v14444_v41 = vpop.f32.mrf.mxu0  ;;  %31572 = vmatpush3.msra.mxu0 %v34546_v58  ;;  %v16922_v61 = vsub.f32 %v34642_v3, %v16921_v8 }
 0x280   :  { %14793 = vmax.xlane.f32.xlu1 %v14792_v57  ;;  %v14445_v37 = vadd.f32 %v14444_v41, %v14371_v5  ;;  %v14914_v55 = vpop.xlane.xlu0 %14913  ;;  %31596 = vmatprep.subr.mxu1 %v32687_v0  ;;  %v14868_v21 = vmul.f32 1.442695, %v14817_v42  ;;  %v34690_v5 = vand.u32 4294901760, %v177_v52 }
 0x281   :  { %14946 = vadd.xlane.f32.xlu0 %v14945_v4  ;;  %v14518_v44 = vpop.f32.mrf.mxu1  ;;  %v31455_v51 = vpop.f32.mrf.mxu0  ;;  %32495 = vrcp.f32 %v14914_v55  ;;  %31573 = vmatprep.mubr.msk.f32.mxu0 %vm32688_vm0, %v32687_v0  ;;  %v16923_v59 = vand.u32 4294901760, %v16922_v61 }
 0x282   :  { %31581 = vmatprep.subr.mxu0 %v32687_v0  ;;  %v14519_v24 = vadd.f32 %v14518_v44, %v14445_v37  ;;  %31597 = vmatpush3.msra.mxu1 %v16964_v27  ;;  %v32492_v54 = vpop.eup %32491  ;;  %32497 = vpow2.f32 %v14868_v21  ;;  %v34714_v37 = vsub.f32 %v177_v52, %v34690_v5 }
 0x283   :  { %31598 = vmatprep.mubr.msk.f32.mxu1 %vm32688_vm0, %v32687_v0  ;;  %v31460_v6 = vpop.f32.mrf.mxu1  ;;  %v14592_v12 = vpop.f32.mrf.mxu0  ;;  %31574 = vmatmul.mubr.f32.vlgmr.msra.gmra.mxu0 %v34595_v60  ;;  %v15001_v39 = vmul.f32 %v32492_v54, %v34355_v50  ;;  %v17412_v50 = vsub.f32 %v34656_v7, %v17411_v28 }
 0x284   :  { %31599 = vmatmul.mubr.f32.vlgmr.msra.gmra.mxu1 %v34622_v32  ;;  %v14593_v34 = vadd.f32 %v14592_v12, %v14519_v24  ;;  %31582 = vmatpush3.msra.mxu0 %v16513_v15  ;;  %v34685_v15 = vpop.eup %32493  ;;  %v17860_v44 = vand.u32 4294901760, %v34714_v37  ;;  %v178_v6 = vld [vmem:[#allocation7 + $0x38] sm:$0xff] }
 0x285   :  { %31606 = vmatprep.subr.mxu1 %v32687_v0  ;;  %v31465_v35 = vpop.f32.mrf.mxu0  ;;  %31583 = vmatprep.mubr.msk.f32.mxu0 %vm32688_vm0, %v32687_v0  ;;  %v14664_v60 = vpop.f32.mrf.mxu1  ;;  %v17300_v58 = vsel %vm203_vm1, %v15001_v39, 0  ;;  %v14948_v11 = vsel %vm203_vm1, %v34685_v15, 0.0  ;;  %v17413_v41 = vand.u32 4294901760, %v17412_v50  ;;  %v34750_v54 = vand.u32 4294901760, %v178_v6 }
 0x286   :  { %31591 = vmatprep.subr.mxu0 %v32687_v0  ;;  %31607 = vmatpush3.msra.mxu1 %v34582_v23  ;;  %v14665_v38 = vadd.f32 %v14664_v60, %v14593_v34  ;;  %v34688_v57 = vand.u32 4294901760, %v17300_v58 }
 0x287   :  { %31608 = vmatprep.mubr.msk.f32.mxu1 %vm32688_vm0, %v32687_v0  ;;  %31584 = vmatmul.mubr.f32.vlgmr.msra.gmra.mxu0 %v34580_v29  ;;  %v31470_v53 = vpop.f32.mrf.mxu1  ;;  %v34766_v52 = vsub.f32 %v178_v6, %v34750_v54 }
 0x288   :  { %31609 = vmatmul.mubr.f32.vlgmr.msra.gmra.mxu1 %v16921_v8  ;;  %31592 = vmatpush3.msra.mxu0 %v34582_v23  ;;  %v34696_v4 = vsel %vm14669_vm3, -1e+09, %v14665_v38  ;;  %v34704_v45 = vsub.f32 %v17300_v58, %v34688_v57  ;;  %v179_v58 = vld [vmem:[#allocation7 + $0x40] sm:$0xff] }
 0x289   :  { %31616 = vmatprep.subr.mxu1 %v32687_v0  ;;  %v14764_v25 = vpop.xlane.xlu1 %14763  ;;  %31593 = vmatprep.mubr.msk.f32.mxu0 %vm32688_vm0, %v32687_v0  ;;  %v14795_v29 = vsel %vm203_vm1, %v34696_v4, -inf  ;;  %v18309_v50 = vand.u32 4294901760, %v34766_v52 }
 0x28a   :  { %31601 = vmatprep.subr.mxu0 %v32687_v0  ;;  %31617 = vmatpush3.msra.mxu1 %v34582_v23  ;;  %v14818_v27 = vsub.f32 %v34373_v13, %v14764_v25  ;;  %v17370_v23 = vand.u32 4294901760, %v34704_v45  ;;  %v34798_v25 = vand.u32 4294901760, %v179_v58 }
 0x28b   :  { %31618 = vmatprep.mubr.msk.f32.mxu1 %vm32688_vm0, %v32687_v0  ;;  %31594 = vmatmul.mubr.f32.vlgmr.msra.gmra.mxu0 %v16923_v59 }
 0x28c   :  { %31619 = vmatmul.mubr.f32.vlgmr.msra.gmra.mxu1 %v34622_v32  ;;  %31602 = vmatpush3.msra.mxu0 %v34602_v2  ;;  %v14917_v42 = vpop.xlane.xlu0 %14916  ;;  %v14870_v13 = vmul.f32 1.442695, %v14818_v27  ;;  %v17371_v51 = vsub.f32 %v34704_v45, %v17370_v23  ;;  %v17861_v2 = vsub.f32 %v34714_v37, %v17860_v44  ;;  %v34815_v27 = vsub.f32 %v179_v58, %v34798_v25 }
 0x28d   :  { %14796 = vmax.xlane.f32.xlu1 %v14795_v29  ;;  %31626 = vmatprep.subr.mxu1 %v32687_v0  ;;  %32499 = vrcp.f32 %v14917_v42 }
 0x28e   :  { %v32496_v8 = vpop.eup %32495  ;;  %14949 = vadd.xlane.f32.xlu0 %v14948_v11  ;;  %31603 = vmatprep.mubr.msk.f32.mxu0 %vm32688_vm0, %v32687_v0  ;;  %32501 = vpow2.f32 %v14870_v13  ;;  %v17862_v21 = vand.u32 4294901760, %v17861_v2 }
 0x28f   :  { %v15003_v55 = vmul.f32 %v32496_v8, %v34366_v56  ;;  %31611 = vmatprep.subr.mxu0 %v32687_v0  ;;  %31627 = vmatpush3.msra.mxu1 %v17413_v41 }
 0x290   :  { %31628 = vmatprep.mubr.msk.f32.mxu1 %vm32688_vm0, %v32687_v0  ;;  %31604 = vmatmul.mubr.f32.vlgmr.msra.gmra.mxu0 %v34642_v3  ;;  %v17372_v3 = vand.u32 4294901760, %v17371_v51 }
 0x291   :  { %31629 = vmatmul.mubr.f32.vlgmr.msra.gmra.mxu1 %v34688_v57  ;;  %v17749_v56 = vsel %vm203_vm1, %v15003_v55, 0  ;;  %31612 = vmatpush3.msra.mxu0 %v16962_v16  ;;  %v34744_v16 = vpop.eup %32497  ;;  %v18758_v55 = vand.u32 4294901760, %v34815_v27 }
 0x292   :  { %31636 = vmatprep.subr.mxu1 %v32687_v0  ;;  %v34733_v24 = vand.u32 4294901760, %v17749_v56  ;;  %31613 = vmatprep.mubr.msk.f32.mxu0 %vm32688_vm0, %v32687_v0 }
 0x293   :  { %31621 = vmatprep.subr.mxu0 %v32687_v0  ;;  %31637 = vmatpush3.msra.mxu1 %v34633_v46 }
 0x294   :  { %31638 = vmatprep.mubr.msk.f32.mxu1 %vm32688_vm0, %v32687_v0  ;;  %31614 = vmatmul.mubr.f32.vlgmr.msra.gmra.mxu0 %v34622_v32  ;;  %v34748_v12 = vsub.f32 %v17749_v56, %v34733_v24  ;;  %v14951_v32 = vsel %vm203_vm1, %v34744_v16, 0.0  ;;  %v180_v56 = vld [vmem:[#allocation7 + $0x48] sm:$0xff] }
 0x295   :  { %31639 = vmatmul.mubr.f32.vlgmr.msra.gmra.mxu1 %v17370_v23  ;;  %31622 = vmatpush3.msra.mxu0 %v34633_v46 }
 0x296   :  { %31646 = vmatprep.subr.mxu1 %v32687_v0  ;;  %v14767_v34 = vpop.xlane.xlu1 %14766  ;;  %31623 = vmatprep.mubr.msk.f32.mxu0 %vm32688_vm0, %v32687_v0  ;;  %v17819_v39 = vand.u32 4294901760, %v34748_v12 }
 0x297   :  { %31631 = vmatprep.subr.mxu0 %v32687_v0  ;;  %31647 = vmatpush3.msra.mxu1 %v34633_v46  ;;  %v14819_v61 = vsub.f32 %v34384_v33, %v14767_v34 }
 0x298   :  { %31648 = vmatprep.mubr.msk.f32.mxu1 %vm32688_vm0, %v32687_v0  ;;  %31624 = vmatmul.mubr.f32.vlgmr.msra.gmra.mxu0 %v17372_v3  ;;  %v17820_v38 = vsub.f32 %v34748_v12, %v17819_v39  ;;  %v34852_v3 = vand.u32 4294901760, %v180_v56 }
 0x299   :  { %31649 = vmatmul.mubr.f32.vlgmr.msra.gmra.mxu1 %v34688_v57  ;;  %v14920_v35 = vpop.xlane.xlu0 %14919  ;;  %31632 = vmatpush3.msra.mxu0 %v34656_v7  ;;  %v14872_v60 = vmul.f32 1.442695, %v14819_v61 }
 0x29a   :  { %31656 = vmatprep.subr.mxu1 %v32687_v0  ;;  %32503 = vrcp.f32 %v14920_v35  ;;  %14952 = vadd.xlane.f32.xlu0 %v14951_v32  ;;  %v32500_v46 = vpop.eup %32499  ;;  %v17821_v7 = vand.u32 4294901760, %v17820_v38 }
 0x29b   :  { %31633 = vmatprep.mubr.msk.f32.mxu0 %vm32688_vm0, %v32687_v0  ;;  %31641 = vmatprep.subr.mxu0 %v32687_v0  ;;  %v15005_v33 = vmul.f32 %v32500_v46, %v34377_v31  ;;  %v34790_v59 = vpop.eup %32501  ;;  %32505 = vpow2.f32 %v14872_v60  ;;  %v181_v60 = vld [vmem:[#allocation7 + $0x50] sm:$0xff] }
 0x29c   :  { %31657 = vmatpush3.msra.mxu1 %v17862_v21  ;;  %31658 = vmatprep.mubr.msk.f32.mxu1 %vm32688_vm0, %v32687_v0 }
 0x29d   :  { %31634 = vmatmul.mubr.f32.vlgmr.msra.gmra.mxu0 %v34704_v45  ;;  %31659 = vmatmul.mubr.f32.vlgmr.msra.gmra.mxu1 %v34733_v24  ;;  %v18198_v31 = vsel %vm203_vm1, %v15005_v33, 0 }
 0x29e   :  { %31642 = vmatpush3.msra.mxu0 %v17411_v28  ;;  %31666 = vmatprep.subr.mxu1 %v32687_v0  ;;  %v34788_v53 = vand.u32 4294901760, %v18198_v31  ;;  %v18310_v28 = vsub.f32 %v34766_v52, %v18309_v50 }
 0x29f   :  { %31643 = vmatprep.mubr.msk.f32.mxu0 %vm32688_vm0, %v32687_v0  ;;  %31651 = vmatprep.subr.mxu0 %v32687_v0 }
 0x2a0   :  { %31667 = vmatpush3.msra.mxu1 %v34690_v5  ;;  %31668 = vmatprep.mubr.msk.f32.mxu1 %vm32688_vm0, %v32687_v0  ;;  %v34802_v29 = vsub.f32 %v18198_v31, %v34788_v53  ;;  %v18311_v11 = vand.u32 4294901760, %v18310_v28  ;;  %v34900_v31 = vand.u32 4294901760, %v181_v60 }
 0x2a1   :  { %31644 = vmatmul.mubr.f32.vlgmr.msra.gmra.mxu0 %v34688_v57  ;;  %31669 = vmatmul.mubr.f32.vlgmr.msra.gmra.mxu1 %v17819_v39  ;;  %v14954_v57 = vsel %vm203_vm1, %v34790_v59, 0.0  ;;  %v34868_v39 = vsub.f32 %v180_v56, %v34852_v3 }
 0x2a2   :  { %31652 = vmatpush3.msra.mxu0 %v34690_v5  ;;  %v14770_v45 = vpop.xlane.xlu1 %14769  ;;  %31676 = vmatprep.subr.mxu1 %v32687_v0  ;;  %v18268_v23 = vand.u32 4294901760, %v34802_v29 }
 0x2a3   :  { %31653 = vmatprep.mubr.msk.f32.mxu0 %vm32688_vm0, %v32687_v0  ;;  %31661 = vmatprep.subr.mxu0 %v32687_v0  ;;  %v14820_v41 = vsub.f32 %v34395_v17, %v14770_v45  ;;  %v19207_v33 = vand.u32 4294901760, %v34868_v39 }
 0x2a4   :  { %31677 = vmatpush3.msra.mxu1 %v34690_v5  ;;  %31678 = vmatprep.mubr.msk.f32.mxu1 %vm32688_vm0, %v32687_v0  ;;  %v18269_v13 = vsub.f32 %v34802_v29, %v18268_v23 }
 0x2a5   :  { %31654 = vmatmul.mubr.f32.vlgmr.msra.gmra.mxu0 %v17821_v7  ;;  %31679 = vmatmul.mubr.f32.vlgmr.msra.gmra.mxu1 %v34733_v24  ;;  %v14923_v5 = vpop.xlane.xlu0 %14922  ;;  %v14874_v17 = vmul.f32 1.442695, %v14820_v41 }
 0x2a6   :  { %31662 = vmatpush3.msra.mxu0 %v34714_v37  ;;  %31686 = vmatprep.subr.mxu1 %v32687_v0  ;;  %32507 = vrcp.f32 %v14923_v5  ;;  %v18759_v37 = vsub.f32 %v34815_v27, %v18758_v55  ;;  %v18270_v6 = vand.u32 4294901760, %v18269_v13 }
 0x2a7   :  { %v32504_v42 = vpop.eup %32503  ;;  %14955 = vadd.xlane.f32.xlu0 %v14954_v57  ;;  %31663 = vmatprep.mubr.msk.f32.mxu0 %vm32688_vm0, %v32687_v0  ;;  %32509 = vpow2.f32 %v14874_v17  ;;  %v34917_v57 = vsub.f32 %v181_v60, %v34900_v31  ;;  %v182_v17 = vld [vmem:[#allocation7 + $0x58] sm:$0xff] }
 0x2a8   :  { %v15007_v8 = vmul.f32 %v32504_v42, %v34388_v48  ;;  %31671 = vmatprep.subr.mxu0 %v32687_v0  ;;  %31687 = vmatpush3.msra.mxu1 %v18311_v11  ;;  %v18760_v34 = vand.u32 4294901760, %v18759_v37  ;;  %v34954_v56 = vand.u32 4294901760, %v182_v17 }
 0x2a9   :  { %31688 = vmatprep.mubr.msk.f32.mxu1 %vm32688_vm0, %v32687_v0  ;;  %31664 = vmatmul.mubr.f32.vlgmr.msra.gmra.mxu0 %v34748_v12  ;;  %v19656_v5 = vand.u32 4294901760, %v34917_v57 }
 0x2aa   :  { %31689 = vmatmul.mubr.f32.vlgmr.msra.gmra.mxu1 %v34788_v53  ;;  %v18647_v48 = vsel %vm203_vm1, %v15007_v8, 0  ;;  %31672 = vmatpush3.msra.mxu0 %v17860_v44  ;;  %v34846_v44 = vpop.eup %32505 }
 0x2ab   :  { %31696 = vmatprep.subr.mxu1 %v32687_v0  ;;  %v34835_v51 = vand.u32 4294901760, %v18647_v48  ;;  %31673 = vmatprep.mubr.msk.f32.mxu0 %vm32688_vm0, %v32687_v0 }
 0x2ac   :  { %31681 = vmatprep.subr.mxu0 %v32687_v0  ;;  %31697 = vmatpush3.msra.mxu1 %v34750_v54 }
 0x2ad   :  { %31698 = vmatprep.mubr.msk.f32.mxu1 %vm32688_vm0, %v32687_v0  ;;  %31674 = vmatmul.mubr.f32.vlgmr.msra.gmra.mxu0 %v34733_v24  ;;  %v34850_v2 = vsub.f32 %v18647_v48, %v34835_v51  ;;  %v14957_v24 = vsel %vm203_vm1, %v34846_v44, 0.0 }
 0x2ae   :  { %31699 = vmatmul.mubr.f32.vlgmr.msra.gmra.mxu1 %v18268_v23  ;;  %31682 = vmatpush3.msra.mxu0 %v34750_v54 }
 0x2af   :  { %31706 = vmatprep.subr.mxu1 %v32687_v0  ;;  %v14773_v12 = vpop.xlane.xlu1 %14772  ;;  %31683 = vmatprep.mubr.msk.f32.mxu0 %vm32688_vm0, %v32687_v0  ;;  %v18717_v21 = vand.u32 4294901760, %v34850_v2 }
 0x2b0   :  { %31691 = vmatprep.subr.mxu0 %v32687_v0  ;;  %31707 = vmatpush3.msra.mxu1 %v34750_v54  ;;  %v14821_v32 = vsub.f32 %v34406_v20, %v14773_v12 }
 0x2b1   :  { %31708 = vmatprep.mubr.msk.f32.mxu1 %vm32688_vm0, %v32687_v0  ;;  %31684 = vmatmul.mubr.f32.vlgmr.msra.gmra.mxu0 %v18270_v6  ;;  %v18718_v46 = vsub.f32 %v34850_v2, %v18717_v21 }
 0x2b2   :  { %31709 = vmatmul.mubr.f32.vlgmr.msra.gmra.mxu1 %v34788_v53  ;;  %v14926_v61 = vpop.xlane.xlu0 %14925  ;;  %31692 = vmatpush3.msra.mxu0 %v34766_v52  ;;  %v14876_v35 = vmul.f32 1.442695, %v14821_v32 }
 0x2b3   :  { %31716 = vmatprep.subr.mxu1 %v32687_v0  ;;  %32511 = vrcp.f32 %v14926_v61  ;;  %14958 = vadd.xlane.f32.xlu0 %v14957_v24  ;;  %v32508_v54 = vpop.eup %32507  ;;  %v18719_v52 = vand.u32 4294901760, %v18718_v46 }
 0x2b4   :  { %31693 = vmatprep.mubr.msk.f32.mxu0 %vm32688_vm0, %v32687_v0  ;;  %31701 = vmatprep.subr.mxu0 %v32687_v0  ;;  %v15009_v20 = vmul.f32 %v32508_v54, %v34399_v47  ;;  %v34892_v58 = vpop.eup %32509  ;;  %32513 = vpow2.f32 %v14876_v35  ;;  %v183_v54 = vld [vmem:[#allocation7 + $0x60] sm:$0xff] }
 0x2b5   :  { %31717 = vmatpush3.msra.mxu1 %v18760_v34  ;;  %31718 = vmatprep.mubr.msk.f32.mxu1 %vm32688_vm0, %v32687_v0  ;;  %v34970_v34 = vsub.f32 %v182_v17, %v34954_v56 }
 0x2b6   :  { %31694 = vmatmul.mubr.f32.vlgmr.msra.gmra.mxu0 %v34802_v29  ;;  %31719 = vmatmul.mubr.f32.vlgmr.msra.gmra.mxu1 %v34835_v51  ;;  %v19096_v47 = vsel %vm203_vm1, %v15009_v20, 0 }
 0x2b7   :  { %31702 = vmatpush3.msra.mxu0 %v18309_v50  ;;  %31726 = vmatprep.subr.mxu1 %v32687_v0  ;;  %v34890_v38 = vand.u32 4294901760, %v19096_v47  ;;  %v19208_v50 = vsub.f32 %v34868_v39, %v19207_v33  ;;  %v20105_v61 = vand.u32 4294901760, %v34970_v34 }
 0x2b8   :  { %31703 = vmatprep.mubr.msk.f32.mxu0 %vm32688_vm0, %v32687_v0  ;;  %31711 = vmatprep.subr.mxu0 %v32687_v0 }
 0x2b9   :  { %31727 = vmatpush3.msra.mxu1 %v34798_v25  ;;  %31728 = vmatprep.mubr.msk.f32.mxu1 %vm32688_vm0, %v32687_v0  ;;  %v34904_v7 = vsub.f32 %v19096_v47, %v34890_v38  ;;  %v19209_v29 = vand.u32 4294901760, %v19208_v50  ;;  %v20106_v46 = vsub.f32 %v34970_v34, %v20105_v61 }
 0x2ba   :  { %31704 = vmatmul.mubr.f32.vlgmr.msra.gmra.mxu0 %v34788_v53  ;;  %31729 = vmatmul.mubr.f32.vlgmr.msra.gmra.mxu1 %v18717_v21  ;;  %v14960_v53 = vsel %vm203_vm1, %v34892_v58, 0.0 }
 0x2bb   :  { %31712 = vmatpush3.msra.mxu0 %v34798_v25  ;;  %v14776_v28 = vpop.xlane.xlu1 %14775  ;;  %31736 = vmatprep.subr.mxu1 %v32687_v0  ;;  %v19166_v11 = vand.u32 4294901760, %v34904_v7 }
 0x2bc   :  { %31713 = vmatprep.mubr.msk.f32.mxu0 %vm32688_vm0, %v32687_v0  ;;  %31721 = vmatprep.subr.mxu0 %v32687_v0  ;;  %v14822_v45 = vsub.f32 %v34417_v43, %v14776_v28 }
 0x2bd   :  { %31737 = vmatpush3.msra.mxu1 %v34798_v25  ;;  %31738 = vmatprep.mubr.msk.f32.mxu1 %vm32688_vm0, %v32687_v0  ;;  %v19167_v42 = vsub.f32 %v34904_v7, %v19166_v11 }
 0x2be   :  { %31714 = vmatmul.mubr.f32.vlgmr.msra.gmra.mxu0 %v18719_v52  ;;  %31739 = vmatmul.mubr.f32.vlgmr.msra.gmra.mxu1 %v34835_v51  ;;  %v14929_v25 = vpop.xlane.xlu0 %14928  ;;  %v14878_v43 = vmul.f32 1.442695, %v14822_v45  ;;  %v20107_v52 = vand.u32 4294901760, %v20106_v46 }
 0x2bf   :  { %31722 = vmatpush3.msra.mxu0 %v34815_v27  ;;  %31746 = vmatprep.subr.mxu1 %v32687_v0  ;;  %32515 = vrcp.f32 %v14929_v25  ;;  %v19657_v27 = vsub.f32 %v34917_v57, %v19656_v5  ;;  %v19168_v13 = vand.u32 4294901760, %v19167_v42 }
 0x2c0   :  { %v32512_v41 = vpop.eup %32511  ;;  %14961 = vadd.xlane.f32.xlu0 %v14960_v53  ;;  %31723 = vmatprep.mubr.msk.f32.mxu0 %vm32688_vm0, %v32687_v0  ;;  %32517 = vpow2.f32 %v14878_v43 }
 0x2c1   :  { %v15011_v23 = vmul.f32 %v32512_v41, %v34410_v14  ;;  %31731 = vmatprep.subr.mxu0 %v32687_v0  ;;  %31747 = vmatpush3.msra.mxu1 %v19209_v29  ;;  %v19658_v6 = vand.u32 4294901760, %v19657_v27  ;;  %v184_v41 = vld [vmem:[#allocation7 + $0x68] sm:$0xff] }
 0x2c2   :  { %31748 = vmatprep.mubr.msk.f32.mxu1 %vm32688_vm0, %v32687_v0  ;;  %31724 = vmatmul.mubr.f32.vlgmr.msra.gmra.mxu0 %v34850_v2  ;;  %v35056_v42 = vand.u32 4294901760, %v184_v41 }
 0x2c3   :  { %31749 = vmatmul.mubr.f32.vlgmr.msra.gmra.mxu1 %v34890_v38  ;;  %v19545_v14 = vsel %vm203_vm1, %v15011_v23, 0  ;;  %31732 = vmatpush3.msra.mxu0 %v18758_v55  ;;  %v34948_v55 = vpop.eup %32513 }
 0x2c4   :  { %31756 = vmatprep.subr.mxu1 %v32687_v0  ;;  %v34937_v8 = vand.u32 4294901760, %v19545_v14  ;;  %31733 = vmatprep.mubr.msk.f32.mxu0 %vm32688_vm0, %v32687_v0 }
 0x2c5   :  { %31741 = vmatprep.subr.mxu0 %v32687_v0  ;;  %31757 = vmatpush3.msra.mxu1 %v34852_v3 }
 0x2c6   :  { %31758 = vmatprep.mubr.msk.f32.mxu1 %vm32688_vm0, %v32687_v0  ;;  %31734 = vmatmul.mubr.f32.vlgmr.msra.gmra.mxu0 %v34835_v51  ;;  %v34952_v48 = vsub.f32 %v19545_v14, %v34937_v8  ;;  %v14963_v51 = vsel %vm203_vm1, %v34948_v55, 0.0 }
 0x2c7   :  { %31759 = vmatmul.mubr.f32.vlgmr.msra.gmra.mxu1 %v19166_v11  ;;  %31742 = vmatpush3.msra.mxu0 %v34852_v3 }
 0x2c8   :  { %31766 = vmatprep.subr.mxu1 %v32687_v0  ;;  %v14779_v37 = vpop.xlane.xlu1 %14778  ;;  %31743 = vmatprep.mubr.msk.f32.mxu0 %vm32688_vm0, %v32687_v0  ;;  %v19615_v12 = vand.u32 4294901760, %v34952_v48 }
 0x2c9   :  { %31751 = vmatprep.subr.mxu0 %v32687_v0  ;;  %31767 = vmatpush3.msra.mxu1 %v34852_v3  ;;  %v14823_v2 = vsub.f32 %v34428_v22, %v14779_v37 }
 0x2ca   :  { %31768 = vmatprep.mubr.msk.f32.mxu1 %vm32688_vm0, %v32687_v0  ;;  %31744 = vmatmul.mubr.f32.vlgmr.msra.gmra.mxu0 %v19168_v13  ;;  %v19616_v21 = vsub.f32 %v34952_v48, %v19615_v12 }
 0x2cb   :  { %31769 = vmatmul.mubr.f32.vlgmr.msra.gmra.mxu1 %v34890_v38  ;;  %v14932_v24 = vpop.xlane.xlu0 %14931  ;;  %31752 = vmatpush3.msra.mxu0 %v34868_v39  ;;  %v14880_v32 = vmul.f32 1.442695, %v14823_v2 }
 0x2cc   :  { %31776 = vmatprep.subr.mxu1 %v32687_v0  ;;  %32519 = vrcp.f32 %v14932_v24  ;;  %14964 = vadd.xlane.f32.xlu0 %v14963_v51  ;;  %v32516_v3 = vpop.eup %32515  ;;  %v19617_v39 = vand.u32 4294901760, %v19616_v21 }
 0x2cd   :  { %31753 = vmatprep.mubr.msk.f32.mxu0 %vm32688_vm0, %v32687_v0  ;;  %31761 = vmatprep.subr.mxu0 %v32687_v0  ;;  %v15013_v22 = vmul.f32 %v32516_v3, %v34421_v36  ;;  %v34994_v35 = vpop.eup %32517  ;;  %32521 = vpow2.f32 %v14880_v32 }
 0x2ce   :  { %31777 = vmatpush3.msra.mxu1 %v19658_v6  ;;  %31778 = vmatprep.mubr.msk.f32.mxu1 %vm32688_vm0, %v32687_v0 }
 0x2cf   :  { %31754 = vmatmul.mubr.f32.vlgmr.msra.gmra.mxu0 %v34904_v7  ;;  %31779 = vmatmul.mubr.f32.vlgmr.msra.gmra.mxu1 %v34937_v8  ;;  %v19994_v36 = vsel %vm203_vm1, %v15013_v22, 0 }
 0x2d0   :  { %31762 = vmatpush3.msra.mxu0 %v19207_v33  ;;  %31786 = vmatprep.subr.mxu1 %v32687_v0  ;;  %v34992_v20 = vand.u32 4294901760, %v19994_v36  ;;  %v35002_v33 = vand.u32 4294901760, %v183_v54 }
 0x2d1   :  { %31763 = vmatprep.mubr.msk.f32.mxu0 %vm32688_vm0, %v32687_v0  ;;  %31771 = vmatprep.subr.mxu0 %v32687_v0 }
 0x2d2   :  { %31787 = vmatpush3.msra.mxu1 %v34900_v31  ;;  %31788 = vmatprep.mubr.msk.f32.mxu1 %vm32688_vm0, %v32687_v0  ;;  %v35006_v60 = vsub.f32 %v19994_v36, %v34992_v20  ;;  %v35019_v7 = vsub.f32 %v183_v54, %v35002_v33 }
 0x2d3   :  { %31764 = vmatmul.mubr.f32.vlgmr.msra.gmra.mxu0 %v34890_v38  ;;  %31789 = vmatmul.mubr.f32.vlgmr.msra.gmra.mxu1 %v19615_v12  ;;  %v14966_v38 = vsel %vm203_vm1, %v34994_v35, 0.0  ;;  %v185_v12 = vld [vmem:[#allocation7 + $0x70] sm:$0xff] }
 0x2d4   :  { %31772 = vmatpush3.msra.mxu0 %v34900_v31  ;;  %v14782_v47 = vpop.xlane.xlu1 %14781  ;;  %31796 = vmatprep.subr.mxu1 %v32687_v0  ;;  %v20064_v28 = vand.u32 4294901760, %v35006_v60  ;;  %v20554_v45 = vand.u32 4294901760, %v35019_v7  ;;  %v35104_v32 = vand.u32 4294901760, %v185_v12 }
 0x2d5   :  { %31773 = vmatprep.mubr.msk.f32.mxu0 %vm32688_vm0, %v32687_v0  ;;  %31781 = vmatprep.subr.mxu0 %v32687_v0  ;;  %v14824_v50 = vsub.f32 %v34441_v26, %v14782_v47 }
 0x2d6   :  { %31797 = vmatpush3.msra.mxu1 %v34900_v31  ;;  %31798 = vmatprep.mubr.msk.f32.mxu1 %vm32688_vm0, %v32687_v0  ;;  %v20065_v11 = vsub.f32 %v35006_v60, %v20064_v28  ;;  %v35121_v46 = vsub.f32 %v185_v12, %v35104_v32 }
 0x2d7   :  { %31774 = vmatmul.mubr.f32.vlgmr.msra.gmra.mxu0 %v19617_v39  ;;  %31799 = vmatmul.mubr.f32.vlgmr.msra.gmra.mxu1 %v34937_v8  ;;  %v14935_v31 = vpop.xlane.xlu0 %14934  ;;  %v14882_v26 = vmul.f32 1.442695, %v14824_v50  ;;  %v186_v50 = vld [vmem:[#allocation7 + $0x78] sm:$0xff] }
 0x2d8   :  { %31782 = vmatpush3.msra.mxu0 %v34917_v57  ;;  %31806 = vmatprep.subr.mxu1 %v32687_v0  ;;  %32523 = vrcp.f32 %v14935_v31  ;;  %v20555_v57 = vsub.f32 %v35019_v7, %v20554_v45  ;;  %v20066_v43 = vand.u32 4294901760, %v20065_v11  ;;  %v21452_v47 = vand.u32 4294901760, %v35121_v46 }
 0x2d9   :  { %v32520_v53 = vpop.eup %32519  ;;  %14967 = vadd.xlane.f32.xlu0 %v14966_v38  ;;  %31783 = vmatprep.mubr.msk.f32.mxu0 %vm32688_vm0, %v32687_v0  ;;  %32525 = vpow2.f32 %v14882_v26 }
 0x2da   :  { %v15015_v29 = vmul.f32 %v32520_v53, %v34432_v19  ;;  %31791 = vmatprep.subr.mxu0 %v32687_v0  ;;  %31807 = vmatpush3.msra.mxu1 %v20107_v52  ;;  %v35050_v23 = vpop.eup %32521  ;;  %v20556_v17 = vand.u32 4294901760, %v20555_v57 }
 0x2db   :  { %31808 = vmatprep.mubr.msk.f32.mxu1 %vm32688_vm0, %v32687_v0  ;;  %31784 = vmatmul.mubr.f32.vlgmr.msra.gmra.mxu0 %v34952_v48  ;;  %v35072_v48 = vsub.f32 %v184_v41, %v35056_v42 }
 0x2dc   :  { %31809 = vmatmul.mubr.f32.vlgmr.msra.gmra.mxu1 %v34992_v20  ;;  %v20443_v19 = vsel %vm203_vm1, %v15015_v29, 0  ;;  %31792 = vmatpush3.msra.mxu0 %v19656_v5  ;;  %v35155_v29 = vand.u32 4294901760, %v186_v50 }
 0x2dd   :  { %31816 = vmatprep.subr.mxu1 %v32687_v0  ;;  %v35039_v25 = vand.u32 4294901760, %v20443_v19  ;;  %31793 = vmatprep.mubr.msk.f32.mxu0 %vm32688_vm0, %v32687_v0  ;;  %v21003_v2 = vand.u32 4294901760, %v35072_v48 }
 0x2de   :  { %31801 = vmatprep.subr.mxu0 %v32687_v0  ;;  %31817 = vmatpush3.msra.mxu1 %v34954_v56 }
 0x2df   :  { %31818 = vmatprep.mubr.msk.f32.mxu1 %vm32688_vm0, %v32687_v0  ;;  %31794 = vmatmul.mubr.f32.vlgmr.msra.gmra.mxu0 %v34937_v8  ;;  %v35054_v5 = vsub.f32 %v20443_v19, %v35039_v25  ;;  %v14969_v8 = vsel %vm203_vm1, %v35050_v23, 0.0  ;;  %v21004_v22 = vsub.f32 %v35072_v48, %v21003_v2 }
 0x2e0   :  { %31819 = vmatmul.mubr.f32.vlgmr.msra.gmra.mxu1 %v20064_v28  ;;  %31802 = vmatpush3.msra.mxu0 %v34954_v56 }
 0x2e1   :  { %31826 = vmatprep.subr.mxu1 %v32687_v0  ;;  %v14785_v14 = vpop.xlane.xlu1 %14784  ;;  %31803 = vmatprep.mubr.msk.f32.mxu0 %vm32688_vm0, %v32687_v0  ;;  %v20513_v13 = vand.u32 4294901760, %v35054_v5  ;;  %v21005_v36 = vand.u32 4294901760, %v21004_v22 }
 0x2e2   :  { %31811 = vmatprep.subr.mxu0 %v32687_v0  ;;  %31827 = vmatpush3.msra.mxu1 %v34954_v56  ;;  %v14825_v27 = vsub.f32 %v34474_v9, %v14785_v14 }
 0x2e3   :  { %31828 = vmatprep.mubr.msk.f32.mxu1 %vm32688_vm0, %v32687_v0  ;;  %31804 = vmatmul.mubr.f32.vlgmr.msra.gmra.mxu0 %v20066_v43  ;;  %v20514_v6 = vsub.f32 %v35054_v5, %v20513_v13  ;;  %v35174_v43 = vsub.f32 %v186_v50, %v35155_v29 }
 0x2e4   :  { %31829 = vmatmul.mubr.f32.vlgmr.msra.gmra.mxu1 %v34992_v20  ;;  %31812 = vmatpush3.msra.mxu0 %v34970_v34  ;;  %v14938_v56 = vpop.xlane.xlu0 %14937  ;;  %v14884_v51 = vmul.f32 1.442695, %v14825_v27  ;;  %v187_v27 = vld [vmem:[#allocation7 + $0x80] sm:$0xff] }
 0x2e5   :  { %31836 = vmatprep.subr.mxu1 %v32687_v0  ;;  %14970 = vadd.xlane.f32.xlu1 %v14969_v8  ;;  %v32524_v37 = vpop.eup %32523  ;;  %32527 = vrcp.f32 %v14938_v56  ;;  %v20515_v34 = vand.u32 4294901760, %v20514_v6  ;;  %v21901_v8 = vand.u32 4294901760, %v35174_v43 }
 0x2e6   :  { %31813 = vmatprep.mubr.msk.f32.mxu0 %vm32688_vm0, %v32687_v0  ;;  %31821 = vmatprep.subr.mxu0 %v32687_v0  ;;  %v15017_v9 = vmul.f32 %v32524_v37, %v34449_v10  ;;  %v35096_v3 = vpop.eup %32525  ;;  %32529 = vpow2.f32 %v14884_v51  ;;  %v35206_v37 = vand.u32 4294901760, %v187_v27 }
 0x2e7   :  { %31837 = vmatpush3.msra.mxu1 %v20556_v17  ;;  %31838 = vmatprep.mubr.msk.f32.mxu1 %vm32688_vm0, %v32687_v0  ;;  %v14972_v54 = vsel %vm203_vm1, %v35096_v3, 0.0  ;;  %v21902_v56 = vsub.f32 %v35174_v43, %v21901_v8 }
 0x2e8   :  { %31814 = vmatmul.mubr.f32.vlgmr.msra.gmra.mxu0 %v35006_v60  ;;  %31839 = vmatmul.mubr.f32.vlgmr.msra.gmra.mxu1 %v35039_v25  ;;  %v20892_v10 = vsel %vm203_vm1, %v15017_v9, 0  ;;  %v35222_v12 = vsub.f32 %v187_v27, %v35206_v37 }
 0x2e9   :  { %31822 = vmatpush3.msra.mxu0 %v20105_v61  ;;  %31846 = vmatprep.subr.mxu1 %v32687_v0  ;;  %v35094_v24 = vand.u32 4294901760, %v20892_v10  ;;  %v21903_v6 = vand.u32 4294901760, %v21902_v56 }
 0x2ea   :  { %31823 = vmatprep.mubr.msk.f32.mxu0 %vm32688_vm0, %v32687_v0  ;;  %31831 = vmatprep.subr.mxu0 %v32687_v0 }
 0x2eb   :  { %31847 = vmatpush3.msra.mxu1 %v35002_v33  ;;  %31848 = vmatprep.mubr.msk.f32.mxu1 %vm32688_vm0, %v32687_v0  ;;  %v35108_v21 = vsub.f32 %v20892_v10, %v35094_v24 }
 0x2ec   :  { %31824 = vmatmul.mubr.f32.vlgmr.msra.gmra.mxu0 %v34992_v20  ;;  %31849 = vmatmul.mubr.f32.vlgmr.msra.gmra.mxu1 %v20513_v13 }
 0x2ed   :  { %31832 = vmatpush3.msra.mxu0 %v35002_v33  ;;  %31856 = vmatprep.subr.mxu1 %v32687_v0  ;;  %v14788_v61 = vpop.xlane.xlu1 %14787 }
 0x2ee   :  { %31833 = vmatprep.mubr.msk.f32.mxu0 %vm32688_vm0, %v32687_v0  ;;  %31841 = vmatprep.subr.mxu0 %v32687_v0  ;;  %v14826_v20 = vsub.f32 %v34524_v30, %v14788_v61 }
 0x2ef   :  { %31857 = vmatpush3.msra.mxu1 %v35002_v33  ;;  %31858 = vmatprep.mubr.msk.f32.mxu1 %vm32688_vm0, %v32687_v0  ;;  %v20962_v33 = vand.u32 4294901760, %v35108_v21 }
 0x2f0   :  { %31834 = vmatmul.mubr.f32.vlgmr.msra.gmra.mxu0 %v20515_v34  ;;  %v14941_v39 = vpop.xlane.xlu0 %14940  ;;  %31859 = vmatmul.mubr.f32.vlgmr.msra.gmra.mxu1 %v35039_v25  ;;  %v14886_v60 = vmul.f32 1.442695, %v14826_v20 }
 0x2f1   :  { %31842 = vmatpush3.msra.mxu0 %v35019_v7  ;;  %32531 = vrcp.f32 %v14941_v39  ;;  %31866 = vmatprep.subr.mxu1 %v32687_v0  ;;  %v20963_v52 = vsub.f32 %v35108_v21, %v20962_v33 }
 0x2f2   :  { %14973 = vadd.xlane.f32.xlu0 %v14972_v54  ;;  %31843 = vmatprep.mubr.msk.f32.mxu0 %vm32688_vm0, %v32687_v0  ;;  %v32528_v30 = vpop.eup %32527  ;;  %32533 = vpow2.f32 %v14886_v60  ;;  %v188_v54 = vld [vmem:[#allocation7 + $0x88] sm:$0xff] }
 0x2f3   :  { %31851 = vmatprep.subr.mxu0 %v32687_v0  ;;  %31867 = vmatpush3.msra.mxu1 %v21005_v36  ;;  %v15019_v38 = vmul.f32 %v32528_v30, %v34485_v1  ;;  %v21453_v1 = vsub.f32 %v35121_v46, %v21452_v47  ;;  %v35152_v31 = vpop.eup %32529  ;;  %v20964_v53 = vand.u32 4294901760, %v20963_v52 }
 0x2f4   :  { %31868 = vmatprep.mubr.msk.f32.mxu1 %vm32688_vm0, %v32687_v0  ;;  %31844 = vmatmul.mubr.f32.vlgmr.msra.gmra.mxu0 %v35054_v5 }
 0x2f5   :  { %31869 = vmatmul.mubr.f32.vlgmr.msra.gmra.mxu1 %v35094_v24  ;;  %31852 = vmatpush3.msra.mxu0 %v20554_v45  ;;  %v21341_v28 = vsel %vm203_vm1, %v15019_v38, 0  ;;  %v14975_v45 = vsel %vm203_vm1, %v35152_v31, 0.0  ;;  %v21454_v11 = vand.u32 4294901760, %v21453_v1 }
 0x2f6   :  { %31876 = vmatprep.subr.mxu1 %v32687_v0  ;;  %31853 = vmatprep.mubr.msk.f32.mxu0 %vm32688_vm0, %v32687_v0  ;;  %v35150_v7 = vand.u32 4294901760, %v21341_v28 }
 0x2f7   :  { %31861 = vmatprep.subr.mxu0 %v32687_v0  ;;  %31877 = vmatpush3.msra.mxu1 %v35056_v42 }
 0x2f8   :  { %31878 = vmatprep.mubr.msk.f32.mxu1 %vm32688_vm0, %v32687_v0  ;;  %31854 = vmatmul.mubr.f32.vlgmr.msra.gmra.mxu0 %v35039_v25  ;;  %v35160_v26 = vsub.f32 %v21341_v28, %v35150_v7 }
 0x2f9   :  { %31879 = vmatmul.mubr.f32.vlgmr.msra.gmra.mxu1 %v20962_v33  ;;  %31862 = vmatpush3.msra.mxu0 %v35056_v42 }
 0x2fa   :  { %31886 = vmatprep.subr.mxu1 %v32687_v0  ;;  %31863 = vmatprep.mubr.msk.f32.mxu0 %vm32688_vm0, %v32687_v0  ;;  %v21411_v41 = vand.u32 4294901760, %v35160_v26 }
 0x2fb   :  { %31871 = vmatprep.subr.mxu0 %v32687_v0  ;;  %31887 = vmatpush3.msra.mxu1 %v35056_v42 }
 0x2fc   :  { %31888 = vmatprep.mubr.msk.f32.mxu1 %vm32688_vm0, %v32687_v0  ;;  %v14791_v19 = vpop.xlane.xlu1 %14790  ;;  %31864 = vmatmul.mubr.f32.vlgmr.msra.gmra.mxu0 %v20964_v53  ;;  %v21412_v14 = vsub.f32 %v35160_v26, %v21411_v41 }
 0x2fd   :  { %31889 = vmatmul.mubr.f32.vlgmr.msra.gmra.mxu1 %v35094_v24  ;;  %v14827_v25 = vsub.f32 %v34578_v62, %v14791_v19  ;;  %v14944_v57 = vpop.xlane.xlu0 %14943  ;;  %31872 = vmatpush3.msra.mxu0 %v35072_v48 }
 0x2fe   :  { %v32532_v5 = vpop.eup %32531  ;;  %31896 = vmatprep.subr.mxu1 %v32687_v0  ;;  %32535 = vrcp.f32 %v14944_v57  ;;  %14976 = vadd.xlane.f32.xlu1 %v14975_v45  ;;  %v21413_v48 = vand.u32 4294901760, %v21412_v14  ;;  %v189_v14 = vld [vmem:[#allocation7 + $0x90] sm:$0xff] }
 0x2ff   :  { %v15021_v42 = vmul.f32 %v32532_v5, %v34514_v49  ;;  %31873 = vmatprep.mubr.msk.f32.mxu0 %vm32688_vm0, %v32687_v0  ;;  %31881 = vmatprep.subr.mxu0 %v32687_v0  ;;  %v14888_v62 = vmul.f32 1.442695, %v14827_v25  ;;  %v35198_v13 = vpop.eup %32533 }
 0x300   :  { %31897 = vmatpush3.msra.mxu1 %v21454_v11  ;;  %31898 = vmatprep.mubr.msk.f32.mxu1 %vm32688_vm0, %v32687_v0  ;;  %v14978_v51 = vsel %vm203_vm1, %v35198_v13, 0.0 }
 0x301   :  { %31874 = vmatmul.mubr.f32.vlgmr.msra.gmra.mxu0 %v35108_v21  ;;  %v21790_v17 = vsel %vm203_vm1, %v15021_v42, 0  ;;  %31899 = vmatmul.mubr.f32.vlgmr.msra.gmra.mxu1 %v35150_v7  ;;  %32537 = vpow2.f32 %v14888_v62  ;;  %v22350_v21 = vand.u32 4294901760, %v35222_v12 }
 0x302   :  { %31882 = vmatpush3.msra.mxu0 %v21003_v2  ;;  %v35191_v49 = vand.u32 4294901760, %v21790_v17  ;;  %31906 = vmatprep.subr.mxu1 %v32687_v0 }
 0x303   :  { %31883 = vmatprep.mubr.msk.f32.mxu0 %vm32688_vm0, %v32687_v0  ;;  %31891 = vmatprep.subr.mxu0 %v32687_v0  ;;  %v22351_v20 = vsub.f32 %v35222_v12, %v22350_v21 }
 0x304   :  { %31907 = vmatpush3.msra.mxu1 %v35104_v32  ;;  %31908 = vmatprep.mubr.msk.f32.mxu1 %vm32688_vm0, %v32687_v0  ;;  %v35210_v9 = vsub.f32 %v21790_v17, %v35191_v49 }
 0x305   :  { %31884 = vmatmul.mubr.f32.vlgmr.msra.gmra.mxu0 %v35094_v24  ;;  %31909 = vmatmul.mubr.f32.vlgmr.msra.gmra.mxu1 %v21411_v41  ;;  %v22352_v52 = vand.u32 4294901760, %v22351_v20 }
 0x306   :  { %31892 = vmatpush3.msra.mxu0 %v35104_v32  ;;  %31916 = vmatprep.subr.mxu1 %v32687_v0  ;;  %v21860_v24 = vand.u32 4294901760, %v35210_v9 }
 0x307   :  { %31893 = vmatprep.mubr.msk.f32.mxu0 %vm32688_vm0, %v32687_v0  ;;  %31901 = vmatprep.subr.mxu0 %v32687_v0 }
 0x308   :  { %31917 = vmatpush3.msra.mxu1 %v35104_v32  ;;  %31918 = vmatprep.mubr.msk.f32.mxu1 %vm32688_vm0, %v32687_v0  ;;  %v21861_v61 = vsub.f32 %v35210_v9, %v21860_v24 }
 0x309   :  { %31894 = vmatmul.mubr.f32.vlgmr.msra.gmra.mxu0 %v21413_v48  ;;  %v14794_v2 = vpop.xlane.xlu1 %14793  ;;  %31919 = vmatmul.mubr.f32.vlgmr.msra.gmra.mxu1 %v35150_v7 }
 0x30a   :  { %31902 = vmatpush3.msra.mxu0 %v35121_v46  ;;  %v14828_v10 = vsub.f32 %v34639_v18, %v14794_v2  ;;  %v14947_v34 = vpop.xlane.xlu0 %14946  ;;  %31926 = vmatprep.subr.mxu1 %v32687_v0  ;;  %v35254_v46 = vand.u32 4294901760, %v188_v54  ;;  %v21862_v30 = vand.u32 4294901760, %v21861_v61 }
 0x30b   :  { %v32536_v22 = vpop.eup %32535  ;;  %14979 = vadd.xlane.f32.xlu0 %v14978_v51  ;;  %32539 = vrcp.f32 %v14947_v34  ;;  %31903 = vmatprep.mubr.msk.f32.mxu0 %vm32688_vm0, %v32687_v0  ;;  %v35308_v51 = vand.u32 4294901760, %v189_v14 }
 0x30c   :  { %v15023_v32 = vmul.f32 %v32536_v22, %v34567_v63  ;;  %31911 = vmatprep.subr.mxu0 %v32687_v0  ;;  %31927 = vmatpush3.msra.mxu1 %v21903_v6  ;;  %v14890_v18 = vmul.f32 1.442695, %v14828_v10  ;;  %v35273_v28 = vsub.f32 %v188_v54, %v35254_v46 }
 0x30d   :  { %31928 = vmatprep.mubr.msk.f32.mxu1 %vm32688_vm0, %v32687_v0  ;;  %31904 = vmatmul.mubr.f32.vlgmr.msra.gmra.mxu0 %v35160_v26  ;;  %v35326_v61 = vsub.f32 %v189_v14, %v35308_v51 }
 0x30e   :  { %31929 = vmatmul.mubr.f32.vlgmr.msra.gmra.mxu1 %v35191_v49  ;;  %v22239_v63 = vsel %vm203_vm1, %v15023_v32, 0  ;;  %31912 = vmatpush3.msra.mxu0 %v21452_v47  ;;  %32541 = vpow2.f32 %v14890_v18  ;;  %v35256_v33 = vpop.eup %32537  ;;  %v22799_v41 = vand.u32 4294901760, %v35273_v28 }
 0x30f   :  { %31936 = vmatprep.subr.mxu1 %v32687_v0  ;;  %v35243_v36 = vand.u32 4294901760, %v22239_v63  ;;  %31913 = vmatprep.mubr.msk.f32.mxu0 %vm32688_vm0, %v32687_v0  ;;  %v14981_v38 = vsel %vm203_vm1, %v35256_v33, 0.0 }
 0x310   :  { %31921 = vmatprep.subr.mxu0 %v32687_v0  ;;  %31937 = vmatpush3.msra.mxu1 %v35155_v29  ;;  %v15205_v39 = vpop.f32.mrf.mxu1 }
 0x311   :  { %31938 = vmatprep.mubr.msk.f32.mxu1 %vm32688_vm0, %v32687_v0  ;;  %31914 = vmatmul.mubr.f32.vlgmr.msra.gmra.mxu0 %v35150_v7  ;;  %v35260_v60 = vsub.f32 %v22239_v63, %v35243_v36 }
 0x312   :  { %31939 = vmatmul.mubr.f32.vlgmr.msra.gmra.mxu1 %v21860_v24  ;;  %31922 = vmatpush3.msra.mxu0 %v35155_v29  ;;  %v31480_v47 = vpop.f32.mrf.mxu1 }
 0x313   :  { %31946 = vmatprep.subr.mxu1 %v32687_v0  ;;  %31923 = vmatprep.mubr.msk.f32.mxu0 %vm32688_vm0, %v32687_v0  ;;  %v22309_v7 = vand.u32 4294901760, %v35260_v60 }
 0x314   :  { %31931 = vmatprep.subr.mxu0 %v32687_v0  ;;  %31947 = vmatpush3.msra.mxu1 %v35155_v29  ;;  %v15353_v50 = vpop.f32.mrf.mxu1 }
 0x315   :  { %31948 = vmatprep.mubr.msk.f32.mxu1 %vm32688_vm0, %v32687_v0  ;;  %31924 = vmatmul.mubr.f32.vlgmr.msra.gmra.mxu0 %v21862_v30  ;;  %v22310_v5 = vsub.f32 %v35260_v60, %v22309_v7 }
 0x316   :  { %31949 = vmatmul.mubr.f32.vlgmr.msra.gmra.mxu1 %v35191_v49  ;;  %v14797_v1 = vpop.xlane.xlu1 %14796  ;;  %31932 = vmatpush3.msra.mxu0 %v35174_v43  ;;  %v31490_v26 = vpop.f32.mrf.mxu1  ;;  %v22800_v43 = vsub.f32 %v35273_v28, %v22799_v41 }
 0x317   :  { %31956 = vmatprep.subr.mxu1 %v32687_v0  ;;  %v14829_v53 = vsub.f32 %v34696_v4, %v14797_v1  ;;  %v14950_v29 = vpop.xlane.xlu0 %14949  ;;  %14982 = vadd.xlane.f32.xlu1 %v14981_v38  ;;  %v22311_v48 = vand.u32 4294901760, %v22310_v5 }
 0x318   :  { %v32540_v45 = vpop.eup %32539  ;;  %31933 = vmatprep.mubr.msk.f32.mxu0 %vm32688_vm0, %v32687_v0  ;;  %32543 = vrcp.f32 %v14950_v29  ;;  %31941 = vmatprep.subr.mxu0 %v32687_v0  ;;  %v15129_v19 = vpop.f32.mrf.mxu0  ;;  %v22801_v22 = vand.u32 4294901760, %v22800_v43  ;;  %v190_v29 = vld [vmem:[#allocation7 + $0x98] sm:$0xff] }
 0x319   :  { %v15025_v11 = vmul.f32 %v32540_v45, %v34627_v40  ;;  %31957 = vmatpush3.msra.mxu1 %v22352_v52  ;;  %v15499_v25 = vpop.f32.mrf.mxu1  ;;  %31958 = vmatprep.mubr.msk.f32.mxu1 %vm32688_vm0, %v32687_v0  ;;  %v14892_v4 = vmul.f32 1.442695, %v14829_v53  ;;  %v15206_v57 = vadd.f32 %v15205_v39, %v15129_v19 }
 0x31a   :  { %31934 = vmatmul.mubr.f32.vlgmr.msra.gmra.mxu0 %v35210_v9  ;;  %31959 = vmatmul.mubr.f32.vlgmr.msra.gmra.mxu1 %v35243_v36  ;;  %v31475_v40 = vpop.f32.mrf.mxu0 }
 0x31b   :  { %31942 = vmatpush3.msra.mxu0 %v21901_v8  ;;  %v31500_v42 = vpop.f32.mrf.mxu1  ;;  %v22688_v62 = vsel %vm203_vm1, %v15025_v11, 0  ;;  %31966 = vmatprep.subr.mxu1 %v32687_v0  ;;  %v35303_v27 = vpop.eup %32541  ;;  %32545 = vpow2.f32 %v14892_v4  ;;  %v35367_v4 = vand.u32 4294901760, %v190_v29 }
 0x31c   :  { %31943 = vmatprep.mubr.msk.f32.mxu0 %vm32688_vm0, %v32687_v0  ;;  %v35296_v17 = vand.u32 4294901760, %v22688_v62  ;;  %31951 = vmatprep.subr.mxu0 %v32687_v0  ;;  %v15279_v8 = vpop.f32.mrf.mxu0 }
 0x31d   :  { %31967 = vmatpush3.msra.mxu1 %v35206_v37  ;;  %31968 = vmatprep.mubr.msk.f32.mxu1 %vm32688_vm0, %v32687_v0  ;;  %v15280_v56 = vadd.f32 %v15279_v8, %v15206_v57  ;;  %v35384_v8 = vsub.f32 %v190_v29, %v35367_v4 }
 0x31e   :  { %31944 = vmatmul.mubr.f32.vlgmr.msra.gmra.mxu0 %v35191_v49  ;;  %v15654_v9 = vpop.f32.mrf.mxu1  ;;  %31969 = vmatmul.mubr.f32.vlgmr.msra.gmra.mxu1 %v22309_v7  ;;  %v35312_v6 = vsub.f32 %v22688_v62, %v35296_v17  ;;  %v31485_v2 = vpop.f32.mrf.mxu0  ;;  %v14984_v49 = vsel %vm203_vm1, %v35303_v27, 0.0 }
 0x31f   :  { %31952 = vmatpush3.msra.mxu0 %v35206_v37  ;;  %31976 = vmatprep.subr.mxu1 %v32687_v0  ;;  %v15354_v24 = vadd.f32 %v15353_v50, %v15280_v56  ;;  %v23248_v50 = vand.u32 4294901760, %v35326_v61 }
 0x320   :  { %31953 = vmatprep.mubr.msk.f32.mxu0 %vm32688_vm0, %v32687_v0  ;;  %v31510_v10 = vpop.f32.mrf.mxu1  ;;  %31961 = vmatprep.subr.mxu0 %v32687_v0  ;;  %v15427_v34 = vpop.f32.mrf.mxu0 }
 0x321   :  { %31977 = vmatpush3.msra.mxu1 %v35206_v37  ;;  %31978 = vmatprep.mubr.msk.f32.mxu1 %vm32688_vm0, %v32687_v0  ;;  %v15428_v32 = vadd.f32 %v15427_v34, %v15354_v24  ;;  %v22758_v37 = vand.u32 4294901760, %v35312_v6 }
 0x322   :  { %31954 = vmatmul.mubr.f32.vlgmr.msra.gmra.mxu0 %v22311_v48  ;;  %v35323_v18 = vpop.f32.mrf.mxu1  ;;  %31979 = vmatmul.mubr.f32.vlgmr.msra.gmra.mxu1 %v35243_v36  ;;  %v31495_v63 = vpop.f32.mrf.mxu0 }
 0x323   :  { %31962 = vmatpush3.msra.mxu0 %v35222_v12  ;;  %31986 = vmatprep.subr.mxu1 %v32687_v0  ;;  %v35332_v54 = vadd.f32 %v15499_v25, %v15428_v32  ;;  %v14953_v20 = vpop.xlane.xlu0 %14952  ;;  %v22759_v1 = vsub.f32 %v35312_v6, %v22758_v37  ;;  %v23249_v12 = vsub.f32 %v35326_v61, %v23248_v50 }
 0x324   :  { %14985 = vadd.xlane.f32.xlu0 %v14984_v49  ;;  %v31520_v39 = vpop.f32.mrf.mxu1  ;;  %31963 = vmatprep.mubr.msk.f32.mxu0 %vm32688_vm0, %v32687_v0  ;;  %32547 = vrcp.f32 %v14953_v20 }
 0x325   :  { %v32544_v30 = vpop.eup %32543  ;;  %31971 = vmatprep.subr.mxu0 %v32687_v0  ;;  %31987 = vmatpush3.msra.mxu1 %v22801_v22  ;;  %v15578_v38 = vpop.f32.mrf.mxu0  ;;  %v22760_v19 = vand.u32 4294901760, %v22759_v1  ;;  %v23250_v42 = vand.u32 4294901760, %v23249_v12  ;;  %v23697_v22 = vand.u32 4294901760, %v35384_v8 }
 0x326   :  { %v15027_v47 = vmul.f32 %v32544_v30, %v34685_v15  ;;  %31988 = vmatprep.mubr.msk.f32.mxu1 %vm32688_vm0, %v32687_v0  ;;  %v35340_v52 = vpop.f32.mrf.mxu1  ;;  %31964 = vmatmul.mubr.f32.vlgmr.msra.gmra.mxu0 %v35260_v60  ;;  %v15655_v11 = vadd.f32 %v15654_v9, %v15578_v38 }
 0x327   :  { %31989 = vmatmul.mubr.f32.vlgmr.msra.gmra.mxu1 %v35296_v17  ;;  %31972 = vmatpush3.msra.mxu0 %v22350_v21  ;;  %v31505_v15 = vpop.f32.mrf.mxu0  ;;  %v23698_v20 = vsub.f32 %v35384_v8, %v23697_v22 }
 0x328   :  { %31996 = vmatprep.subr.mxu1 %v32687_v0  ;;  %v31530_v7 = vpop.f32.mrf.mxu1  ;;  %v23137_v53 = vsel %vm203_vm1, %v15027_v47, 0  ;;  %31973 = vmatprep.mubr.msk.f32.mxu0 %vm32688_vm0, %v32687_v0  ;;  %v35361_v45 = vpop.eup %32545 }
 0x329   :  { %31981 = vmatprep.subr.mxu0 %v32687_v0  ;;  %v35353_v60 = vand.u32 4294901760, %v23137_v53  ;;  %31997 = vmatpush3.msra.mxu1 %v35254_v46  ;;  %v15728_v21 = vpop.f32.mrf.mxu0  ;;  %v14987_v40 = vsel %vm203_vm1, %v35361_v45, 0.0 }
 0x32a   :  { %31998 = vmatprep.mubr.msk.f32.mxu1 %vm32688_vm0, %v32687_v0  ;;  %v16103_v26 = vpop.f32.mrf.mxu1  ;;  %31974 = vmatmul.mubr.f32.vlgmr.msra.gmra.mxu0 %v35243_v36  ;;  %v15729_v36 = vadd.f32 %v15728_v21, %v15655_v11 }
 0x32b   :  { %31999 = vmatmul.mubr.f32.vlgmr.msra.gmra.mxu1 %v22758_v37  ;;  %v35365_v25 = vsub.f32 %v23137_v53, %v35353_v60  ;;  %31982 = vmatpush3.msra.mxu0 %v35254_v46  ;;  %v31515_v57 = vpop.f32.mrf.mxu0  ;;  %v23699_v53 = vand.u32 4294901760, %v23698_v20 }
 0x32c   :  { %32006 = vmatprep.subr.mxu1 %v32687_v0  ;;  %v31540_v5 = vpop.f32.mrf.mxu1  ;;  %31983 = vmatprep.mubr.msk.f32.mxu0 %vm32688_vm0, %v32687_v0  ;;  %v15803_v56 = vadd.f32 %v35323_v18, %v15729_v36  ;;  %v191_v18 = vld [vmem:[#allocation7 + $0xa0] sm:$0xff] }
 0x32d   :  { %31991 = vmatprep.subr.mxu0 %v32687_v0  ;;  %32007 = vmatpush3.msra.mxu1 %v35254_v46  ;;  %v15876_v62 = vpop.f32.mrf.mxu0  ;;  %v23207_v43 = vand.u32 4294901760, %v35365_v25  ;;  %v35417_v47 = vand.u32 4294901760, %v191_v18 }
 0x32e   :  { %32008 = vmatprep.mubr.msk.f32.mxu1 %vm32688_vm0, %v32687_v0  ;;  %v35379_v14 = vpop.f32.mrf.mxu1  ;;  %31984 = vmatmul.mubr.f32.vlgmr.msra.gmra.mxu0 %v22760_v19 }
 0x32f   :  { %32009 = vmatmul.mubr.f32.vlgmr.msra.gmra.mxu1 %v35296_v17  ;;  %31992 = vmatpush3.msra.mxu0 %v35273_v28  ;;  %v31525_v48 = vpop.f32.mrf.mxu0  ;;  %v23208_v34 = vsub.f32 %v35365_v25, %v23207_v43  ;;  %v35434_v21 = vsub.f32 %v191_v18, %v35417_v47 }
 0x330   :  { %32016 = vmatprep.subr.mxu1 %v32687_v0  ;;  %v14956_v46 = vpop.xlane.xlu0 %14955  ;;  %14988 = vadd.xlane.f32.xlu1 %v14987_v40  ;;  %v31550_v9 = vpop.f32.mrf.mxu1 }
 0x331   :  { %31993 = vmatprep.mubr.msk.f32.mxu0 %vm32688_vm0, %v32687_v0  ;;  %32549 = vrcp.f32 %v14956_v46  ;;  %v32548_v2 = vpop.eup %32547  ;;  %32001 = vmatprep.subr.mxu0 %v32687_v0  ;;  %v16027_v10 = vpop.f32.mrf.mxu0  ;;  %v24146_v40 = vand.u32 4294901760, %v35434_v21  ;;  %v192_v46 = vld [vmem:[#allocation7 + $0xa8] sm:$0xff] }
 0x332   :  { %32017 = vmatpush3.msra.mxu1 %v23250_v42  ;;  %v15029_v24 = vmul.f32 %v32548_v2, %v34744_v16  ;;  %32018 = vmatprep.mubr.msk.f32.mxu1 %vm32688_vm0, %v32687_v0  ;;  %v35396_v49 = vpop.f32.mrf.mxu1  ;;  %v15877_v16 = vadd.f32 %v15876_v62, %v15803_v56  ;;  %v16104_v28 = vadd.f32 %v16103_v26, %v16027_v10 }
 0x333   :  { %31994 = vmatmul.mubr.f32.vlgmr.msra.gmra.mxu0 %v35312_v6  ;;  %32019 = vmatmul.mubr.f32.vlgmr.msra.gmra.mxu1 %v35353_v60  ;;  %v31535_v32 = vpop.f32.mrf.mxu0 }
 0x334   :  { %32002 = vmatpush3.msra.mxu0 %v22799_v41  ;;  %32026 = vmatprep.subr.mxu1 %v32687_v0  ;;  %v31560_v6 = vpop.f32.mrf.mxu1  ;;  %v23586_v37 = vsel %vm203_vm1, %v15029_v24, 0  ;;  %v23209_v41 = vand.u32 4294901760, %v23208_v34  ;;  %v35473_v24 = vand.u32 4294901760, %v192_v46 }
 0x335   :  { %32003 = vmatprep.mubr.msk.f32.mxu0 %vm32688_vm0, %v32687_v0  ;;  %32011 = vmatprep.subr.mxu0 %v32687_v0  ;;  %v35409_v63 = vand.u32 4294901760, %v23586_v37 }
 0x336   :  { %32027 = vmatpush3.msra.mxu1 %v35308_v51  ;;  %32028 = vmatprep.mubr.msk.f32.mxu1 %vm32688_vm0, %v32687_v0  ;;  %v16177_v39 = vpop.f32.mrf.mxu0 }
 0x337   :  { %32004 = vmatmul.mubr.f32.vlgmr.msra.gmra.mxu0 %v35296_v17  ;;  %v16552_v30 = vpop.f32.mrf.mxu1  ;;  %32029 = vmatmul.mubr.f32.vlgmr.msra.gmra.mxu1 %v23207_v43  ;;  %v35421_v38 = vsub.f32 %v23586_v37, %v35409_v63  ;;  %v15949_v17 = vadd.f32 %v35340_v52, %v15877_v16  ;;  %v16178_v1 = vadd.f32 %v16177_v39, %v16104_v28 }
 0x338   :  { %32012 = vmatpush3.msra.mxu0 %v35308_v51  ;;  %32036 = vmatprep.subr.mxu1 %v32687_v0  ;;  %v31545_v15 = vpop.f32.mrf.mxu0  ;;  %v35487_v28 = vsub.f32 %v192_v46, %v35473_v24 }
 0x339   :  { %32013 = vmatprep.mubr.msk.f32.mxu0 %vm32688_vm0, %v32687_v0  ;;  %v31570_v7 = vpop.f32.mrf.mxu1  ;;  %32021 = vmatprep.subr.mxu0 %v32687_v0  ;;  %v23656_v52 = vand.u32 4294901760, %v35421_v38 }
 0x33a   :  { %32037 = vmatpush3.msra.mxu1 %v35308_v51  ;;  %32038 = vmatprep.mubr.msk.f32.mxu1 %vm32688_vm0, %v32687_v0  ;;  %v16325_v29 = vpop.f32.mrf.mxu0  ;;  %v16252_v51 = vadd.f32 %v35379_v14, %v16178_v1 }
 0x33b   :  { %32014 = vmatmul.mubr.f32.vlgmr.msra.gmra.mxu0 %v23209_v41  ;;  %v35431_v12 = vpop.f32.mrf.mxu1  ;;  %32039 = vmatmul.mubr.f32.vlgmr.msra.gmra.mxu1 %v35353_v60  ;;  %v23657_v62 = vsub.f32 %v35421_v38, %v23656_v52 }
 0x33c   :  { %32022 = vmatpush3.msra.mxu0 %v35326_v61  ;;  %29430 = vrot.lane.b32.xlu0 %v15949_v17, %s32684_s21  ;;  %v14959_v26 = vpop.xlane.xlu0 %14958  ;;  %v31555_v11 = vpop.f32.mrf.mxu0  ;;  %v24147_v61 = vsub.f32 %v35434_v21, %v24146_v40 }
 0x33d   :  { %32046 = vmatprep.subr.mxu1 %v32687_v0  ;;  %32023 = vmatprep.mubr.msk.f32.mxu0 %vm32688_vm0, %v32687_v0  ;;  %32551 = vrcp.f32 %v14959_v26  ;;  %v31580_v57 = vpop.f32.mrf.mxu1  ;;  %v23658_v56 = vand.u32 4294901760, %v23657_v62 }
 0x33e   :  { %v32550_v19 = vpop.eup %32549  ;;  %32031 = vmatprep.subr.mxu0 %v32687_v0  ;;  %32047 = vmatpush3.msra.mxu1 %v23699_v53  ;;  %v16476_v36 = vpop.f32.mrf.mxu0  ;;  %v24148_v16 = vand.u32 4294901760, %v24147_v61  ;;  %v24595_v53 = vand.u32 4294901760, %v35487_v28 }
 0x33f   :  { %v15031_v5 = vmul.f32 %v32550_v19, %v34790_v59  ;;  %32048 = vmatprep.mubr.msk.f32.mxu1 %vm32688_vm0, %v32687_v0  ;;  %32024 = vmatmul.mubr.f32.vlgmr.msra.gmra.mxu0 %v35365_v25  ;;  %v35451_v42 = vpop.f32.mrf.mxu1  ;;  %v16326_v59 = vadd.f32 %v16325_v29, %v16252_v51 }
 0x340   :  { %32049 = vmatmul.mubr.f32.vlgmr.msra.gmra.mxu1 %v35409_v63  ;;  %32032 = vmatpush3.msra.mxu0 %v23248_v50  ;;  %v31565_v14 = vpop.f32.mrf.mxu0  ;;  %v16553_v50 = vadd.f32 %v16552_v30, %v16476_v36  ;;  %v24596_v26 = vsub.f32 %v35487_v28, %v24595_v53 }
 0x341   :  { %32056 = vmatprep.subr.mxu1 %v32687_v0  ;;  %v24035_v43 = vsel %vm203_vm1, %v15031_v5, 0  ;;  %32033 = vmatprep.mubr.msk.f32.mxu0 %vm32688_vm0, %v32687_v0  ;;  %v31590_v25 = vpop.f32.mrf.mxu1  ;;  %v16398_v34 = vadd.f32 %v35396_v49, %v16326_v59 }
 0x342   :  { %32041 = vmatprep.subr.mxu0 %v32687_v0  ;;  %v35461_v48 = vand.u32 4294901760, %v24035_v43  ;;  %32057 = vmatpush3.msra.mxu1 %v35367_v4  ;;  %v24597_v14 = vand.u32 4294901760, %v24596_v26 }
 0x343   :  { %32058 = vmatprep.mubr.msk.f32.mxu1 %vm32688_vm0, %v32687_v0  ;;  %32034 = vmatmul.mubr.f32.vlgmr.msra.gmra.mxu0 %v35353_v60  ;;  %v16626_v9 = vpop.f32.mrf.mxu0 }
 0x344   :  { %32059 = vmatmul.mubr.f32.vlgmr.msra.gmra.mxu1 %v23656_v52  ;;  %v17001_v2 = vpop.f32.mrf.mxu1  ;;  %v35471_v10 = vsub.f32 %v24035_v43, %v35461_v48  ;;  %32042 = vmatpush3.msra.mxu0 %v35367_v4  ;;  %v16627_v60 = vadd.f32 %v16626_v9, %v16553_v50 }
 0x345   :  { %32066 = vmatprep.subr.mxu1 %v32687_v0  ;;  %32043 = vmatprep.mubr.msk.f32.mxu0 %vm32688_vm0, %v32687_v0  ;;  %v31575_v32 = vpop.f32.mrf.mxu0 }
 0x346   :  { %32051 = vmatprep.subr.mxu0 %v32687_v0  ;;  %v31600_v18 = vpop.f32.mrf.mxu1  ;;  %32067 = vmatpush3.msra.mxu1 %v35367_v4  ;;  %v24105_v37 = vand.u32 4294901760, %v35471_v10  ;;  %v16701_v41 = vadd.f32 %v35431_v12, %v16627_v60  ;;  %v193_v12 = vld [vmem:[#allocation7 + $0xb0] sm:$0xff] }
 0x347   :  { %32068 = vmatprep.mubr.msk.f32.mxu1 %vm32688_vm0, %v32687_v0  ;;  %32044 = vmatmul.mubr.f32.vlgmr.msra.gmra.mxu0 %v23658_v56  ;;  %v16774_v49 = vpop.f32.mrf.mxu0  ;;  %v35519_v11 = vand.u32 4294901760, %v193_v12 }
 0x348   :  { %32069 = vmatmul.mubr.f32.vlgmr.msra.gmra.mxu1 %v35409_v63  ;;  %v17149_v6 = vpop.f32.mrf.mxu1  ;;  %32052 = vmatpush3.msra.mxu0 %v35384_v8  ;;  %v24106_v7 = vsub.f32 %v35471_v10, %v24105_v37 }
 0x349   :  { %29462 = vrot.lane.b32.xlu0 %v16398_v34, %s32689_s2  ;;  %v14962_v4 = vpop.xlane.xlu0 %14961  ;;  %32076 = vmatprep.subr.mxu1 %v32687_v0  ;;  %v31585_v20 = vpop.f32.mrf.mxu0 }
 0x34a   :  { %32053 = vmatprep.mubr.msk.f32.mxu0 %vm32688_vm0, %v32687_v0  ;;  %32553 = vrcp.f32 %v14962_v4  ;;  %v31610_v39 = vpop.f32.mrf.mxu1  ;;  %v32552_v30 = vpop.eup %32551  ;;  %32061 = vmatprep.subr.mxu0 %v32687_v0 }
 0x34b   :  { %32077 = vmatpush3.msra.mxu1 %v24148_v16  ;;  %v15033_v17 = vmul.f32 %v32552_v30, %v34846_v44  ;;  %32078 = vmatprep.mubr.msk.f32.mxu1 %vm32688_vm0, %v32687_v0  ;;  %v16925_v1 = vpop.f32.mrf.mxu0  ;;  %v16775_v44 = vadd.f32 %v16774_v49, %v16701_v41 }
 0x34c   :  { %32054 = vmatmul.mubr.f32.vlgmr.msra.gmra.mxu0 %v35421_v38  ;;  %v17295_v15 = vpop.f32.mrf.mxu1  ;;  %32079 = vmatmul.mubr.f32.vlgmr.msra.gmra.mxu1 %v35461_v48  ;;  %v17002_v29 = vadd.f32 %v17001_v2, %v16925_v1 }
 0x34d   :  { %32062 = vmatpush3.msra.mxu0 %v23697_v22  ;;  %32086 = vmatprep.subr.mxu1 %v32687_v0  ;;  %v31595_v38 = vpop.f32.mrf.mxu0  ;;  %v24484_v51 = vsel %vm203_vm1, %v15033_v17, 0  ;;  %v24107_v22 = vand.u32 4294901760, %v24106_v7  ;;  %v16847_v36 = vadd.f32 %v35451_v42, %v16775_v44  ;;  %v35534_v42 = vsub.f32 %v193_v12, %v35519_v11 }
 0x34e   :  { %32063 = vmatprep.mubr.msk.f32.mxu0 %vm32688_vm0, %v32687_v0  ;;  %v31620_v52 = vpop.f32.mrf.mxu1  ;;  %32071 = vmatprep.subr.mxu0 %v32687_v0  ;;  %v35511_v8 = vand.u32 4294901760, %v24484_v51 }
 0x34f   :  { %32087 = vmatpush3.msra.mxu1 %v35417_v47  ;;  %32088 = vmatprep.mubr.msk.f32.mxu1 %vm32688_vm0, %v32687_v0  ;;  %v25044_v32 = vand.u32 4294901760, %v35534_v42 }
 0x350   :  { %32064 = vmatmul.mubr.f32.vlgmr.msra.gmra.mxu0 %v35409_v63  ;;  %32089 = vmatmul.mubr.f32.vlgmr.msra.gmra.mxu1 %v24105_v37  ;;  %v17075_v19 = vpop.f32.mrf.mxu0  ;;  %v35523_v5 = vsub.f32 %v24484_v51, %v35511_v8 }
 0x351   :  { %32072 = vmatpush3.msra.mxu0 %v35417_v47  ;;  %v17450_v57 = vpop.f32.mrf.mxu1  ;;  %32096 = vmatprep.subr.mxu1 %v32687_v0  ;;  %v17076_v63 = vadd.f32 %v17075_v19, %v17002_v29 }
 0x352   :  { %32073 = vmatprep.mubr.msk.f32.mxu0 %vm32688_vm0, %v32687_v0  ;;  %32081 = vmatprep.subr.mxu0 %v32687_v0  ;;  %v31605_v62 = vpop.f32.mrf.mxu0  ;;  %v24554_v61 = vand.u32 4294901760, %v35523_v5 }
 0x353   :  { %32097 = vmatpush3.msra.mxu1 %v35417_v47  ;;  %v31630_v59 = vpop.f32.mrf.mxu1  ;;  %32098 = vmatprep.mubr.msk.f32.mxu1 %vm32688_vm0, %v32687_v0  ;;  %v17150_v43 = vadd.f32 %v17149_v6, %v17076_v63  ;;  %v194_v6 = vld [vmem:[#allocation7 + $0xb8] sm:$0xff] }
 0x354   :  { %32074 = vmatmul.mubr.f32.vlgmr.msra.gmra.mxu0 %v24107_v22  ;;  %32099 = vmatmul.mubr.f32.vlgmr.msra.gmra.mxu1 %v35461_v48  ;;  %v17223_v46 = vpop.f32.mrf.mxu0  ;;  %v24555_v49 = vsub.f32 %v35523_v5, %v24554_v61  ;;  %v35570_v41 = vand.u32 4294901760, %v194_v6 }
 0x355   :  { %32082 = vmatpush3.msra.mxu0 %v35434_v21  ;;  %v17598_v25 = vpop.f32.mrf.mxu1  ;;  %29494 = vrot.lane.b32.xlu0 %v16847_v36, %s32690_s3  ;;  %v17224_v47 = vadd.f32 %v17223_v46, %v17150_v43  ;;  %v14965_v50 = vpop.xlane.xlu0 %14964 }
 0x356   :  { %32106 = vmatprep.subr.mxu1 %v32687_v0  ;;  %32083 = vmatprep.mubr.msk.f32.mxu0 %vm32688_vm0, %v32687_v0  ;;  %32555 = vrcp.f32 %v14965_v50  ;;  %v31615_v9 = vpop.f32.mrf.mxu0  ;;  %v24556_v20 = vand.u32 4294901760, %v24555_v49  ;;  %v35585_v29 = vsub.f32 %v194_v6, %v35570_v41 }
 0x357   :  { %v32554_v56 = vpop.eup %32553  ;;  %32091 = vmatprep.subr.mxu0 %v32687_v0  ;;  %v31640_v2 = vpop.f32.mrf.mxu1  ;;  %32107 = vmatpush3.msra.mxu1 %v24597_v14  ;;  %v35547_v60 = vadd.f32 %v17295_v15, %v17224_v47  ;;  %v195_v14 = vld [vmem:[#allocation7 + $0xc0] sm:$0xff] }
 0x358   :  { %v15035_v34 = vmul.f32 %v32554_v56, %v34892_v58  ;;  %32108 = vmatprep.mubr.msk.f32.mxu1 %vm32688_vm0, %v32687_v0  ;;  %32084 = vmatmul.mubr.f32.vlgmr.msra.gmra.mxu0 %v35471_v10  ;;  %v17374_v18 = vpop.f32.mrf.mxu0  ;;  %v25493_v19 = vand.u32 4294901760, %v35585_v29 }
 0x359   :  { %32109 = vmatmul.mubr.f32.vlgmr.msra.gmra.mxu1 %v35511_v8  ;;  %v35552_v16 = vpop.f32.mrf.mxu1  ;;  %32092 = vmatpush3.msra.mxu0 %v24146_v40  ;;  %v17451_v21 = vadd.f32 %v17450_v57, %v17374_v18  ;;  %v25045_v40 = vsub.f32 %v35534_v42, %v25044_v32 }
 0x35a   :  { %32116 = vmatprep.subr.mxu1 %v32687_v0  ;;  %v24933_v58 = vsel %vm203_vm1, %v15035_v34, 0  ;;  %32093 = vmatprep.mubr.msk.f32.mxu0 %vm32688_vm0, %v32687_v0  ;;  %v31625_v10 = vpop.f32.mrf.mxu0 }
 0x35b   :  { %32101 = vmatprep.subr.mxu0 %v32687_v0  ;;  %v31650_v37 = vpop.f32.mrf.mxu1  ;;  %v35562_v4 = vand.u32 4294901760, %v24933_v58  ;;  %32117 = vmatpush3.msra.mxu1 %v35473_v24 }
 0x35c   :  { %32118 = vmatprep.mubr.msk.f32.mxu1 %vm32688_vm0, %v32687_v0  ;;  %32094 = vmatmul.mubr.f32.vlgmr.msra.gmra.mxu0 %v35461_v48  ;;  %v25046_v48 = vand.u32 4294901760, %v25045_v40 }
 0x35d   :  { %32119 = vmatmul.mubr.f32.vlgmr.msra.gmra.mxu1 %v24554_v61  ;;  %v17524_v39 = vpop.f32.mrf.mxu0  ;;  %v35574_v30 = vsub.f32 %v24933_v58, %v35562_v4  ;;  %32102 = vmatpush3.msra.mxu0 %v35473_v24  ;;  %v17899_v1 = vpop.f32.mrf.mxu1  ;;  %v35619_v61 = vand.u32 4294901760, %v195_v14 }
 0x35e   :  { %32126 = vmatprep.subr.mxu1 %v32687_v0  ;;  %v17525_v17 = vadd.f32 %v17524_v39, %v17451_v21  ;;  %32103 = vmatprep.mubr.msk.f32.mxu0 %vm32688_vm0, %v32687_v0 }
 0x35f   :  { %32111 = vmatprep.subr.mxu0 %v32687_v0  ;;  %v31635_v15 = vpop.f32.mrf.mxu0  ;;  %32127 = vmatpush3.msra.mxu1 %v35473_v24  ;;  %v31660_v7 = vpop.f32.mrf.mxu1  ;;  %v25003_v44 = vand.u32 4294901760, %v35574_v30  ;;  %v35636_v49 = vsub.f32 %v195_v14, %v35619_v61 }
 0x360   :  { %32128 = vmatprep.mubr.msk.f32.mxu1 %vm32688_vm0, %v32687_v0  ;;  %32104 = vmatmul.mubr.f32.vlgmr.msra.gmra.mxu0 %v24556_v20  ;;  %v17599_v38 = vadd.f32 %v17598_v25, %v17525_v17 }
 0x361   :  { %32129 = vmatmul.mubr.f32.vlgmr.msra.gmra.mxu1 %v35511_v8  ;;  %v17672_v12 = vpop.f32.mrf.mxu0  ;;  %32112 = vmatpush3.msra.mxu0 %v35487_v28  ;;  %v18047_v24 = vpop.f32.mrf.mxu1  ;;  %v25004_v63 = vsub.f32 %v35574_v30, %v25003_v44  ;;  %v25942_v17 = vand.u32 4294901760, %v35636_v49 }
 0x362   :  { %32136 = vmatprep.subr.mxu1 %v32687_v0  ;;  %v14968_v52 = vpop.xlane.xlu0 %14967  ;;  %32113 = vmatprep.mubr.msk.f32.mxu0 %vm32688_vm0, %v32687_v0  ;;  %v17673_v62 = vadd.f32 %v17672_v12, %v17599_v38 }
 0x363   :  { %32121 = vmatprep.subr.mxu0 %v32687_v0  ;;  %32557 = vrcp.f32 %v14968_v52  ;;  %v31645_v51 = vpop.f32.mrf.mxu0  ;;  %v32556_v22 = vpop.eup %32555  ;;  %32137 = vmatpush3.msra.mxu1 %v25046_v48  ;;  %v25005_v25 = vand.u32 4294901760, %v25004_v63  ;;  %v196_v48 = vld [vmem:[#allocation7 + $0xc8] sm:$0xff]  ;;  %v25943_v38 = vsub.f32 %v35636_v49, %v25942_v17 }
 0x364   :  { %32138 = vmatprep.mubr.msk.f32.mxu1 %vm32688_vm0, %v32687_v0  ;;  %v31670_v26 = vpop.f32.mrf.mxu1  ;;  %v15037_v57 = vmul.f32 %v32556_v22, %v34948_v55  ;;  %32114 = vmatmul.mubr.f32.vlgmr.msra.gmra.mxu0 %v35523_v5  ;;  %v17745_v47 = vadd.f32 %v35552_v16, %v17673_v62 }
 0x365   :  { %32139 = vmatmul.mubr.f32.vlgmr.msra.gmra.mxu1 %v35562_v4  ;;  %v17823_v36 = vpop.f32.mrf.mxu0  ;;  %32122 = vmatpush3.msra.mxu0 %v24595_v53  ;;  %v25494_v53 = vsub.f32 %v35585_v29, %v25493_v19 }
 0x366   :  { %32146 = vmatprep.subr.mxu1 %v32687_v0  ;;  %v35604_v59 = vpop.f32.mrf.mxu1  ;;  %32123 = vmatprep.mubr.msk.f32.mxu0 %vm32688_vm0, %v32687_v0  ;;  %v25382_v5 = vsel %vm203_vm1, %v15037_v57, 0  ;;  %v17900_v46 = vadd.f32 %v17899_v1, %v17823_v36  ;;  %v25944_v36 = vand.u32 4294901760, %v25943_v38 }
 0x367   :  { %32131 = vmatprep.subr.mxu0 %v32687_v0  ;;  %v31655_v55 = vpop.f32.mrf.mxu0  ;;  %32147 = vmatpush3.msra.mxu1 %v35519_v11  ;;  %v35616_v43 = vand.u32 4294901760, %v25382_v5  ;;  %v25495_v2 = vand.u32 4294901760, %v25494_v53 }
 0x368   :  { %32148 = vmatprep.mubr.msk.f32.mxu1 %vm32688_vm0, %v32687_v0  ;;  %v31680_v28 = vpop.f32.mrf.mxu1  ;;  %32124 = vmatmul.mubr.f32.vlgmr.msra.gmra.mxu0 %v35511_v8 }
 0x369   :  { %32149 = vmatmul.mubr.f32.vlgmr.msra.gmra.mxu1 %v25003_v44  ;;  %32132 = vmatpush3.msra.mxu0 %v35519_v11  ;;  %v17973_v50 = vpop.f32.mrf.mxu0  ;;  %v35625_v9 = vsub.f32 %v25382_v5, %v35616_v43 }
 0x36a   :  { %32156 = vmatprep.subr.mxu1 %v32687_v0  ;;  %v18348_v56 = vpop.f32.mrf.mxu1  ;;  %32133 = vmatprep.mubr.msk.f32.mxu0 %vm32688_vm0, %v32687_v0  ;;  %v17974_v8 = vadd.f32 %v17973_v50, %v17900_v46 }
 0x36b   :  { %32141 = vmatprep.subr.mxu0 %v32687_v0  ;;  %32157 = vmatpush3.msra.mxu1 %v35519_v11  ;;  %v31665_v34 = vpop.f32.mrf.mxu0  ;;  %v25452_v16 = vand.u32 4294901760, %v35625_v9 }
 0x36c   :  { %32158 = vmatprep.mubr.msk.f32.mxu1 %vm32688_vm0, %v32687_v0  ;;  %v31690_v18 = vpop.f32.mrf.mxu1  ;;  %32134 = vmatmul.mubr.f32.vlgmr.msra.gmra.mxu0 %v25005_v25  ;;  %v18048_v10 = vadd.f32 %v18047_v24, %v17974_v8  ;;  %v35669_v24 = vand.u32 4294901760, %v196_v48  ;;  %v197_v8 = vld [vmem:[#allocation7 + $0xd0] sm:$0xff] }
 0x36d   :  { %32159 = vmatmul.mubr.f32.vlgmr.msra.gmra.mxu1 %v35562_v4  ;;  %32142 = vmatpush3.msra.mxu0 %v35534_v42  ;;  %v18121_v6 = vpop.f32.mrf.mxu0  ;;  %v25453_v39 = vsub.f32 %v35625_v9, %v25452_v16 }
 0x36e   :  { %29432 = vrot.lane.b32.xlu1 %v17745_v47, %s32684_s21  ;;  %v18496_v11 = vpop.f32.mrf.mxu1  ;;  %32166 = vmatprep.subr.mxu1 %v32687_v0  ;;  %v14971_v58 = vpop.xlane.xlu1 %14970  ;;  %v35684_v62 = vsub.f32 %v196_v48, %v35669_v24 }
 0x36f   :  { %32143 = vmatprep.mubr.msk.f32.mxu0 %vm32688_vm0, %v32687_v0  ;;  %32151 = vmatprep.subr.mxu0 %v32687_v0  ;;  %32559 = vrcp.f32 %v14971_v58  ;;  %v31675_v21 = vpop.f32.mrf.mxu0  ;;  %v25454_v44 = vand.u32 4294901760, %v25453_v39 }
 0x370   :  { %v32558_v37 = vpop.eup %32557  ;;  %32167 = vmatpush3.msra.mxu1 %v25495_v2  ;;  %v31700_v40 = vpop.f32.mrf.mxu1  ;;  %32168 = vmatprep.mubr.msk.f32.mxu1 %vm32688_vm0, %v32687_v0  ;;  %v26391_v25 = vand.u32 4294901760, %v35684_v62 }
 0x371   :  { %v15039_v20 = vmul.f32 %v32558_v37, %v34994_v35  ;;  %32144 = vmatmul.mubr.f32.vlgmr.msra.gmra.mxu0 %v35574_v30  ;;  %32169 = vmatmul.mubr.f32.vlgmr.msra.gmra.mxu1 %v35616_v43  ;;  %v18272_v1 = vpop.f32.mrf.mxu0  ;;  %v18122_v35 = vadd.f32 %v18121_v6, %v18048_v10  ;;  %v35716_v6 = vand.u32 4294901760, %v197_v8 }
 0x372   :  { %32152 = vmatpush3.msra.mxu0 %v25044_v32  ;;  %v35653_v15 = vpop.f32.mrf.mxu1  ;;  %32176 = vmatprep.subr.mxu1 %v32687_v0  ;;  %v18349_v12 = vadd.f32 %v18348_v56, %v18272_v1 }
 0x373   :  { %32153 = vmatprep.mubr.msk.f32.mxu0 %vm32688_vm0, %v32687_v0  ;;  %v25831_v30 = vsel %vm203_vm1, %v15039_v20, 0  ;;  %32161 = vmatprep.subr.mxu0 %v32687_v0  ;;  %v31685_v42 = vpop.f32.mrf.mxu0  ;;  %v18194_v22 = vadd.f32 %v35604_v59, %v18122_v35  ;;  %v35732_v1 = vsub.f32 %v197_v8, %v35716_v6 }
 0x374   :  { %32177 = vmatpush3.msra.mxu1 %v35570_v41  ;;  %v31710_v32 = vpop.f32.mrf.mxu1  ;;  %v35661_v7 = vand.u32 4294901760, %v25831_v30  ;;  %32178 = vmatprep.mubr.msk.f32.mxu1 %vm32688_vm0, %v32687_v0 }
 0x375   :  { %32154 = vmatmul.mubr.f32.vlgmr.msra.gmra.mxu0 %v35562_v4  ;;  %32179 = vmatmul.mubr.f32.vlgmr.msra.gmra.mxu1 %v25452_v16  ;;  %v26840_v38 = vand.u32 4294901760, %v35732_v1 }
 0x376   :  { %32162 = vmatpush3.msra.mxu0 %v35570_v41  ;;  %v18422_v52 = vpop.f32.mrf.mxu0  ;;  %v35673_v51 = vsub.f32 %v25831_v30, %v35661_v7  ;;  %32186 = vmatprep.subr.mxu1 %v32687_v0  ;;  %v18797_v26 = vpop.f32.mrf.mxu1 }
 0x377   :  { %32163 = vmatprep.mubr.msk.f32.mxu0 %vm32688_vm0, %v32687_v0  ;;  %v18423_v4 = vadd.f32 %v18422_v52, %v18349_v12  ;;  %32171 = vmatprep.subr.mxu0 %v32687_v0 }
 0x378   :  { %32187 = vmatpush3.msra.mxu1 %v35570_v41  ;;  %v31695_v57 = vpop.f32.mrf.mxu0  ;;  %32188 = vmatprep.mubr.msk.f32.mxu1 %vm32688_vm0, %v32687_v0  ;;  %v31720_v63 = vpop.f32.mrf.mxu1  ;;  %v25901_v14 = vand.u32 4294901760, %v35673_v51 }
 0x379   :  { %32164 = vmatmul.mubr.f32.vlgmr.msra.gmra.mxu0 %v25454_v44  ;;  %32189 = vmatmul.mubr.f32.vlgmr.msra.gmra.mxu1 %v35616_v43  ;;  %v18497_v41 = vadd.f32 %v18496_v11, %v18423_v4 }
 0x37a   :  { %32172 = vmatpush3.msra.mxu0 %v35585_v29  ;;  %v18570_v59 = vpop.f32.mrf.mxu0  ;;  %29464 = vrot.lane.b32.xlu1 %v18194_v22, %s32689_s2  ;;  %v18945_v55 = vpop.f32.mrf.mxu1  ;;  %v25902_v56 = vsub.f32 %v35673_v51, %v25901_v14 }
 0x37b   :  { %32196 = vmatprep.subr.mxu1 %v32687_v0  ;;  %v14974_v5 = vpop.xlane.xlu0 %14973  ;;  %32173 = vmatprep.mubr.msk.f32.mxu0 %vm32688_vm0, %v32687_v0  ;;  %v18571_v2 = vadd.f32 %v18570_v59, %v18497_v41 }
 0x37c   :  { %32181 = vmatprep.subr.mxu0 %v32687_v0  ;;  %32561 = vrcp.f32 %v14974_v5  ;;  %v31705_v28 = vpop.f32.mrf.mxu0  ;;  %v32560_v53 = vpop.eup %32559  ;;  %32197 = vmatpush3.msra.mxu1 %v25944_v36  ;;  %v25903_v11 = vand.u32 4294901760, %v25902_v56  ;;  %v198_v36 = vld [vmem:[#allocation7 + $0xd8] sm:$0xff] }
 0x37d   :  { %32198 = vmatprep.mubr.msk.f32.mxu1 %vm32688_vm0, %v32687_v0  ;;  %v31730_v46 = vpop.f32.mrf.mxu1  ;;  %v15041_v47 = vmul.f32 %v32560_v53, %v35050_v23  ;;  %32174 = vmatmul.mubr.f32.vlgmr.msra.gmra.mxu0 %v35625_v9  ;;  %v18643_v58 = vadd.f32 %v35653_v15, %v18571_v2  ;;  %v35769_v41 = vand.u32 4294901760, %v198_v36 }
 0x37e   :  { %32199 = vmatmul.mubr.f32.vlgmr.msra.gmra.mxu1 %v35661_v7  ;;  %v18721_v50 = vpop.f32.mrf.mxu0  ;;  %32182 = vmatpush3.msra.mxu0 %v25493_v19  ;;  %v26392_v19 = vsub.f32 %v35684_v62, %v26391_v25 }
 0x37f   :  { %32206 = vmatprep.subr.mxu1 %v32687_v0  ;;  %v18798_v34 = vadd.f32 %v18797_v26, %v18721_v50  ;;  %v19091_v18 = vpop.f32.mrf.mxu1  ;;  %32183 = vmatprep.mubr.msk.f32.mxu0 %vm32688_vm0, %v32687_v0  ;;  %v26280_v9 = vsel %vm203_vm1, %v15041_v47, 0  ;;  %v35784_v56 = vsub.f32 %v198_v36, %v35769_v41 }
 0x380   :  { %32191 = vmatprep.subr.mxu0 %v32687_v0  ;;  %v31715_v23 = vpop.f32.mrf.mxu0  ;;  %32207 = vmatpush3.msra.mxu1 %v35619_v61  ;;  %v35714_v16 = vand.u32 4294901760, %v26280_v9 }
 0x381   :  { %32208 = vmatprep.mubr.msk.f32.mxu1 %vm32688_vm0, %v32687_v0  ;;  %v31740_v29 = vpop.f32.mrf.mxu1  ;;  %32184 = vmatmul.mubr.f32.vlgmr.msra.gmra.mxu0 %v35616_v43  ;;  %v26393_v43 = vand.u32 4294901760, %v26392_v19  ;;  %v27289_v19 = vand.u32 4294901760, %v35784_v56 }
 0x382   :  { %32209 = vmatmul.mubr.f32.vlgmr.msra.gmra.mxu1 %v25901_v14  ;;  %32192 = vmatpush3.msra.mxu0 %v35619_v61  ;;  %v18871_v10 = vpop.f32.mrf.mxu0  ;;  %v35723_v21 = vsub.f32 %v26280_v9, %v35714_v16 }
 0x383   :  { %32216 = vmatprep.subr.mxu1 %v32687_v0  ;;  %v19246_v37 = vpop.f32.mrf.mxu1  ;;  %32193 = vmatprep.mubr.msk.f32.mxu0 %vm32688_vm0, %v32687_v0  ;;  %v18872_v40 = vadd.f32 %v18871_v10, %v18798_v34  ;;  %v199_v10 = vld [vmem:[#allocation7 + $0xe0] sm:$0xff] }
 0x384   :  { %32201 = vmatprep.subr.mxu0 %v32687_v0  ;;  %32217 = vmatpush3.msra.mxu1 %v35619_v61  ;;  %v31725_v20 = vpop.f32.mrf.mxu0  ;;  %v26350_v48 = vand.u32 4294901760, %v35723_v21 }
 0x385   :  { %32218 = vmatprep.mubr.msk.f32.mxu1 %vm32688_vm0, %v32687_v0  ;;  %v31750_v39 = vpop.f32.mrf.mxu1  ;;  %32194 = vmatmul.mubr.f32.vlgmr.msra.gmra.mxu0 %v25903_v11  ;;  %v18946_v15 = vadd.f32 %v18945_v55, %v18872_v40 }
 0x386   :  { %32219 = vmatmul.mubr.f32.vlgmr.msra.gmra.mxu1 %v35661_v7  ;;  %32202 = vmatpush3.msra.mxu0 %v35636_v49  ;;  %v19019_v61 = vpop.f32.mrf.mxu0  ;;  %v26351_v4 = vsub.f32 %v35723_v21, %v26350_v48  ;;  %v35817_v39 = vand.u32 4294901760, %v199_v10 }
 0x387   :  { %29496 = vrot.lane.b32.xlu1 %v18643_v58, %s32690_s3  ;;  %v19394_v35 = vpop.f32.mrf.mxu1  ;;  %32226 = vmatprep.subr.mxu1 %v32687_v0  ;;  %v14977_v30 = vpop.xlane.xlu1 %14976  ;;  %v19020_v42 = vadd.f32 %v19019_v61, %v18946_v15 }
 0x388   :  { %32203 = vmatprep.mubr.msk.f32.mxu0 %vm32688_vm0, %v32687_v0  ;;  %32211 = vmatprep.subr.mxu0 %v32687_v0  ;;  %32563 = vrcp.f32 %v14977_v30  ;;  %v31735_v12 = vpop.f32.mrf.mxu0  ;;  %v26352_v14 = vand.u32 4294901760, %v26351_v4 }
 0x389   :  { %v32562_v32 = vpop.eup %32561  ;;  %32227 = vmatpush3.msra.mxu1 %v26393_v43  ;;  %v31760_v44 = vpop.f32.mrf.mxu1  ;;  %32228 = vmatprep.mubr.msk.f32.mxu1 %vm32688_vm0, %v32687_v0  ;;  %v35747_v22 = vadd.f32 %v19091_v18, %v19020_v42  ;;  %v27290_v43 = vsub.f32 %v35784_v56, %v27289_v19 }
 0x38a   :  { %v15043_v52 = vmul.f32 %v32562_v32, %v35096_v3  ;;  %32204 = vmatmul.mubr.f32.vlgmr.msra.gmra.mxu0 %v35673_v51  ;;  %32229 = vmatmul.mubr.f32.vlgmr.msra.gmra.mxu1 %v35714_v16  ;;  %v19170_v26 = vpop.f32.mrf.mxu0  ;;  %v35832_v44 = vsub.f32 %v199_v10, %v35817_v39 }
 0x38b   :  { %32212 = vmatpush3.msra.mxu0 %v25942_v17  ;;  %v35753_v57 = vpop.f32.mrf.mxu1  ;;  %32236 = vmatprep.subr.mxu1 %v32687_v0  ;;  %v26841_v17 = vsub.f32 %v35732_v1, %v26840_v38  ;;  %v19247_v59 = vadd.f32 %v19246_v37, %v19170_v26  ;;  %v27291_v42 = vand.u32 4294901760, %v27290_v43 }
 0x38c   :  { %32213 = vmatprep.mubr.msk.f32.mxu0 %vm32688_vm0, %v32687_v0  ;;  %v26729_v3 = vsel %vm203_vm1, %v15043_v52, 0  ;;  %32221 = vmatprep.subr.mxu0 %v32687_v0  ;;  %v31745_v51 = vpop.f32.mrf.mxu0 }
 0x38d   :  { %32237 = vmatpush3.msra.mxu1 %v35669_v24  ;;  %v31770_v49 = vpop.f32.mrf.mxu1  ;;  %v35764_v63 = vand.u32 4294901760, %v26729_v3  ;;  %32238 = vmatprep.mubr.msk.f32.mxu1 %vm32688_vm0, %v32687_v0 }
 0x38e   :  { %32214 = vmatmul.mubr.f32.vlgmr.msra.gmra.mxu0 %v35661_v7  ;;  %32239 = vmatmul.mubr.f32.vlgmr.msra.gmra.mxu1 %v26350_v48  ;;  %v26842_v7 = vand.u32 4294901760, %v26841_v17  ;;  %v27738_v49 = vand.u32 4294901760, %v35832_v44 }
 0x38f   :  { %32222 = vmatpush3.msra.mxu0 %v35669_v24  ;;  %v19320_v55 = vpop.f32.mrf.mxu0  ;;  %v35773_v5 = vsub.f32 %v26729_v3, %v35764_v63  ;;  %32246 = vmatprep.subr.mxu1 %v32687_v0  ;;  %v19695_v53 = vpop.f32.mrf.mxu1 }
 0x390   :  { %32223 = vmatprep.mubr.msk.f32.mxu0 %vm32688_vm0, %v32687_v0  ;;  %v19321_v28 = vadd.f32 %v19320_v55, %v19247_v59  ;;  %32231 = vmatprep.subr.mxu0 %v32687_v0 }
 0x391   :  { %32247 = vmatpush3.msra.mxu1 %v35669_v24  ;;  %v31755_v46 = vpop.f32.mrf.mxu0  ;;  %32248 = vmatprep.mubr.msk.f32.mxu1 %vm32688_vm0, %v32687_v0  ;;  %v31780_v47 = vpop.f32.mrf.mxu1  ;;  %v26799_v50 = vand.u32 4294901760, %v35773_v5 }
 0x392   :  { %32224 = vmatmul.mubr.f32.vlgmr.msra.gmra.mxu0 %v26352_v14  ;;  %32249 = vmatmul.mubr.f32.vlgmr.msra.gmra.mxu1 %v35714_v16  ;;  %v19395_v24 = vadd.f32 %v19394_v35, %v19321_v28 }
 0x393   :  { %32232 = vmatpush3.msra.mxu0 %v35684_v62  ;;  %v19468_v8 = vpop.f32.mrf.mxu0  ;;  %32256 = vmatprep.subr.mxu1 %v32687_v0  ;;  %v19843_v2 = vpop.f32.mrf.mxu1  ;;  %v26800_v29 = vsub.f32 %v35773_v5, %v26799_v50 }
 0x394   :  { %32233 = vmatprep.mubr.msk.f32.mxu0 %vm32688_vm0, %v32687_v0  ;;  %v14980_v34 = vpop.xlane.xlu0 %14979  ;;  %32241 = vmatprep.subr.mxu0 %v32687_v0  ;;  %v19469_v37 = vadd.f32 %v19468_v8, %v19395_v24 }
 0x395   :  { %32257 = vmatpush3.msra.mxu1 %v26842_v7  ;;  %32565 = vrcp.f32 %v14980_v34  ;;  %v31765_v18 = vpop.f32.mrf.mxu0  ;;  %v32564_v23 = vpop.eup %32563  ;;  %32258 = vmatprep.mubr.msk.f32.mxu1 %vm32688_vm0, %v32687_v0 }
 0x396   :  { %32234 = vmatmul.mubr.f32.vlgmr.msra.gmra.mxu0 %v35723_v21  ;;  %v31790_v9 = vpop.f32.mrf.mxu1  ;;  %v15045_v11 = vmul.f32 %v32564_v23, %v35152_v31  ;;  %32259 = vmatmul.mubr.f32.vlgmr.msra.gmra.mxu1 %v35764_v63 }
 0x397   :  { %32242 = vmatpush3.msra.mxu0 %v26391_v25  ;;  %v19619_v58 = vpop.f32.mrf.mxu0  ;;  %32266 = vmatprep.subr.mxu1 %v32687_v0  ;;  %v26801_v25 = vand.u32 4294901760, %v26800_v29 }
 0x398   :  { %32243 = vmatprep.mubr.msk.f32.mxu0 %vm32688_vm0, %v32687_v0  ;;  %v35804_v21 = vpop.f32.mrf.mxu1  ;;  %32251 = vmatprep.subr.mxu0 %v32687_v0  ;;  %v27178_v62 = vsel %vm203_vm1, %v15045_v11, 0  ;;  %v19696_v15 = vadd.f32 %v19695_v53, %v19619_v58  ;;  %v200_v53 = vld [vmem:[#allocation7 + $0xe8] sm:$0xff] }
 0x399   :  { %32267 = vmatpush3.msra.mxu1 %v35716_v6  ;;  %v31775_v31 = vpop.f32.mrf.mxu0  ;;  %32268 = vmatprep.mubr.msk.f32.mxu1 %vm32688_vm0, %v32687_v0  ;;  %v35815_v20 = vand.u32 4294901760, %v27178_v62 }
 0x39a   :  { %32244 = vmatmul.mubr.f32.vlgmr.msra.gmra.mxu0 %v35714_v16  ;;  %v31800_v40 = vpop.f32.mrf.mxu1  ;;  %32269 = vmatmul.mubr.f32.vlgmr.msra.gmra.mxu1 %v26799_v50  ;;  %v19541_v16 = vadd.f32 %v35753_v57, %v19469_v37  ;;  %v35867_v50 = vand.u32 4294901760, %v200_v53 }
 0x39b   :  { %32252 = vmatpush3.msra.mxu0 %v35716_v6  ;;  %32276 = vmatprep.subr.mxu1 %v32687_v0  ;;  %v19769_v48 = vpop.f32.mrf.mxu0  ;;  %v35825_v35 = vsub.f32 %v27178_v62, %v35815_v20 }
 0x39c   :  { %32253 = vmatprep.mubr.msk.f32.mxu0 %vm32688_vm0, %v32687_v0  ;;  %v20144_v61 = vpop.f32.mrf.mxu1  ;;  %32261 = vmatprep.subr.mxu0 %v32687_v0  ;;  %v19770_v30 = vadd.f32 %v19769_v48, %v19696_v15  ;;  %v35884_v11 = vsub.f32 %v200_v53, %v35867_v50 }
 0x39d   :  { %32277 = vmatpush3.msra.mxu1 %v35716_v6  ;;  %32278 = vmatprep.mubr.msk.f32.mxu1 %vm32688_vm0, %v32687_v0  ;;  %v31785_v32 = vpop.f32.mrf.mxu0  ;;  %v27248_v52 = vand.u32 4294901760, %v35825_v35 }
 0x39e   :  { %32254 = vmatmul.mubr.f32.vlgmr.msra.gmra.mxu0 %v26801_v25  ;;  %v31810_v12 = vpop.f32.mrf.mxu1  ;;  %32279 = vmatmul.mubr.f32.vlgmr.msra.gmra.mxu1 %v35764_v63  ;;  %v19844_v6 = vadd.f32 %v19843_v2, %v19770_v30  ;;  %v28187_v40 = vand.u32 4294901760, %v35884_v11 }
 0x39f   :  { %32262 = vmatpush3.msra.mxu0 %v35732_v1  ;;  %29434 = vrot.lane.b32.xlu0 %v19541_v16, %s32684_s21  ;;  %v19917_v4 = vpop.f32.mrf.mxu0  ;;  %v27249_v59 = vsub.f32 %v35825_v35, %v27248_v52  ;;  %v201_v16 = vld [vmem:[#allocation7 + $0xf0] sm:$0xff] }
 0x3a0   :  { %32286 = vmatprep.subr.mxu1 %v32687_v0  ;;  %v20292_v26 = vpop.f32.mrf.mxu1  ;;  %32263 = vmatprep.mubr.msk.f32.mxu0 %vm32688_vm0, %v32687_v0  ;;  %v14983_v57 = vpop.xlane.xlu1 %14982  ;;  %v19918_v14 = vadd.f32 %v19917_v4, %v19844_v6  ;;  %v35915_v12 = vand.u32 4294901760, %v201_v16 }
 0x3a1   :  { %32271 = vmatprep.subr.mxu0 %v32687_v0  ;;  %32287 = vmatpush3.msra.mxu1 %v27291_v42  ;;  %32567 = vrcp.f32 %v14983_v57  ;;  %v31795_v3 = vpop.f32.mrf.mxu0  ;;  %v27250_v47 = vand.u32 4294901760, %v27249_v59  ;;  %v28188_v42 = vsub.f32 %v35884_v11, %v28187_v40 }
 0x3a2   :  { %v32566_v36 = vpop.eup %32565  ;;  %32288 = vmatprep.mubr.msk.f32.mxu1 %vm32688_vm0, %v32687_v0  ;;  %v31820_v51 = vpop.f32.mrf.mxu1  ;;  %32264 = vmatmul.mubr.f32.vlgmr.msra.gmra.mxu0 %v35773_v5  ;;  %v27739_v5 = vsub.f32 %v35832_v44, %v27738_v49  ;;  %v19990_v8 = vadd.f32 %v35804_v21, %v19918_v14 }
 0x3a3   :  { %v15047_v17 = vmul.f32 %v32566_v36, %v35198_v13  ;;  %32289 = vmatmul.mubr.f32.vlgmr.msra.gmra.mxu1 %v35815_v20  ;;  %32272 = vmatpush3.msra.mxu0 %v26840_v38  ;;  %v20068_v55 = vpop.f32.mrf.mxu0  ;;  %v28189_v57 = vand.u32 4294901760, %v28188_v42  ;;  %v35930_v51 = vsub.f32 %v201_v16, %v35915_v12 }
 0x3a4   :  { %32296 = vmatprep.subr.mxu1 %v32687_v0  ;;  %v35852_v28 = vpop.f32.mrf.mxu1  ;;  %32273 = vmatprep.mubr.msk.f32.mxu0 %vm32688_vm0, %v32687_v0  ;;  %v20145_v46 = vadd.f32 %v20144_v61, %v20068_v55  ;;  %v27740_v18 = vand.u32 4294901760, %v27739_v5 }
 0x3a5   :  { %32281 = vmatprep.subr.mxu0 %v32687_v0  ;;  %v27627_v13 = vsel %vm203_vm1, %v15047_v17, 0  ;;  %32297 = vmatpush3.msra.mxu1 %v35769_v41  ;;  %v31805_v1 = vpop.f32.mrf.mxu0 }
 0x3a6   :  { %32298 = vmatprep.mubr.msk.f32.mxu1 %vm32688_vm0, %v32687_v0  ;;  %v31830_v38 = vpop.f32.mrf.mxu1  ;;  %v35864_v7 = vand.u32 4294901760, %v27627_v13  ;;  %32274 = vmatmul.mubr.f32.vlgmr.msra.gmra.mxu0 %v35764_v63  ;;  %v28636_v1 = vand.u32 4294901760, %v35930_v51 }
 0x3a7   :  { %32299 = vmatmul.mubr.f32.vlgmr.msra.gmra.mxu1 %v27248_v52  ;;  %32282 = vmatpush3.msra.mxu0 %v35769_v41 }
 0x3a8   :  { %32306 = vmatprep.subr.mxu1 %v32687_v0  ;;  %v20218_v24 = vpop.f32.mrf.mxu0  ;;  %v35873_v2 = vsub.f32 %v27627_v13, %v35864_v7  ;;  %32283 = vmatprep.mubr.msk.f32.mxu0 %vm32688_vm0, %v32687_v0  ;;  %v20593_v34 = vpop.f32.mrf.mxu1 }
 0x3a9   :  { %32291 = vmatprep.subr.mxu0 %v32687_v0  ;;  %v20219_v63 = vadd.f32 %v20218_v24, %v20145_v46  ;;  %32307 = vmatpush3.msra.mxu1 %v35769_v41 }
 0x3aa   :  { %32308 = vmatprep.mubr.msk.f32.mxu1 %vm32688_vm0, %v32687_v0  ;;  %v31815_v23 = vpop.f32.mrf.mxu0  ;;  %32284 = vmatmul.mubr.f32.vlgmr.msra.gmra.mxu0 %v27250_v47  ;;  %v31840_v9 = vpop.f32.mrf.mxu1  ;;  %v27697_v29 = vand.u32 4294901760, %v35873_v2 }
 0x3ab   :  { %32309 = vmatmul.mubr.f32.vlgmr.msra.gmra.mxu1 %v35815_v20  ;;  %32292 = vmatpush3.msra.mxu0 %v35784_v56  ;;  %v20293_v41 = vadd.f32 %v20292_v26, %v20219_v63 }
 0x3ac   :  { %29466 = vrot.lane.b32.xlu0 %v19990_v8, %s32689_s2  ;;  %v20366_v58 = vpop.f32.mrf.mxu0  ;;  %32316 = vmatprep.subr.mxu1 %v32687_v0  ;;  %v20741_v10 = vpop.f32.mrf.mxu1  ;;  %v27698_v25 = vsub.f32 %v35873_v2, %v27697_v29  ;;  %v202_v8 = vld [vmem:[#allocation7 + $0xf8] sm:$0xff] }
 0x3ad   :  { %32293 = vmatprep.mubr.msk.f32.mxu0 %vm32688_vm0, %v32687_v0  ;;  %v14986_v37 = vpop.xlane.xlu0 %14985  ;;  %32301 = vmatprep.subr.mxu0 %v32687_v0  ;;  %v20367_v48 = vadd.f32 %v20366_v58, %v20293_v41 }
 0x3ae   :  { %32317 = vmatpush3.msra.mxu1 %v27740_v18  ;;  %32569 = vrcp.f32 %v14986_v37  ;;  %v31825_v21 = vpop.f32.mrf.mxu0  ;;  %v32568_v31 = vpop.eup %32567  ;;  %32318 = vmatprep.mubr.msk.f32.mxu1 %vm32688_vm0, %v32687_v0 }
 0x3af   :  { %32294 = vmatmul.mubr.f32.vlgmr.msra.gmra.mxu0 %v35825_v35  ;;  %v31850_v62 = vpop.f32.mrf.mxu1  ;;  %v15049_v43 = vmul.f32 %v32568_v31, %v35256_v33  ;;  %32319 = vmatmul.mubr.f32.vlgmr.msra.gmra.mxu1 %v35864_v7  ;;  %v20439_v52 = vadd.f32 %v35852_v28, %v20367_v48 }
 0x3b0   :  { %32302 = vmatpush3.msra.mxu0 %v27289_v19  ;;  %v20517_v15 = vpop.f32.mrf.mxu0  ;;  %32326 = vmatprep.subr.mxu1 %v32687_v0  ;;  %v27699_v19 = vand.u32 4294901760, %v27698_v25 }
 0x3b1   :  { %32303 = vmatprep.mubr.msk.f32.mxu0 %vm32688_vm0, %v32687_v0  ;;  %v20594_v61 = vadd.f32 %v20593_v34, %v20517_v15  ;;  %v20887_v35 = vpop.f32.mrf.mxu1  ;;  %32311 = vmatprep.subr.mxu0 %v32687_v0  ;;  %v28076_v56 = vsel %vm203_vm1, %v15049_v43, 0  ;;  %v35966_v34 = vand.u32 4294901760, %v202_v8 }
 0x3b2   :  { %32327 = vmatpush3.msra.mxu1 %v35817_v39  ;;  %v31835_v33 = vpop.f32.mrf.mxu0  ;;  %32328 = vmatprep.mubr.msk.f32.mxu1 %vm32688_vm0, %v32687_v0  ;;  %v35913_v32 = vand.u32 4294901760, %v28076_v56 }
 0x3b3   :  { %32304 = vmatmul.mubr.f32.vlgmr.msra.gmra.mxu0 %v35815_v20  ;;  %v31860_v30 = vpop.f32.mrf.mxu1  ;;  %32329 = vmatmul.mubr.f32.vlgmr.msra.gmra.mxu1 %v27697_v29  ;;  %v35981_v21 = vsub.f32 %v202_v8, %v35966_v34 }
 0x3b4   :  { %32312 = vmatpush3.msra.mxu0 %v35817_v39  ;;  %32336 = vmatprep.subr.mxu1 %v32687_v0  ;;  %v20667_v20 = vpop.f32.mrf.mxu0  ;;  %v35923_v4 = vsub.f32 %v28076_v56, %v35913_v32 }
 0x3b5   :  { %32313 = vmatprep.mubr.msk.f32.mxu0 %vm32688_vm0, %v32687_v0  ;;  %v21042_v6 = vpop.f32.mrf.mxu1  ;;  %32321 = vmatprep.subr.mxu0 %v32687_v0  ;;  %v20668_v26 = vadd.f32 %v20667_v20, %v20594_v61  ;;  %v29085_v16 = vand.u32 4294901760, %v35981_v21 }
 0x3b6   :  { %32337 = vmatpush3.msra.mxu1 %v35817_v39  ;;  %32338 = vmatprep.mubr.msk.f32.mxu1 %vm32688_vm0, %v32687_v0  ;;  %v31845_v36 = vpop.f32.mrf.mxu0  ;;  %v28146_v59 = vand.u32 4294901760, %v35923_v4 }
 0x3b7   :  { %32314 = vmatmul.mubr.f32.vlgmr.msra.gmra.mxu0 %v27699_v19  ;;  %v31870_v3 = vpop.f32.mrf.mxu1  ;;  %32339 = vmatmul.mubr.f32.vlgmr.msra.gmra.mxu1 %v35864_v7  ;;  %v20742_v17 = vadd.f32 %v20741_v10, %v20668_v26 }
 0x3b8   :  { %32322 = vmatpush3.msra.mxu0 %v35832_v44  ;;  %29498 = vrot.lane.b32.xlu0 %v20439_v52, %s32690_s3  ;;  %v20815_v39 = vpop.f32.mrf.mxu0  ;;  %v28147_v47 = vsub.f32 %v35923_v4, %v28146_v59  ;;  %v28637_v44 = vsub.f32 %v35930_v51, %v28636_v1 }
 0x3b9   :  { %32346 = vmatprep.subr.mxu1 %v32687_v0  ;;  %v21190_v14 = vpop.f32.mrf.mxu1  ;;  %32323 = vmatprep.mubr.msk.f32.mxu0 %vm32688_vm0, %v32687_v0  ;;  %v14989_v55 = vpop.xlane.xlu1 %14988  ;;  %v20816_v28 = vadd.f32 %v20815_v39, %v20742_v17 }
 0x3ba   :  { %32331 = vmatprep.subr.mxu0 %v32687_v0  ;;  %32347 = vmatpush3.msra.mxu1 %v28189_v57  ;;  %32571 = vrcp.f32 %v14989_v55  ;;  %v31855_v13 = vpop.f32.mrf.mxu0  ;;  %v28148_v23 = vand.u32 4294901760, %v28147_v47 }
 0x3bb   :  { %v32570_v53 = vpop.eup %32569  ;;  %32348 = vmatprep.mubr.msk.f32.mxu1 %vm32688_vm0, %v32687_v0  ;;  %32324 = vmatmul.mubr.f32.vlgmr.msra.gmra.mxu0 %v35873_v2  ;;  %v35946_v5 = vadd.f32 %v20887_v35, %v20816_v28  ;;  %v31880_v46 = vpop.f32.mrf.mxu1 }
 0x3bc   :  { %v15051_v38 = vmul.f32 %v32570_v53, %v35303_v27  ;;  %32349 = vmatmul.mubr.f32.vlgmr.msra.gmra.mxu1 %v35913_v32  ;;  %32332 = vmatpush3.msra.mxu0 %v27738_v49  ;;  %v20966_v24 = vpop.f32.mrf.mxu0 }
 0x3bd   :  { %32356 = vmatprep.subr.mxu1 %v32687_v0  ;;  %32333 = vmatprep.mubr.msk.f32.mxu0 %vm32688_vm0, %v32687_v0  ;;  %v35955_v27 = vpop.f32.mrf.mxu1  ;;  %v21043_v18 = vadd.f32 %v21042_v6, %v20966_v24 }
 0x3be   :  { %32341 = vmatprep.subr.mxu0 %v32687_v0  ;;  %v28525_v2 = vsel %vm203_vm1, %v15051_v38, 0  ;;  %32357 = vmatpush3.msra.mxu1 %v35867_v50  ;;  %v31865_v63 = vpop.f32.mrf.mxu0 }
 0x3bf   :  { %32358 = vmatprep.mubr.msk.f32.mxu1 %vm32688_vm0, %v32687_v0  ;;  %v35964_v49 = vand.u32 4294901760, %v28525_v2  ;;  %32334 = vmatmul.mubr.f32.vlgmr.msra.gmra.mxu0 %v35864_v7  ;;  %v31890_v9 = vpop.f32.mrf.mxu1  ;;  %v28638_v7 = vand.u32 4294901760, %v28637_v44 }
 0x3c0   :  { %32359 = vmatmul.mubr.f32.vlgmr.msra.gmra.mxu1 %v28146_v59  ;;  %32342 = vmatpush3.msra.mxu0 %v35867_v50 }
 0x3c1   :  { %32366 = vmatprep.subr.mxu1 %v32687_v0  ;;  %v21116_v29 = vpop.f32.mrf.mxu0  ;;  %v35972_v58 = vsub.f32 %v28525_v2, %v35964_v49  ;;  %32343 = vmatprep.mubr.msk.f32.mxu0 %vm32688_vm0, %v32687_v0  ;;  %v21491_v10 = vpop.f32.mrf.mxu1 }
 0x3c2   :  { %32351 = vmatprep.subr.mxu0 %v32687_v0  ;;  %v21117_v41 = vadd.f32 %v21116_v29, %v21043_v18  ;;  %32367 = vmatpush3.msra.mxu1 %v35867_v50 }
 0x3c3   :  { %32368 = vmatprep.mubr.msk.f32.mxu1 %vm32688_vm0, %v32687_v0  ;;  %v31875_v37 = vpop.f32.mrf.mxu0  ;;  %32344 = vmatmul.mubr.f32.vlgmr.msra.gmra.mxu0 %v28148_v23  ;;  %v31900_v31 = vpop.f32.mrf.mxu1  ;;  %v28595_v62 = vand.u32 4294901760, %v35972_v58 }
 0x3c4   :  { %32369 = vmatmul.mubr.f32.vlgmr.msra.gmra.mxu1 %v35913_v32  ;;  %32352 = vmatpush3.msra.mxu0 %v35884_v11  ;;  %v21191_v25 = vadd.f32 %v21190_v14, %v21117_v41 }
 0x3c5   :  { %32376 = vmatprep.subr.mxu1 %v32687_v0  ;;  %v21264_v50 = vpop.f32.mrf.mxu0  ;;  %32353 = vmatprep.mubr.msk.f32.mxu0 %vm32688_vm0, %v32687_v0  ;;  %v21639_v43 = vpop.f32.mrf.mxu1  ;;  %v28596_v35 = vsub.f32 %v35972_v58, %v28595_v62 }
 0x3c6   :  { %32361 = vmatprep.subr.mxu0 %v32687_v0  ;;  %32377 = vmatpush3.msra.mxu1 %v28638_v7  ;;  %v21265_v56 = vadd.f32 %v21264_v50, %v21191_v25 }
 0x3c7   :  { %32378 = vmatprep.mubr.msk.f32.mxu1 %vm32688_vm0, %v32687_v0  ;;  %v31885_v15 = vpop.f32.mrf.mxu0  ;;  %v32572_v48 = vpop.eup %32571  ;;  %32354 = vmatmul.mubr.f32.vlgmr.msra.gmra.mxu0 %v35923_v4 }
 0x3c8   :  { %32379 = vmatmul.mubr.f32.vlgmr.msra.gmra.mxu1 %v35964_v49  ;;  %v31910_v61 = vpop.f32.mrf.mxu1  ;;  %v15053_v33 = vmul.f32 %v32572_v48, %v35361_v45  ;;  %32362 = vmatpush3.msra.mxu0 %v28187_v40  ;;  %v29086_v45 = vsub.f32 %v35981_v21, %v29085_v16  ;;  %v28597_v40 = vand.u32 4294901760, %v28596_v35  ;;  %v21337_v4 = vadd.f32 %v35955_v27, %v21265_v56 }
 0x3c9   :  { %32386 = vmatprep.subr.mxu1 %v32687_v0  ;;  %v21415_v19 = vpop.f32.mrf.mxu0  ;;  %32363 = vmatprep.mubr.msk.f32.mxu0 %vm32688_vm0, %v32687_v0 }
 0x3ca   :  { %32371 = vmatprep.subr.mxu0 %v32687_v0  ;;  %v21785_v30 = vpop.f32.mrf.mxu1  ;;  %32387 = vmatpush3.msra.mxu1 %v35915_v12  ;;  %v28974_v11 = vsel %vm203_vm1, %v15053_v33, 0  ;;  %v21492_v6 = vadd.f32 %v21491_v10, %v21415_v19  ;;  %v29087_v36 = vand.u32 4294901760, %v29086_v45 }
 0x3cb   :  { %32388 = vmatprep.mubr.msk.f32.mxu1 %vm32688_vm0, %v32687_v0  ;;  %v31895_v42 = vpop.f32.mrf.mxu0  ;;  %32364 = vmatmul.mubr.f32.vlgmr.msra.gmra.mxu0 %v35913_v32  ;;  %v36011_v20 = vand.u32 4294901760, %v28974_v11 }
 0x3cc   :  { %32389 = vmatmul.mubr.f32.vlgmr.msra.gmra.mxu1 %v28595_v62  ;;  %v31920_v52 = vpop.f32.mrf.mxu1  ;;  %32372 = vmatpush3.msra.mxu0 %v35915_v12 }
 0x3cd   :  { %32396 = vmatprep.subr.mxu1 %v32687_v0  ;;  %32373 = vmatprep.mubr.msk.f32.mxu0 %vm32688_vm0, %v32687_v0  ;;  %v21565_v26 = vpop.f32.mrf.mxu0  ;;  %v29043_v32 = vsub.f32 %v28974_v11, %v36011_v20 }
 0x3ce   :  { %32381 = vmatprep.subr.mxu0 %v32687_v0  ;;  %v21940_v57 = vpop.f32.mrf.mxu1  ;;  %32397 = vmatpush3.msra.mxu1 %v35915_v12  ;;  %v21566_v3 = vadd.f32 %v21565_v26, %v21492_v6 }
 0x3cf   :  { %32398 = vmatprep.mubr.msk.f32.mxu1 %vm32688_vm0, %v32687_v0  ;;  %32374 = vmatmul.mubr.f32.vlgmr.msra.gmra.mxu0 %v28597_v40  ;;  %v31905_v17 = vpop.f32.mrf.mxu0  ;;  %v29044_v39 = vand.u32 4294901760, %v29043_v32 }
 0x3d0   :  { %32399 = vmatmul.mubr.f32.vlgmr.msra.gmra.mxu1 %v35964_v49  ;;  %v31930_v59 = vpop.f32.mrf.mxu1  ;;  %32382 = vmatpush3.msra.mxu0 %v35930_v51  ;;  %v21640_v12 = vadd.f32 %v21639_v43, %v21566_v3 }
 0x3d1   :  { %29436 = vrot.lane.b32.xlu0 %v21337_v4, %s32684_s21  ;;  %32406 = vmatprep.subr.mxu1 %v32687_v0  ;;  %v21713_v14 = vpop.f32.mrf.mxu0  ;;  %v29045_v13 = vsub.f32 %v29043_v32, %v29044_v39 }
 0x3d2   :  { %32383 = vmatprep.mubr.msk.f32.mxu0 %vm32688_vm0, %v32687_v0  ;;  %v22088_v55 = vpop.f32.mrf.mxu1  ;;  %32391 = vmatprep.subr.mxu0 %v32687_v0  ;;  %v21714_v38 = vadd.f32 %v21713_v14, %v21640_v12 }
 0x3d3   :  { %32407 = vmatpush3.msra.mxu1 %v29087_v36  ;;  %32408 = vmatprep.mubr.msk.f32.mxu1 %vm32688_vm0, %v32687_v0  ;;  %v31915_v28 = vpop.f32.mrf.mxu0  ;;  %v29046_v51 = vand.u32 4294901760, %v29045_v13 }
 0x3d4   :  { %32384 = vmatmul.mubr.f32.vlgmr.msra.gmra.mxu0 %v35972_v58  ;;  %v31940_v53 = vpop.f32.mrf.mxu1  ;;  %32409 = vmatmul.mubr.f32.vlgmr.msra.gmra.mxu1 %v36011_v20  ;;  %v21786_v27 = vadd.f32 %v21785_v30, %v21714_v38 }
 0x3d5   :  { %32392 = vmatpush3.msra.mxu0 %v28636_v1  ;;  %32416 = vmatprep.subr.mxu1 %v32687_v0  ;;  %v21864_v46 = vpop.f32.mrf.mxu0 }
 0x3d6   :  { %32393 = vmatprep.mubr.msk.f32.mxu0 %vm32688_vm0, %v32687_v0  ;;  %v22234_v47 = vpop.f32.mrf.mxu1  ;;  %32401 = vmatprep.subr.mxu0 %v32687_v0  ;;  %v21941_v24 = vadd.f32 %v21940_v57, %v21864_v46 }
 0x3d7   :  { %32417 = vmatpush3.msra.mxu1 %v35966_v34  ;;  %32418 = vmatprep.mubr.msk.f32.mxu1 %vm32688_vm0, %v32687_v0  ;;  %v31925_v1 = vpop.f32.mrf.mxu0 }
 0x3d8   :  { %32394 = vmatmul.mubr.f32.vlgmr.msra.gmra.mxu0 %v35964_v49  ;;  %v31950_v8 = vpop.f32.mrf.mxu1  ;;  %32419 = vmatmul.mubr.f32.vlgmr.msra.gmra.mxu1 %v29044_v39 }
 0x3d9   :  { %32402 = vmatpush3.msra.mxu0 %v35966_v34  ;;  %32426 = vmatprep.subr.mxu1 %v32687_v0 }
 0x3da   :  { %32403 = vmatprep.mubr.msk.f32.mxu0 %vm32688_vm0, %v32687_v0  ;;  %v22014_v2 = vpop.f32.mrf.mxu0  ;;  %32411 = vmatprep.subr.mxu0 %v32687_v0  ;;  %v22389_v44 = vpop.f32.mrf.mxu1 }
 0x3db   :  { %32427 = vmatpush3.msra.mxu1 %v35966_v34  ;;  %v22015_v63 = vadd.f32 %v22014_v2, %v21941_v24  ;;  %32428 = vmatprep.mubr.msk.f32.mxu1 %vm32688_vm0, %v32687_v0 }
 0x3dc   :  { %32404 = vmatmul.mubr.f32.vlgmr.msra.gmra.mxu0 %v29046_v51  ;;  %v31935_v49 = vpop.f32.mrf.mxu0  ;;  %32429 = vmatmul.mubr.f32.vlgmr.msra.gmra.mxu1 %v36011_v20  ;;  %v31960_v18 = vpop.f32.mrf.mxu1 }
 0x3dd   :  { %32412 = vmatpush3.msra.mxu0 %v35981_v21  ;;  %v22089_v23 = vadd.f32 %v22088_v55, %v22015_v63  ;;  %29468 = vrot.lane.b32.xlu0 %v21786_v27, %s32689_s2  ;;  %v29431_v21 = vpop.permute.xlu0 %29430 }
 0x3de   :  { %32413 = vmatprep.mubr.msk.f32.mxu0 %vm32688_vm0, %v32687_v0  ;;  %v22162_v9 = vpop.f32.mrf.mxu0  ;;  %32421 = vmatprep.subr.mxu0 %v32687_v0  ;;  %v22537_v29 = vpop.f32.mrf.mxu1  ;;  %v29518_v26 = vsel %vm203_vm1, %v35332_v54, %v29431_v21 }
 0x3df   :  { %v22163_v34 = vadd.f32 %v22162_v9, %v22089_v23 }
 0x3e0   :  { %32414 = vmatmul.mubr.f32.vlgmr.msra.gmra.mxu0 %v29043_v32  ;;  %v31945_v58 = vpop.f32.mrf.mxu0  ;;  %v31970_v10 = vpop.f32.mrf.mxu1 }
 0x3e1   :  { %32422 = vmatpush3.msra.mxu0 %v29085_v16  ;;  %32423 = vmatprep.mubr.msk.f32.mxu0 %vm32688_vm0, %v32687_v0  ;;  %v36062_v41 = vadd.f32 %v22234_v47, %v22163_v34  ;;  %v29463_v19 = vpop.permute.xlu0 %29462  ;;  %v29433_v40 = vpop.permute.xlu1 %29432 }
 0x3e2   :  { %v22313_v7 = vpop.f32.mrf.mxu0  ;;  %v22683_v31 = vpop.f32.mrf.mxu1  ;;  %v29527_v32 = vsel %vm29526_vm4, %v29518_v26, %v29463_v19  ;;  %v29519_v28 = vsel %vm203_vm1, %v35547_v60, %v29433_v40 }
 0x3e3   :  { %v22390_v37 = vadd.f32 %v22389_v44, %v22313_v7 }
 0x3e4   :  { %32424 = vmatmul.mubr.f32.vlgmr.msra.gmra.mxu0 %v36011_v20  ;;  %v31955_v62 = vpop.f32.mrf.mxu0  ;;  %v31980_v25 = vpop.f32.mrf.mxu1 }
 0x3e5   :  { %v29495_v20 = vpop.permute.xlu0 %29494 }
 0x3e6   :  { %v22463_v50 = vpop.f32.mrf.mxu0  ;;  %v29536_v17 = vsel %vm29535_vm5, %v29527_v32, %v29495_v20 }
 0x3e7   :  { %v22838_v43 = vpop.f32.mrf.mxu1  ;;  %v22464_v15 = vadd.f32 %v22463_v50, %v22390_v37  ;;  %v29569_v38 = vrot.slane %v29536_v17, 1  ;;  %v29639_v51 = vrot.slane %v29536_v17, 5  ;;  %v29587_v1 = vrot.slane %v29536_v17, 2 }
 0x3e8   :  { %v31965_v48 = vpop.f32.mrf.mxu0  ;;  %v29659_v8 = vrot.slane %v29536_v17, 6  ;;  %v29605_v63 = vrot.slane %v29536_v17, 3  ;;  %v29679_v44 = vrot.slane %v29536_v17, 7  ;;  %v29623_v7 = vrot.slane %v29536_v17, 4 }
 0x3e9   :  { %v31990_v61 = vpop.f32.mrf.mxu1  ;;  %v22538_v16 = vadd.f32 %v22537_v29, %v22464_v15 }
 0x3ea   :  { %v22611_v35 = vpop.f32.mrf.mxu0 }
 0x3eb   :  { %v22986_v33 = vpop.f32.mrf.mxu1  ;;  %v22612_v0 = vadd.f32 %v22611_v35, %v22538_v16 }
 0x3ec   :  { %v31975_v56 = vpop.f32.mrf.mxu0  ;;  %v29465_v59 = vpop.permute.xlu1 %29464 }
 0x3ed   :  { %v36065_v30 = vadd.f32 %v22683_v31, %v22612_v0  ;;  %v32000_v42 = vpop.f32.mrf.mxu1  ;;  %v29528_v54 = vsel %vm29526_vm4, %v29519_v28, %v29465_v59 }
 0x3ee   :  { %v22762_v45 = vpop.f32.mrf.mxu0 }
 0x3ef   :  { %v23132_v11 = vpop.f32.mrf.mxu1  ;;  %v22839_v6 = vadd.f32 %v22838_v43, %v22762_v45 }
 0x3f0   :  { %v31985_v52 = vpop.f32.mrf.mxu0 }
 0x3f1   :  { %v32010_v4 = vpop.f32.mrf.mxu1 }
 0x3f3   :  { %v22912_v57 = vpop.f32.mrf.mxu0  ;;  %v23287_v3 = vpop.f32.mrf.mxu1 }
 0x3f4   :  { %v22913_v36 = vadd.f32 %v22912_v57, %v22839_v6 }
 0x3f5   :  { %v31995_v39 = vpop.f32.mrf.mxu0  ;;  %v32020_v12 = vpop.f32.mrf.mxu1 }
 0x3f6   :  { %v22987_v14 = vadd.f32 %v22986_v33, %v22913_v36 }
 0x3f7   :  { %v23060_v55 = vpop.f32.mrf.mxu0  ;;  %v23435_v13 = vpop.f32.mrf.mxu1 }
 0x3f8   :  { %v23061_v53 = vadd.f32 %v23060_v55, %v22987_v14 }
 0x3f9   :  { %v29497_v46 = vpop.permute.xlu1 %29496  ;;  %v32005_v47 = vpop.f32.mrf.mxu0 }
 0x3fa   :  { %v29537_v24 = vsel %vm29535_vm5, %v29528_v54, %v29497_v46  ;;  %v32030_v27 = vpop.f32.mrf.mxu1  ;;  %v23133_v2 = vadd.f32 %v23132_v11, %v23061_v53 }
 0x3fb   :  { %v23211_v49 = vpop.f32.mrf.mxu0  ;;  %v36076_v60 = vsel %vm29553_vm6, %v29537_v24, %v29569_v38  ;;  %v29640_v18 = vrot.slane %v29537_v24, 4  ;;  %v29588_v23 = vrot.slane %v29537_v24, 1  ;;  %v29660_v9 = vrot.slane %v29537_v24, 5 }
 0x3fc   :  { %v23581_v34 = vpop.f32.mrf.mxu1  ;;  %29438 = vrot.lane.b32.xlu1 %v23133_v2, %s32684_s21  ;;  %v29606_v29 = vrot.slane %v29537_v24, 2  ;;  %v29680_v58 = vrot.slane %v29537_v24, 6  ;;  %v29552_v10 = vrot.slane %v29537_v24, 7  ;;  %v29624_v50 = vrot.slane %v29537_v24, 3 }
 0x3fd   :  { %v32015_v37 = vpop.f32.mrf.mxu0  ;;  %v36080_v31 = vsel %vm29553_vm6, %v29640_v18, %v29639_v51  ;;  %v36083_v62 = vsel %vm29553_vm6, %v29588_v23, %v29587_v1  ;;  %v36086_v25 = vsel %vm29553_vm6, %v29660_v9, %v29659_v8  ;;  %v23288_v21 = vadd.f32 %v23287_v3, %v23211_v49 }
 0x3fe   :  { %v32040_v43 = vpop.f32.mrf.mxu1  ;;  %v36089_v15 = vsel %vm29553_vm6, %v29606_v29, %v29605_v63  ;;  %v36092_v48 = vsel %vm29553_vm6, %v29680_v58, %v29679_v44  ;;  %v36095_v61 = vsel %vm29553_vm6, %v29552_v10, %v29536_v17  ;;  %v36098_v16 = vsel %vm29553_vm6, %v29624_v50, %v29623_v7 }
 0x3ff   :  { %v23361_v35 = vpop.f32.mrf.mxu0 }
 0x400   :  { %v23736_v33 = vpop.f32.mrf.mxu1  ;;  %v23362_v0 = vadd.f32 %v23361_v35, %v23288_v21 }
 0x401   :  { %v32025_v56 = vpop.f32.mrf.mxu0 }
 0x402   :  { %v32050_v19 = vpop.f32.mrf.mxu1  ;;  %v23436_v42 = vadd.f32 %v23435_v13, %v23362_v0 }
 0x403   :  { %v23509_v45 = vpop.f32.mrf.mxu0 }
 0x404   :  { %v23884_v11 = vpop.f32.mrf.mxu1  ;;  %v23510_v40 = vadd.f32 %v23509_v45, %v23436_v42 }
 0x405   :  { %v32035_v52 = vpop.f32.mrf.mxu0 }
 0x406   :  { %v32060_v20 = vpop.f32.mrf.mxu1  ;;  %v23582_v6 = vadd.f32 %v23581_v34, %v23510_v40 }
 0x407   :  { %v23660_v4 = vpop.f32.mrf.mxu0 }
 0x408   :  { %v24030_v26 = vpop.f32.mrf.mxu1  ;;  %29470 = vrot.lane.b32.xlu0 %v23582_v6, %s32689_s2  ;;  %v23737_v36 = vadd.f32 %v23736_v33, %v23660_v4 }
 0x409   :  { %v32045_v57 = vpop.f32.mrf.mxu0 }
 0x40a   :  { %v32070_v32 = vpop.f32.mrf.mxu1 }
 0x40c   :  { %v23810_v3 = vpop.f32.mrf.mxu0  ;;  %v24185_v59 = vpop.f32.mrf.mxu1 }
 0x40d   :  { %v23811_v17 = vadd.f32 %v23810_v3, %v23737_v36 }
 0x40e   :  { %v32055_v39 = vpop.f32.mrf.mxu0  ;;  %v32080_v12 = vpop.f32.mrf.mxu1 }
 0x40f   :  { %v23885_v14 = vadd.f32 %v23884_v11, %v23811_v17 }
 0x410   :  { %v23958_v55 = vpop.f32.mrf.mxu0  ;;  %v24333_v53 = vpop.f32.mrf.mxu1 }
 0x411   :  { %v23959_v28 = vadd.f32 %v23958_v55, %v23885_v14  ;;  %v29435_v37 = vpop.permute.xlu0 %29434 }
 0x412   :  { %v32065_v13 = vpop.f32.mrf.mxu0  ;;  %v32090_v54 = vpop.f32.mrf.mxu1  ;;  %v29520_v40 = vsel %vm203_vm1, %v35747_v22, %v29435_v37 }
 0x413   :  { %v24031_v38 = vadd.f32 %v24030_v26, %v23959_v28 }
 0x414   :  { %v24109_v46 = vpop.f32.mrf.mxu0  ;;  %v24479_v51 = vpop.f32.mrf.mxu1 }
 0x415   :  { %v24186_v47 = vadd.f32 %v24185_v59, %v24109_v46  ;;  %29502 = vrot.lane.b32.xlu0 %v24031_v38, %s32690_s3 }
 0x416   :  { %v32075_v1 = vpop.f32.mrf.mxu0  ;;  %v32100_v8 = vpop.f32.mrf.mxu1 }
 0x418   :  { %v24259_v24 = vpop.f32.mrf.mxu0 }
 0x419   :  { %v24634_v27 = vpop.f32.mrf.mxu1  ;;  %29500 = vrot.lane.b32.xlu0 %v36062_v41, %s32690_s3  ;;  %v24260_v2 = vadd.f32 %v24259_v24, %v24186_v47 }
 0x41a   :  { %v32085_v63 = vpop.f32.mrf.mxu0 }
 0x41b   :  { %v32110_v44 = vpop.f32.mrf.mxu1  ;;  %v24334_v49 = vadd.f32 %v24333_v53, %v24260_v2 }
 0x41c   :  { %v24407_v18 = vpop.f32.mrf.mxu0 }
 0x41d   :  { %v24782_v23 = vpop.f32.mrf.mxu1  ;;  %v24408_v9 = vadd.f32 %v24407_v18, %v24334_v49 }
 0x41e   :  { %v32095_v34 = vpop.f32.mrf.mxu0  ;;  %v29467_v41 = vpop.permute.xlu0 %29466 }
 0x41f   :  { %v32120_v29 = vpop.f32.mrf.mxu1  ;;  %v36104_v58 = vadd.f32 %v24479_v51, %v24408_v9  ;;  %v29529_v20 = vsel %vm29526_vm4, %v29520_v40, %v29467_v41 }
 0x420   :  { %v24558_v10 = vpop.f32.mrf.mxu0 }
 0x421   :  { %v24928_v7 = vpop.f32.mrf.mxu1  ;;  %v24635_v21 = vadd.f32 %v24634_v27, %v24558_v10 }
 0x422   :  { %v32105_v50 = vpop.f32.mrf.mxu0 }
 0x423   :  { %v32130_v43 = vpop.f32.mrf.mxu1 }
 0x424   :  { %v24708_v35 = vpop.f32.mrf.mxu0 }
 0x425   :  { %v25083_v33 = vpop.f32.mrf.mxu1  ;;  %v24709_v0 = vadd.f32 %v24708_v35, %v24635_v21 }
 0x426   :  { %v32115_v56 = vpop.f32.mrf.mxu0 }
 0x427   :  { %v32140_v19 = vpop.f32.mrf.mxu1  ;;  %v24783_v42 = vadd.f32 %v24782_v23, %v24709_v0 }
 0x428   :  { %v24856_v45 = vpop.f32.mrf.mxu0 }
 0x429   :  { %v25231_v11 = vpop.f32.mrf.mxu1  ;;  %v24857_v52 = vadd.f32 %v24856_v45, %v24783_v42 }
 0x42a   :  { %v29499_v6 = vpop.permute.xlu0 %29498  ;;  %v32125_v4 = vpop.f32.mrf.mxu0 }
 0x42b   :  { %v29538_v26 = vsel %vm29535_vm5, %v29529_v20, %v29499_v6  ;;  %v32150_v57 = vpop.f32.mrf.mxu1  ;;  %v24929_v32 = vadd.f32 %v24928_v7, %v24857_v52 }
 0x42c   :  { %v25007_v36 = vpop.f32.mrf.mxu0  ;;  %v29571_v3 = vrot.slane %v29538_v26, 7  ;;  %v29642_v17 = vrot.slane %v29538_v26, 3  ;;  %v36112_v59 = vsel %vm29556_vm7, %v29538_v26, %v36083_v62  ;;  %v29662_v39 = vrot.slane %v29538_v26, 4 }
 0x42d   :  { %v25377_v12 = vpop.f32.mrf.mxu1  ;;  %29440 = vrot.lane.b32.xlu1 %v24929_v32, %s32684_s21  ;;  %v29608_v22 = vrot.slane %v29538_v26, 1  ;;  %v29682_v14 = vrot.slane %v29538_v26, 5  ;;  %v29555_v55 = vrot.slane %v29538_v26, 6  ;;  %v29626_v38 = vrot.slane %v29538_v26, 2 }
 0x42e   :  { %v32135_v28 = vpop.f32.mrf.mxu0  ;;  %v36117_v53 = vsel %vm29556_vm7, %v29571_v3, %v36076_v60  ;;  %v36121_v13 = vsel %vm29556_vm7, %v29642_v17, %v36080_v31  ;;  %v36125_v62 = vsel %vm29556_vm7, %v29662_v39, %v36086_v25  ;;  %v25084_v54 = vadd.f32 %v25083_v33, %v25007_v36 }
 0x42f   :  { %v32160_v46 = vpop.f32.mrf.mxu1  ;;  %v36129_v47 = vsel %vm29556_vm7, %v29608_v22, %v36089_v15  ;;  %v36133_v51 = vsel %vm29556_vm7, %v29682_v14, %v36092_v48  ;;  %v36137_v60 = vsel %vm29556_vm7, %v29555_v55, %v36095_v61  ;;  %v36141_v25 = vsel %vm29556_vm7, %v29626_v38, %v36098_v16 }
 0x431   :  { %v25157_v31 = vpop.f32.mrf.mxu0  ;;  %v25532_v8 = vpop.f32.mrf.mxu1 }
 0x432   :  { %v25158_v1 = vadd.f32 %v25157_v31, %v25084_v54 }
 0x433   :  { %v32145_v24 = vpop.f32.mrf.mxu0  ;;  %v32170_v27 = vpop.f32.mrf.mxu1 }
 0x434   :  { %v25232_v2 = vadd.f32 %v25231_v11, %v25158_v1 }
 0x435   :  { %v25305_v15 = vpop.f32.mrf.mxu0  ;;  %v25680_v44 = vpop.f32.mrf.mxu1 }
 0x436   :  { %v25306_v63 = vadd.f32 %v25305_v15, %v25232_v2 }
 0x437   :  { %v32155_v49 = vpop.f32.mrf.mxu0  ;;  %v32180_v18 = vpop.f32.mrf.mxu1 }
 0x438   :  { %v25378_v48 = vadd.f32 %v25377_v12, %v25306_v63 }
 0x439   :  { %v25456_v23 = vpop.f32.mrf.mxu0  ;;  %v25826_v9 = vpop.f32.mrf.mxu1 }
 0x43a   :  { %29472 = vrot.lane.b32.xlu1 %v25378_v48, %s32689_s2  ;;  %v25533_v29 = vadd.f32 %v25532_v8, %v25456_v23 }
 0x43b   :  { %v32165_v61 = vpop.f32.mrf.mxu0  ;;  %v32190_v34 = vpop.f32.mrf.mxu1 }
 0x43d   :  { %v25606_v16 = vpop.f32.mrf.mxu0 }
 0x43e   :  { %v25981_v10 = vpop.f32.mrf.mxu1  ;;  %v25607_v7 = vadd.f32 %v25606_v16, %v25533_v29 }
 0x43f   :  { %v32175_v37 = vpop.f32.mrf.mxu0 }
 0x440   :  { %v32200_v50 = vpop.f32.mrf.mxu1  ;;  %v25681_v43 = vadd.f32 %v25680_v44, %v25607_v7 }
 0x441   :  { %v25754_v21 = vpop.f32.mrf.mxu0 }
 0x442   :  { %v26129_v35 = vpop.f32.mrf.mxu1  ;;  %v25755_v33 = vadd.f32 %v25754_v21, %v25681_v43 }
 0x443   :  { %v32185_v41 = vpop.f32.mrf.mxu0 }
 0x444   :  { %v32210_v0 = vpop.f32.mrf.mxu1  ;;  %v25827_v56 = vadd.f32 %v25826_v9, %v25755_v33 }
 0x445   :  { %v25905_v19 = vpop.f32.mrf.mxu0 }
 0x446   :  { %v26275_v42 = vpop.f32.mrf.mxu1  ;;  %v25982_v45 = vadd.f32 %v25981_v10, %v25905_v19  ;;  %29504 = vrot.lane.b32.xlu1 %v25827_v56, %s32690_s3 }
 0x447   :  { %v32195_v11 = vpop.f32.mrf.mxu0 }
 0x448   :  { %v32220_v40 = vpop.f32.mrf.mxu1 }
 0x44a   :  { %v26055_v52 = vpop.f32.mrf.mxu0  ;;  %v26430_v6 = vpop.f32.mrf.mxu1 }
 0x44b   :  { %v26056_v20 = vadd.f32 %v26055_v52, %v25982_v45 }
 0x44c   :  { %v32205_v4 = vpop.f32.mrf.mxu0  ;;  %v32230_v26 = vpop.f32.mrf.mxu1 }
 0x44d   :  { %v26130_v57 = vadd.f32 %v26129_v35, %v26056_v20  ;;  %v29437_v26 = vpop.permute.xlu0 %29436 }
 0x44e   :  { %v26203_v32 = vpop.f32.mrf.mxu0  ;;  %v26578_v3 = vpop.f32.mrf.mxu1 }
 0x44f   :  { %v26204_v36 = vadd.f32 %v26203_v32, %v26130_v57 }
 0x450   :  { %v32215_v17 = vpop.f32.mrf.mxu0  ;;  %v32240_v12 = vpop.f32.mrf.mxu1 }
 0x451   :  { %v36145_v39 = vadd.f32 %v26275_v42, %v26204_v36 }
 0x452   :  { %v26354_v22 = vpop.f32.mrf.mxu0  ;;  %v26724_v14 = vpop.f32.mrf.mxu1 }
 0x453   :  { %v26431_v28 = vadd.f32 %v26430_v6, %v26354_v22  ;;  %v29469_v22 = vpop.permute.xlu0 %29468 }
 0x454   :  { %v32225_v55 = vpop.f32.mrf.mxu0  ;;  %v32250_v38 = vpop.f32.mrf.mxu1 }
 0x456   :  { %v26504_v54 = vpop.f32.mrf.mxu0  ;;  %v26879_v31 = vpop.f32.mrf.mxu1 }
 0x457   :  { %v26505_v46 = vadd.f32 %v26504_v54, %v26431_v28 }
 0x458   :  { %v32235_v1 = vpop.f32.mrf.mxu0  ;;  %v32260_v8 = vpop.f32.mrf.mxu1 }
 0x459   :  { %v26579_v24 = vadd.f32 %v26578_v3, %v26505_v46 }
 0x45a   :  { %v26652_v27 = vpop.f32.mrf.mxu0  ;;  %v27027_v15 = vpop.f32.mrf.mxu1 }
 0x45b   :  { %v26653_v2 = vadd.f32 %v26652_v27, %v26579_v24 }
 0x45c   :  { %v32245_v63 = vpop.f32.mrf.mxu0  ;;  %v32270_v44 = vpop.f32.mrf.mxu1 }
 0x45d   :  { %v26725_v49 = vadd.f32 %v26724_v14, %v26653_v2 }
 0x45e   :  { %v26803_v48 = vpop.f32.mrf.mxu0  ;;  %v27173_v18 = vpop.f32.mrf.mxu1 }
 0x45f   :  { %29442 = vrot.lane.b32.xlu1 %v26725_v49, %s32684_s21  ;;  %v26880_v61 = vadd.f32 %v26879_v31, %v26803_v48 }
 0x460   :  { %v32255_v23 = vpop.f32.mrf.mxu0  ;;  %v32280_v9 = vpop.f32.mrf.mxu1 }
 0x462   :  { %v26953_v34 = vpop.f32.mrf.mxu0 }
 0x463   :  { %v27328_v29 = vpop.f32.mrf.mxu1  ;;  %v26954_v16 = vadd.f32 %v26953_v34, %v26880_v61 }
 0x464   :  { %v32265_v10 = vpop.f32.mrf.mxu0 }
 0x465   :  { %v32290_v7 = vpop.f32.mrf.mxu1  ;;  %v27028_v37 = vadd.f32 %v27027_v15, %v26954_v16 }
 0x466   :  { %v27101_v50 = vpop.f32.mrf.mxu0 }
 0x467   :  { %v27476_v43 = vpop.f32.mrf.mxu1  ;;  %v27102_v21 = vadd.f32 %v27101_v50, %v27028_v37 }
 0x468   :  { %v32275_v35 = vpop.f32.mrf.mxu0 }
 0x469   :  { %v32300_v33 = vpop.f32.mrf.mxu1  ;;  %v27174_v41 = vadd.f32 %v27173_v18, %v27102_v21  ;;  %v29521_v35 = vsel %vm203_vm1, %v35946_v5, %v29437_v26 }
 0x46a   :  { %v27252_v0 = vpop.f32.mrf.mxu0 }
 0x46b   :  { %v27622_v56 = vpop.f32.mrf.mxu1  ;;  %29474 = vrot.lane.b32.xlu1 %v27174_v41, %s32689_s2  ;;  %v27329_v45 = vadd.f32 %v27328_v29, %v27252_v0  ;;  %v29530_v0 = vsel %vm29526_vm4, %v29521_v35, %v29469_v22 }
 0x46c   :  { %v32285_v19 = vpop.f32.mrf.mxu0 }
 0x46d   :  { %v32310_v42 = vpop.f32.mrf.mxu1 }
 0x46e   :  { %v29439_v55 = vpop.permute.xlu1 %29438 }
 0x46f   :  { %v27402_v11 = vpop.f32.mrf.mxu0  ;;  %v27777_v52 = vpop.f32.mrf.mxu1  ;;  %v29522_v31 = vsel %vm203_vm1, %v36065_v30, %v29439_v55 }
 0x470   :  { %v27403_v40 = vadd.f32 %v27402_v11, %v27329_v45 }
 0x471   :  { %v32295_v20 = vpop.f32.mrf.mxu0  ;;  %v32320_v6 = vpop.f32.mrf.mxu1 }
 0x472   :  { %v27477_v4 = vadd.f32 %v27476_v43, %v27403_v40 }
 0x473   :  { %v27550_v57 = vpop.f32.mrf.mxu0  ;;  %v27925_v36 = vpop.f32.mrf.mxu1 }
 0x474   :  { %v27551_v32 = vadd.f32 %v27550_v57, %v27477_v4 }
 0x475   :  { %v32305_v3 = vpop.f32.mrf.mxu0  ;;  %v32330_v12 = vpop.f32.mrf.mxu1 }
 0x476   :  { %v27623_v17 = vadd.f32 %v27622_v56, %v27551_v32 }
 0x477   :  { %v27701_v14 = vpop.f32.mrf.mxu0  ;;  %v28071_v38 = vpop.f32.mrf.mxu1 }
 0x478   :  { %v27778_v28 = vadd.f32 %v27777_v52, %v27701_v14  ;;  %29506 = vrot.lane.b32.xlu1 %v27623_v17, %s32690_s3 }
 0x479   :  { %v32315_v54 = vpop.f32.mrf.mxu0  ;;  %v32340_v46 = vpop.f32.mrf.mxu1 }
 0x47a   :  { %v29471_v1 = vpop.permute.xlu0 %29470 }
 0x47b   :  { %v27851_v8 = vpop.f32.mrf.mxu0  ;;  %v29531_v27 = vsel %vm29526_vm4, %v29522_v31, %v29471_v1 }
 0x47c   :  { %v28226_v24 = vpop.f32.mrf.mxu1  ;;  %v27852_v2 = vadd.f32 %v27851_v8, %v27778_v28 }
 0x47d   :  { %v32325_v15 = vpop.f32.mrf.mxu0 }
 0x47e   :  { %v32350_v63 = vpop.f32.mrf.mxu1  ;;  %v27926_v44 = vadd.f32 %v27925_v36, %v27852_v2 }
 0x47f   :  { %v27999_v49 = vpop.f32.mrf.mxu0 }
 0x480   :  { %v28374_v48 = vpop.f32.mrf.mxu1  ;;  %v28000_v18 = vadd.f32 %v27999_v49, %v27926_v44 }
 0x481   :  { %v32335_v23 = vpop.f32.mrf.mxu0 }
 0x482   :  { %v32360_v9 = vpop.f32.mrf.mxu1  ;;  %v36153_v61 = vadd.f32 %v28071_v38, %v28000_v18 }
 0x483   :  { %v28150_v34 = vpop.f32.mrf.mxu0 }
 0x484   :  { %v28520_v29 = vpop.f32.mrf.mxu1  ;;  %v28227_v10 = vadd.f32 %v28226_v24, %v28150_v34 }
 0x485   :  { %v32345_v16 = vpop.f32.mrf.mxu0 }
 0x486   :  { %v32370_v30 = vpop.f32.mrf.mxu1 }
 0x487   :  { %v29503_v7 = vpop.permute.xlu0 %29502  ;;  %v28300_v37 = vpop.f32.mrf.mxu0 }
 0x488   :  { %v28675_v50 = vpop.f32.mrf.mxu1  ;;  %v36156_v43 = vsel %vm29535_vm5, %v29531_v27, %v29503_v7  ;;  %v28301_v21 = vadd.f32 %v28300_v37, %v28227_v10 }
 0x489   :  { %v32355_v33 = vpop.f32.mrf.mxu0 }
 0x48a   :  { %v32380_v41 = vpop.f32.mrf.mxu1  ;;  %v28375_v56 = vadd.f32 %v28374_v48, %v28301_v21  ;;  %v29611_v33 = vrot.slane %v36156_v43, 3 }
 0x48b   :  { %v29501_v19 = vpop.permute.xlu0 %29500  ;;  %v28448_v42 = vpop.f32.mrf.mxu0 }
 0x48c   :  { %v28823_v45 = vpop.f32.mrf.mxu1  ;;  %v29539_v11 = vsel %vm29535_vm5, %v29530_v0, %v29501_v19  ;;  %v28449_v40 = vadd.f32 %v28448_v42, %v28375_v56  ;;  %v29575_v56 = vrot.slane %v36156_v43, 1  ;;  %v29646_v19 = vrot.slane %v36156_v43, 5 }
 0x48d   :  { %v29573_v52 = vrot.slane %v29539_v11, 6  ;;  %v29644_v20 = vrot.slane %v29539_v11, 2  ;;  %v29591_v6 = vrot.slane %v29539_v11, 7  ;;  %v32365_v4 = vpop.f32.mrf.mxu0  ;;  %v29664_v32 = vrot.slane %v29539_v11, 3 }
 0x48e   :  { %v32390_v57 = vpop.f32.mrf.mxu1  ;;  %v29610_v5 = vsel %vm29559_vm8, %v29539_v11, %v36129_v47  ;;  %v29684_v26 = vrot.slane %v29539_v11, 4  ;;  %v29558_v36 = vrot.slane %v29539_v11, 5  ;;  %v28521_v3 = vadd.f32 %v28520_v29, %v28449_v40 }
 0x48f   :  { %v29574_v17 = vsel %vm29559_vm8, %v29573_v52, %v36117_v53  ;;  %v29645_v12 = vsel %vm29559_vm8, %v29644_v20, %v36121_v13  ;;  %v29592_v22 = vsel %vm29559_vm8, %v29591_v6, %v36112_v59  ;;  %v28599_v14 = vpop.f32.mrf.mxu0  ;;  %v29665_v47 = vsel %vm29559_vm8, %v29664_v32, %v36125_v62 }
 0x490   :  { %v28969_v55 = vpop.f32.mrf.mxu1  ;;  %29581 = vrot.lane.b32.xlu0 %v29574_v17, %s32691_s9  ;;  %v29685_v28 = vsel %vm29559_vm8, %v29684_v26, %v36133_v51  ;;  %v36177_v53 = vsel %vm29559_vm8, %v29558_v36, %v36137_v60  ;;  %v29628_v38 = vrot.slane %v29539_v11, 1  ;;  %29444 = vrot.lane.b32.xlu1 %v28521_v3, %s32684_s21  ;;  %v28676_v46 = vadd.f32 %v28675_v50, %v28599_v14 }
 0x491   :  { %v32375_v13 = vpop.f32.mrf.mxu0  ;;  %v29593_v42 = vrot.slane %v36156_v43, 2  ;;  %v29666_v11 = vrot.slane %v36156_v43, 6  ;;  %v29686_v40 = vrot.slane %v36156_v43, 7  ;;  %v29630_v52 = vrot.slane %v36156_v43, 4 }
 0x492   :  { %v32400_v59 = vpop.f32.mrf.mxu1  ;;  %v36182_v54 = vsel %vm29559_vm8, %v29628_v38, %v36141_v25 }
 0x494   :  { %v28749_v31 = vpop.f32.mrf.mxu0  ;;  %29653 = vrot.lane.b32.xlu0 %v29645_v12, %s32691_s9  ;;  %v29124_v1 = vpop.f32.mrf.mxu1 }
 0x495   :  { %v28750_v62 = vadd.f32 %v28749_v31, %v28676_v46 }
 0x496   :  { %v32385_v51 = vpop.f32.mrf.mxu0  ;;  %v32410_v8 = vpop.f32.mrf.mxu1 }
 0x497   :  { %v28824_v24 = vadd.f32 %v28823_v45, %v28750_v62 }
 0x498   :  { %v28897_v60 = vpop.f32.mrf.mxu0  ;;  %29599 = vrot.lane.b32.xlu0 %v29592_v22, %s32692_s10  ;;  %v29272_v2 = vpop.f32.mrf.mxu1 }
 0x499   :  { %v28898_v27 = vadd.f32 %v28897_v60, %v28824_v24 }
 0x49a   :  { %v32395_v15 = vpop.f32.mrf.mxu0  ;;  %v32420_v44 = vpop.f32.mrf.mxu1 }
 0x49b   :  { %v28970_v63 = vadd.f32 %v28969_v55, %v28898_v27 }
 0x49c   :  { %v29048_v25 = vpop.f32.mrf.mxu0  ;;  %29673 = vrot.lane.b32.xlu0 %v29665_v47, %s32692_s10  ;;  %v29418_v49 = vpop.f32.mrf.mxu1 }
 0x49d   :  { %29476 = vrot.lane.b32.xlu1 %v28970_v63, %s32689_s2  ;;  %v29125_v18 = vadd.f32 %v29124_v1, %v29048_v25 }
 0x49e   :  { %v32405_v48 = vpop.f32.mrf.mxu0  ;;  %v32430_v23 = vpop.f32.mrf.mxu1 }
 0x49f   :  { %v29441_v50 = vpop.permute.xlu1 %29440 }
 0x4a0   :  { %v29198_v9 = vpop.f32.mrf.mxu0  ;;  %29617 = vrot.lane.b32.xlu0 %v29610_v5, %s32693_s11  ;;  %v29523_v35 = vsel %vm203_vm1, %v36104_v58, %v29441_v50 }
 0x4a1   :  { %v29199_v34 = vadd.f32 %v29198_v9, %v29125_v18 }
 0x4a2   :  { %v32415_v29 = vpop.f32.mrf.mxu0 }
 0x4a3   :  { %v29273_v16 = vadd.f32 %v29272_v2, %v29199_v34 }
 0x4a4   :  { %v29346_v30 = vpop.f32.mrf.mxu0  ;;  %29693 = vrot.lane.b32.xlu0 %v29685_v28, %s32693_s11 }
 0x4a5   :  { %v29347_v10 = vadd.f32 %v29346_v30, %v29273_v16 }
 0x4a6   :  { %v32425_v7 = vpop.f32.mrf.mxu0 }
 0x4a7   :  { %v29419_v37 = vadd.f32 %v29418_v49, %v29347_v10 }
 0x4a9   :  { %29508 = vrot.lane.b32.xlu1 %v29419_v37, %s32690_s3 }
 0x4ac   :  { %v29473_v21 = vpop.permute.xlu1 %29472 }
 0x4ad   :  { %v29532_v41 = vsel %vm29526_vm4, %v29523_v35, %v29473_v21 }
 0x4b8   :  { %v29505_v0 = vpop.permute.xlu1 %29504 }
 0x4b9   :  { %v29541_v45 = vsel %vm29535_vm5, %v29532_v41, %v29505_v0 }
 0x4ba   :  { %v29612_v58 = vrot.slane %v29541_v45, 2  ;;  %v29576_v20 = vsel %vm29553_vm6, %v29541_v45, %v29575_v56  ;;  %v29647_v6 = vrot.slane %v29541_v45, 4  ;;  %v29594_v4 = vrot.slane %v29541_v45, 1 }
 0x4bb   :  { %v29667_v57 = vrot.slane %v29541_v45, 5  ;;  %v29687_v32 = vrot.slane %v29541_v45, 6  ;;  %v29561_v5 = vrot.slane %v29541_v45, 7  ;;  %v29631_v26 = vrot.slane %v29541_v45, 3 }
 0x4bc   :  { %v29613_v36 = vsel %vm29553_vm6, %v29612_v58, %v29611_v33  ;;  %v29648_v3 = vsel %vm29553_vm6, %v29647_v6, %v29646_v19  ;;  %v29595_v17 = vsel %vm29553_vm6, %v29594_v4, %v29593_v42 }
 0x4bd   :  { %v29668_v12 = vsel %vm29553_vm6, %v29667_v57, %v29666_v11  ;;  %v29688_v22 = vsel %vm29553_vm6, %v29687_v32, %v29686_v40  ;;  %v29562_v14 = vsel %vm29553_vm6, %v29561_v5, %v36156_v43  ;;  %v29632_v55 = vsel %vm29553_vm6, %v29631_v26, %v29630_v52 }
 0x4d1   :  { %v29443_v47 = vpop.permute.xlu1 %29442 }
 0x4d2   :  { %v29524_v38 = vsel %vm203_vm1, %v36145_v39, %v29443_v47 }
 0x4dd   :  { %v29475_v28 = vpop.permute.xlu1 %29474 }
 0x4de   :  { %v29533_v13 = vsel %vm29526_vm4, %v29524_v38, %v29475_v28 }
 0x4ea   :  { %v29507_v59 = vpop.permute.xlu1 %29506 }
 0x4eb   :  { %v29542_v46 = vsel %vm29535_vm5, %v29533_v13, %v29507_v59 }
 0x4ec   :  { %v29614_v31 = vrot.slane %v29542_v46, 1  ;;  %v29577_v62 = vrot.slane %v29542_v46, 7  ;;  %v29649_v1 = vrot.slane %v29542_v46, 3  ;;  %v29596_v51 = vsel %vm29556_vm7, %v29542_v46, %v29595_v17 }
 0x4ed   :  { %v29669_v8 = vrot.slane %v29542_v46, 4  ;;  %v29689_v24 = vrot.slane %v29542_v46, 5  ;;  %v29563_v43 = vrot.slane %v29542_v46, 6  ;;  %v29633_v60 = vrot.slane %v29542_v46, 2 }
 0x4ee   :  { %v29615_v27 = vsel %vm29556_vm7, %v29614_v31, %v29613_v36  ;;  %v29578_v2 = vsel %vm29556_vm7, %v29577_v62, %v29576_v20  ;;  %v29650_v39 = vsel %vm29556_vm7, %v29649_v1, %v29648_v3 }
 0x4ef   :  { %v29670_v15 = vsel %vm29556_vm7, %v29669_v8, %v29668_v12  ;;  %v29690_v63 = vsel %vm29556_vm7, %v29689_v24, %v29688_v22  ;;  %v29564_v44 = vsel %vm29556_vm7, %v29563_v43, %v29562_v14  ;;  %v29634_v25 = vsel %vm29556_vm7, %v29633_v60, %v29632_v55 }
 0x502   :  { %v29582_v49 = vpop.permute.xlu0 %29581  ;;  %v29445_v34 = vpop.permute.xlu1 %29444 }
 0x503   :  { %v29700_v29 = vsel %vm29699_vm9, %v36177_v53, %v29582_v49  ;;  %v29525_v33 = vsel %vm203_vm1, %v36153_v61, %v29445_v34 }
 0x506   :  { %v29654_v48 = vpop.permute.xlu0 %29653 }
 0x507   :  { %v29708_v16 = vsel %vm29699_vm9, %v36182_v54, %v29654_v48 }
 0x50a   :  { %v29600_v18 = vpop.permute.xlu0 %29599 }
 0x50b   :  { %v29703_v30 = vsel %vm29702_vm10, %v29700_v29, %v29600_v18 }
 0x50e   :  { %v29674_v23 = vpop.permute.xlu0 %29673 }
 0x50f   :  { %v29710_v10 = vsel %vm29702_vm10, %v29708_v16, %v29674_v23  ;;  %v29477_v37 = vpop.permute.xlu1 %29476 }
 0x510   :  { %v29534_v53 = vsel %vm29526_vm4, %v29525_v33, %v29477_v37 }
 0x512   :  { %v29618_v9 = vpop.permute.xlu0 %29617 }
 0x513   :  { %v29706_v50 = vsel %vm29705_vm11, %v29703_v30, %v29618_v9 }
 0x516   :  { %v29694_v7 = vpop.permute.xlu0 %29693 }
 0x517   :  { %v29712_v21 = vsel %vm29705_vm11, %v29710_v10, %v29694_v7 }
 0x518   :  { %v29718_v35 = vcombine.low %v29706_v50, %v29712_v21 }
 0x51a   :  { %29722 = vst [vmem:[#allocation10] sm:$0xff] %v29718_v35 }
 0x51b   :  { %v29509_v41 = vpop.permute.xlu1 %29508 }
 0x51c   :  { %v29543_v54 = vsel %vm29535_vm5, %v29534_v53, %v29509_v41 }
 0x51d   :  { %v29616_v0 = vsel %vm29559_vm8, %v29543_v54, %v29615_v27  ;;  %v29579_v56 = vrot.slane %v29543_v54, 6  ;;  %v29651_v19 = vrot.slane %v29543_v54, 2  ;;  %v29597_v42 = vrot.slane %v29543_v54, 7 }
 0x51e   :  { %29619 = vrot.lane.b32.xlu1 %v29616_v0, %s32693_s11  ;;  %v29671_v45 = vrot.slane %v29543_v54, 3  ;;  %v29691_v11 = vrot.slane %v29543_v54, 4  ;;  %v29565_v40 = vrot.slane %v29543_v54, 5  ;;  %v29635_v52 = vrot.slane %v29543_v54, 1 }
 0x51f   :  { %v29580_v58 = vsel %vm29559_vm8, %v29579_v56, %v29578_v2  ;;  %v29652_v61 = vsel %vm29559_vm8, %v29651_v19, %v29650_v39  ;;  %v29598_v20 = vsel %vm29559_vm8, %v29597_v42, %v29596_v51 }
 0x520   :  { %v29672_v6 = vsel %vm29559_vm8, %v29671_v45, %v29670_v15  ;;  %v29692_v4 = vsel %vm29559_vm8, %v29691_v11, %v29690_v63  ;;  %v29566_v57 = vsel %vm29559_vm8, %v29565_v40, %v29564_v44  ;;  %v29636_v32 = vsel %vm29559_vm8, %v29635_v52, %v29634_v25 }
 0x522   :  { %29583 = vrot.lane.b32.xlu1 %v29580_v58, %s32691_s9 }
 0x526   :  { %29655 = vrot.lane.b32.xlu1 %v29652_v61, %s32691_s9 }
 0x52a   :  { %29601 = vrot.lane.b32.xlu1 %v29598_v20, %s32692_s10 }
 0x52e   :  { %29675 = vrot.lane.b32.xlu1 %v29672_v6, %s32692_s10 }
 0x532   :  { %29695 = vrot.lane.b32.xlu1 %v29692_v4, %s32693_s11 }
 0x590   :  { %v29620_v5 = vpop.permute.xlu1 %29619 }
 0x594   :  { %v29584_v26 = vpop.permute.xlu1 %29583 }
 0x595   :  { %v29701_v12 = vsel %vm29699_vm9, %v29566_v57, %v29584_v26 }
 0x598   :  { %v29656_v36 = vpop.permute.xlu1 %29655 }
 0x599   :  { %v29709_v14 = vsel %vm29699_vm9, %v29636_v32, %v29656_v36 }
 0x59c   :  { %v29602_v3 = vpop.permute.xlu1 %29601 }
 0x59d   :  { %v29704_v22 = vsel %vm29702_vm10, %v29701_v12, %v29602_v3 }
 0x59e   :  { %v29707_v28 = vsel %vm29705_vm11, %v29704_v22, %v29620_v5 }
 0x5a0   :  { %v29676_v17 = vpop.permute.xlu1 %29675 }
 0x5a1   :  { %v29711_v55 = vsel %vm29702_vm10, %v29709_v14, %v29676_v17 }
 0x5a4   :  { %v29696_v47 = vpop.permute.xlu1 %29695 }
 0x5a5   :  { %v29713_v38 = vsel %vm29705_vm11, %v29711_v55, %v29696_v47 }
 0x5a6   :  { %v29719_v13 = vcombine.low %v29707_v28, %v29713_v38 }
 0x5a8   :  { %29723 = vst [vmem:[#allocation10 + $0x8] sm:$0xff] %v29719_v13 }
 0x5a9   :  { %32664 = shalt.err (!%p32661_p10)
}
 0x5aa   :  { %29735 = dma.vmem_to_hbm [thread:$0]  %s29730_s13, 256, %s36265_s4, [#allocation4], %s32683_s20, %s32683_s20, %s32684_s21  }
 0x5ab   :  { %32679 = dma.done.wait [#allocation4], 256  }
 0x5ac   :  { %32680 = vsyncadd [#allocation4], 4294967040 }
 0x5ad   :  { %29739 = vsyncpa [#allocation3], 1 }
 0x5ae   :  { %29740 = vsyncpa [#allocation6], 1 }
 0x5af   :  { %29741 = vsyncpa [#allocation9], 1 }
 0x5b0   :  { %29742 = vsyncpa [#allocation4], 1 }

</bundles_post_ra>
